<compile_context>
chip_gen: v7x
topology: tpu7x:2x2x1
jax: 0.10.0
libtpu: 0.0.40
codegen_flags: <defaults>
</compile_context>

<pallas_src>
import jax
import jax.numpy as jnp
from jax.experimental import pallas as pl
from jax.experimental.pallas import tpu as pltpu

EPS = 1e-5


# ----------------------------------------------------------------------------
# Shared conv3x3 (stride 1, groups 1) + partial-BN-stats tail (one image/block).
# ----------------------------------------------------------------------------
def _conv_tail(z, w_ref, y_ref, ssum_ref, ssq_ref, pad_ref, patch_ref):
    """z: (H, W, Cin) f32.  w_ref: (9*Cin, Cout) bf16 packed (ky, kx, cin)->cout.

    Writes y_ref (1, H, W, Cout) plus per-image partial BN statistics
    ssum_ref / ssq_ref (1, 1, Cout) computed from the f32 accumulator.
    """
    H, W, Cin = z.shape

    # 1-pixel zero halo built in VMEM scratch (replaces the wrapper-level
    # jnp.pad, which was an extra full HBM write+read of the activation).
    pad_ref[...] = jnp.zeros_like(pad_ref)
    pad_ref[1:H + 1, 1:W + 1, :] = z

    # im2col: lay the 9 taps out along K so the MXU sees one K=9*Cin matmul
    # instead of 9 small K=Cin accumulating dots.  Cast to bf16 only here,
    # at the MXU boundary (VPU math stays f32).
    t = 0
    for ky in range(3):
        for kx in range(3):
            tap = pad_ref[ky:ky + H, kx:kx + W, :].reshape(H * W, Cin)
            patch_ref[:, t * Cin:(t + 1) * Cin] = tap.astype(jnp.bfloat16)
            t += 1

    # Native bf16 MXU matmul with f32 accumulation (no Precision.HIGHEST
    # multi-pass emulation).
    acc = jnp.dot(patch_ref[...], w_ref[...], preferred_element_type=jnp.float32)

    # Per-image partial BatchNorm statistics (reduced across images outside).
    ssum_ref[0] = jnp.sum(acc, axis=0, keepdims=True)
    ssq_ref[0] = jnp.sum(acc * acc, axis=0, keepdims=True)

    y_ref[0] = acc.reshape(H, W, acc.shape[-1]).astype(y_ref.dtype)


# ----------------------------------------------------------------------------
# Kernel bodies
# ----------------------------------------------------------------------------
def _conv1_stats_kernel(x_ref, w_ref, y_ref, ssum_ref, ssq_ref,
                        pad_ref, patch_ref):
    # x_ref: (1, H, W, Cin) input image.
    _conv_tail(x_ref[0].astype(jnp.float32), w_ref, y_ref, ssum_ref, ssq_ref,
               pad_ref, patch_ref)


def _bn_relu_conv2_stats_kernel(y1_ref, aff_ref, w_ref, y2_ref,
                                ssum_ref, ssq_ref, pad_ref, patch_ref):
    # aff_ref: (2, C) f32 = [scale; shift] with scale = g * rsqrt(var + eps),
    # shift = b - mean * scale (BatchNorm folded to one fused multiply-add).
    y = y1_ref[0].astype(jnp.float32)
    z = jnp.maximum(y * aff_ref[0:1, :] + aff_ref[1:2, :], 0.0)   # bn1 + relu
    _conv_tail(z, w_ref, y2_ref, ssum_ref, ssq_ref, pad_ref, patch_ref)


def _bn_add_relu_kernel(y2_ref, aff_ref, id_ref, o_ref):
    # Epilogue: bn2 (affine) + residual add + relu.
    y = y2_ref[0].astype(jnp.float32)
    out = y * aff_ref[0:1, :] + aff_ref[1:2, :] + id_ref[0].astype(jnp.float32)
    o_ref[0] = jnp.maximum(out, 0.0).astype(o_ref.dtype)


# ----------------------------------------------------------------------------
# pallas_call wrappers (grid over images, "parallel" -> megacore-safe since
# stats are emitted as per-image partials, not accumulated across the grid)
# ----------------------------------------------------------------------------
def _conv1_pass(x_nhwc, w_packed):
    N, H, W, Cin = x_nhwc.shape
    Cout = w_packed.shape[-1]
    return pl.pallas_call(
        _conv1_stats_kernel,
        out_shape=(jax.ShapeDtypeStruct((N, H, W, Cout), jnp.bfloat16),
                   jax.ShapeDtypeStruct((N, 1, Cout), jnp.float32),
                   jax.ShapeDtypeStruct((N, 1, Cout), jnp.float32)),
        grid=(N,),
        in_specs=[
            pl.BlockSpec((1, H, W, Cin), lambda n: (n, 0, 0, 0)),
            pl.BlockSpec((9 * Cin, Cout), lambda n: (0, 0)),
        ],
        out_specs=(
            pl.BlockSpec((1, H, W, Cout), lambda n: (n, 0, 0, 0)),
            pl.BlockSpec((1, 1, Cout), lambda n: (n, 0, 0)),
            pl.BlockSpec((1, 1, Cout), lambda n: (n, 0, 0)),
        ),
        scratch_shapes=[
            pltpu.VMEM((H + 2, W + 2, Cin), jnp.float32),     # halo'd activation
            pltpu.VMEM((H * W, 9 * Cin), jnp.bfloat16),       # im2col patch
        ],
        compiler_params=pltpu.CompilerParams(
            dimension_semantics=("parallel",)),
    )(x_nhwc, w_packed)


def _bn_relu_conv2_pass(y1, aff1, w_packed):
    N, H, W, C = y1.shape
    Cout = w_packed.shape[-1]
    return pl.pallas_call(
        _bn_relu_conv2_stats_kernel,
        out_shape=(jax.ShapeDtypeStruct((N, H, W, Cout), jnp.bfloat16),
                   jax.ShapeDtypeStruct((N, 1, Cout), jnp.float32),
                   jax.ShapeDtypeStruct((N, 1, Cout), jnp.float32)),
        grid=(N,),
        in_specs=[
            pl.BlockSpec((1, H, W, C), lambda n: (n, 0, 0, 0)),
            pl.BlockSpec((2, C), lambda n: (0, 0)),
            pl.BlockSpec((9 * C, Cout), lambda n: (0, 0)),
        ],
        out_specs=(
            pl.BlockSpec((1, H, W, Cout), lambda n: (n, 0, 0, 0)),
            pl.BlockSpec((1, 1, Cout), lambda n: (n, 0, 0)),
            pl.BlockSpec((1, 1, Cout), lambda n: (n, 0, 0)),
        ),
        scratch_shapes=[
            pltpu.VMEM((H + 2, W + 2, C), jnp.float32),
            pltpu.VMEM((H * W, 9 * C), jnp.bfloat16),
        ],
        compiler_params=pltpu.CompilerParams(
            dimension_semantics=("parallel",)),
    )(y1, aff1, w_packed)


def _bn_add_relu_pass(y2, aff2, identity_nhwc):
    N, H, W, C = y2.shape
    return pl.pallas_call(
        _bn_add_relu_kernel,
        out_shape=jax.ShapeDtypeStruct((N, H, W, C), identity_nhwc.dtype),
        grid=(N,),
        in_specs=[
            pl.BlockSpec((1, H, W, C), lambda n: (n, 0, 0, 0)),
            pl.BlockSpec((2, C), lambda n: (0, 0)),
            pl.BlockSpec((1, H, W, C), lambda n: (n, 0, 0, 0)),
        ],
        out_specs=pl.BlockSpec((1, H, W, C), lambda n: (n, 0, 0, 0)),
        compiler_params=pltpu.CompilerParams(
            dimension_semantics=("parallel",)),
    )(y2, aff2, identity_nhwc)


# ----------------------------------------------------------------------------
# O(C) glue between passes: per-image partial (sum, sumsq) -> BN scale/shift.
# ----------------------------------------------------------------------------
def _bn_affine(s_sum, s_sq, gamma, beta, count):
    s = jnp.sum(s_sum[:, 0, :], axis=0)        # (C,)
    sq = jnp.sum(s_sq[:, 0, :], axis=0)        # (C,)
    mean = s / count
    # E[x^2] - mean^2 can go slightly negative in f32: clamp before rsqrt.
    var = jnp.maximum(sq / count - mean * mean, 0.0)
    scale = gamma.astype(jnp.float32) * jax.lax.rsqrt(var + EPS)
    shift = beta.astype(jnp.float32) - mean * scale
    return jnp.stack([scale, shift], axis=0)   # (2, C)


# ----------------------------------------------------------------------------
# BasicBlockGroup forward (tam=None, downsample=None, groups=1, stride=1)
# ----------------------------------------------------------------------------
def basic_block_group_forward(x_nchw, params, *, groups=1, stride=1):
    if groups != 1 or stride != 1:
        # TODO(synk): grouped / strided conv3x3_group variants not implemented.
        raise NotImplementedError("only groups=1, stride=1 is implemented")

    N, Cin, H, W = x_nchw.shape
    Cout = params["w1"].shape[-1]
    assert params["w1"].shape == (3, 3, Cin, Cout)
    assert Cin == Cout, "residual add without downsample needs inplanes==planes"

    # Single layout change; vanishes if the surrounding model is NHWC.
    x = jnp.transpose(x_nchw, (0, 2, 3, 1))            # NCHW -> NHWC

    # Pack conv weights once as (ky*3*Cin + kx*Cin + cin, cout), bf16 for the
    # native MXU path (f32 accumulation happens inside the kernels).
    w1p = params["w1"].reshape(9 * Cin, Cout).astype(jnp.bfloat16)
    w2p = params["w2"].reshape(9 * Cout, Cout).astype(jnp.bfloat16)

    cnt = float(N * H * W)

    y1, s1, q1 = _conv1_pass(x, w1p)                               # pass 1
    aff1 = _bn_affine(s1, q1, params["g1"], params["b1"], cnt)
    y2, s2, q2 = _bn_relu_conv2_pass(y1, aff1, w2p)                # pass 2
    aff2 = _bn_affine(s2, q2, params["g2"], params["b2"], cnt)
    out = _bn_add_relu_pass(y2, aff2, x)                           # pass 3

    return jnp.transpose(out, (0, 3, 1, 2))            # NHWC -> NCHW


# ----------------------------------------------------------------------------
# Pure-JAX reference (NCHW, f32 HIGHEST precision) for correctness check.
# ----------------------------------------------------------------------------
def _reference_forward(x_nchw, params):
    def conv(x, w):
        return jax.lax.conv_general_dilated(
            x, w, window_strides=(1, 1), padding=((1, 1), (1, 1)),
            dimension_numbers=("NCHW", "HWIO", "NCHW"),
            precision=jax.lax.Precision.HIGHEST)

    def bn(x, g, b):
        mean = jnp.mean(x, axis=(0, 2, 3), keepdims=True)
        var = jnp.mean((x - mean) ** 2, axis=(0, 2, 3), keepdims=True)
        return (x - mean) * jax.lax.rsqrt(var + EPS) * g.reshape(1, -1, 1, 1) \
            + b.reshape(1, -1, 1, 1)

    identity = x_nchw
    out = jnp.maximum(bn(conv(x_nchw, params["w1"]), params["g1"], params["b1"]), 0.0)
    out = bn(conv(out, params["w2"]), params["g2"], params["b2"])
    return jnp.maximum(out + identity, 0.0)


def init_params(key, inplanes, planes):
    k1, k2 = jax.random.split(key)
    std1 = (2.0 / (9 * inplanes)) ** 0.5     # kaiming-like, deterministic
    std2 = (2.0 / (9 * planes)) ** 0.5
    return {
        # conv weights stored as HWIO (3, 3, Cin, Cout)
        "w1": std1 * jax.random.normal(k1, (3, 3, inplanes, planes), jnp.float32),
        "g1": jnp.ones((planes,), jnp.float32),
        "b1": jnp.zeros((planes,), jnp.float32),
        "w2": std2 * jax.random.normal(k2, (3, 3, planes, planes), jnp.float32),
        "g2": jnp.ones((planes,), jnp.float32),
        "b2": jnp.zeros((planes,), jnp.float32),
    }


if __name__ == "__main__":
    key = jax.random.PRNGKey(0)
    kx, kp = jax.random.split(key)

    N, C, H, W = 2, 16, 16, 16          # inplanes == planes == 16 (expansion=1)
    x = jax.random.normal(kx, (N, C, H, W), jnp.float32)
    params = init_params(kp, C, C)

    fwd = jax.jit(basic_block_group_forward)
    out = jax.block_until_ready(fwd(x, params))

    ref = _reference_forward(x, params)
    assert out.shape == ref.shape == (N, C, H, W)
    # bf16 MXU inputs (f32 accumulation) vs the f32 HIGHEST-precision reference:
    # tolerance widened accordingly (typical max abs error here is ~1e-2).
    assert jnp.allclose(out, ref, atol=5e-2, rtol=5e-2), "mismatch vs reference"

    print("KERNEL_OK")
</pallas_src>

<mosaic_0001>
module attributes {stable_mosaic.version = 11 : i64} {
  func.func @_conv1_stats_kernel(%arg0: i32, %arg1: memref<1x16x16x16xf32, #tpu.memory_space<vmem>>, %arg2: memref<144x16xbf16, #tpu.memory_space<vmem>>, %arg3: memref<1x16x16x16xbf16, #tpu.memory_space<vmem>>, %arg4: memref<1x1x16xf32, #tpu.memory_space<vmem>>, %arg5: memref<1x1x16xf32, #tpu.memory_space<vmem>>, %arg6: memref<18x18x16xf32, #tpu.memory_space<vmem>>, %arg7: memref<256x144xbf16, #tpu.memory_space<vmem>>) attributes {dimension_semantics = [#tpu.dimension_semantics<parallel>], iteration_bounds = array<i64: 2>, scalar_prefetch = 0 : i64, scratch_operands = 2 : i64, tpu.core_type = #tpu.core_type<tc>, window_params = [{transform_indices = @transform_0, window_bounds = array<i64: 1, 16, 16, 16>}, {pipeline_mode = #tpu.pipeline_mode<synchronous>, transform_indices = @transform_1, window_bounds = array<i64: 144, 16>}, {transform_indices = @transform_2, window_bounds = array<i64: 1, 16, 16, 16>}, {transform_indices = @transform_3, window_bounds = array<i64: 1, 1, 16>}, {transform_indices = @transform_4, window_bounds = array<i64: 1, 1, 16>}]} {
    %c0 = arith.constant 0 : index
    %c0_0 = arith.constant 0 : index
    %c0_1 = arith.constant 0 : index
    %c0_2 = arith.constant 0 : index
    %0 = vector.load %arg1[%c0, %c0_0, %c0_1, %c0_2] : memref<1x16x16x16xf32, #tpu.memory_space<vmem>>, vector<1x16x16x16xf32>
    %1 = vector.shape_cast %0 : vector<1x16x16x16xf32> to vector<16x16x16xf32>
    %cst = arith.constant 0.000000e+00 : f32
    %2 = vector.broadcast %cst : f32 to vector<18x18x16xf32>
    %c0_3 = arith.constant 0 : index
    %c0_4 = arith.constant 0 : index
    %c0_5 = arith.constant 0 : index
    %3 = vector.load %arg6[%c0_3, %c0_4, %c0_5] : memref<18x18x16xf32, #tpu.memory_space<vmem>>, vector<18x18x16xf32>
    tpu.vector_store %arg6[%c0_3, %c0_4, %c0_5], %2 {strides = array<i32>} : memref<18x18x16xf32, #tpu.memory_space<vmem>>, vector<18x18x16xf32>,
    %c1 = arith.constant 1 : index
    %c1_6 = arith.constant 1 : index
    %c0_7 = arith.constant 0 : index
    %4 = vector.load %arg6[%c1, %c1_6, %c0_7] : memref<18x18x16xf32, #tpu.memory_space<vmem>>, vector<16x16x16xf32>
    tpu.vector_store %arg6[%c1, %c1_6, %c0_7], %1 {strides = array<i32>} : memref<18x18x16xf32, #tpu.memory_space<vmem>>, vector<16x16x16xf32>,
    %c0_8 = arith.constant 0 : index
    %c0_9 = arith.constant 0 : index
    %c0_10 = arith.constant 0 : index
    %5 = vector.load %arg6[%c0_8, %c0_9, %c0_10] : memref<18x18x16xf32, #tpu.memory_space<vmem>>, vector<16x16x16xf32>
    %6 = vector.shape_cast %5 : vector<16x16x16xf32> to vector<256x16xf32>
    %7 = arith.truncf %6 : vector<256x16xf32> to vector<256x16xbf16>
    %c0_11 = arith.constant 0 : index
    %c0_12 = arith.constant 0 : index
    %8 = vector.load %arg7[%c0_11, %c0_12] : memref<256x144xbf16, #tpu.memory_space<vmem>>, vector<256x16xbf16>
    tpu.vector_store %arg7[%c0_11, %c0_12], %7 {strides = array<i32>} : memref<256x144xbf16, #tpu.memory_space<vmem>>, vector<256x16xbf16>,
    %c0_13 = arith.constant 0 : index
    %c1_14 = arith.constant 1 : index
    %c0_15 = arith.constant 0 : index
    %9 = vector.load %arg6[%c0_13, %c1_14, %c0_15] : memref<18x18x16xf32, #tpu.memory_space<vmem>>, vector<16x16x16xf32>
    %10 = vector.shape_cast %9 : vector<16x16x16xf32> to vector<256x16xf32>
    %11 = arith.truncf %10 : vector<256x16xf32> to vector<256x16xbf16>
    %c0_16 = arith.constant 0 : index
    %c16 = arith.constant 16 : index
    %12 = vector.load %arg7[%c0_16, %c16] : memref<256x144xbf16, #tpu.memory_space<vmem>>, vector<256x16xbf16>
    tpu.vector_store %arg7[%c0_16, %c16], %11 {strides = array<i32>} : memref<256x144xbf16, #tpu.memory_space<vmem>>, vector<256x16xbf16>,
    %c0_17 = arith.constant 0 : index
    %c2 = arith.constant 2 : index
    %c0_18 = arith.constant 0 : index
    %13 = vector.load %arg6[%c0_17, %c2, %c0_18] : memref<18x18x16xf32, #tpu.memory_space<vmem>>, vector<16x16x16xf32>
    %14 = vector.shape_cast %13 : vector<16x16x16xf32> to vector<256x16xf32>
    %15 = arith.truncf %14 : vector<256x16xf32> to vector<256x16xbf16>
    %c0_19 = arith.constant 0 : index
    %c32 = arith.constant 32 : index
    %16 = vector.load %arg7[%c0_19, %c32] : memref<256x144xbf16, #tpu.memory_space<vmem>>, vector<256x16xbf16>
    tpu.vector_store %arg7[%c0_19, %c32], %15 {strides = array<i32>} : memref<256x144xbf16, #tpu.memory_space<vmem>>, vector<256x16xbf16>,
    %c1_20 = arith.constant 1 : index
    %c0_21 = arith.constant 0 : index
    %c0_22 = arith.constant 0 : index
    %17 = vector.load %arg6[%c1_20, %c0_21, %c0_22] : memref<18x18x16xf32, #tpu.memory_space<vmem>>, vector<16x16x16xf32>
    %18 = vector.shape_cast %17 : vector<16x16x16xf32> to vector<256x16xf32>
    %19 = arith.truncf %18 : vector<256x16xf32> to vector<256x16xbf16>
    %c0_23 = arith.constant 0 : index
    %c48 = arith.constant 48 : index
    %20 = vector.load %arg7[%c0_23, %c48] : memref<256x144xbf16, #tpu.memory_space<vmem>>, vector<256x16xbf16>
    tpu.vector_store %arg7[%c0_23, %c48], %19 {strides = array<i32>} : memref<256x144xbf16, #tpu.memory_space<vmem>>, vector<256x16xbf16>,
    %c1_24 = arith.constant 1 : index
    %c1_25 = arith.constant 1 : index
    %c0_26 = arith.constant 0 : index
    %21 = vector.load %arg6[%c1_24, %c1_25, %c0_26] : memref<18x18x16xf32, #tpu.memory_space<vmem>>, vector<16x16x16xf32>
    %22 = vector.shape_cast %21 : vector<16x16x16xf32> to vector<256x16xf32>
    %23 = arith.truncf %22 : vector<256x16xf32> to vector<256x16xbf16>
    %c0_27 = arith.constant 0 : index
    %c64 = arith.constant 64 : index
    %24 = vector.load %arg7[%c0_27, %c64] : memref<256x144xbf16, #tpu.memory_space<vmem>>, vector<256x16xbf16>
    tpu.vector_store %arg7[%c0_27, %c64], %23 {strides = array<i32>} : memref<256x144xbf16, #tpu.memory_space<vmem>>, vector<256x16xbf16>,
    %c1_28 = arith.constant 1 : index
    %c2_29 = arith.constant 2 : index
    %c0_30 = arith.constant 0 : index
    %25 = vector.load %arg6[%c1_28, %c2_29, %c0_30] : memref<18x18x16xf32, #tpu.memory_space<vmem>>, vector<16x16x16xf32>
    %26 = vector.shape_cast %25 : vector<16x16x16xf32> to vector<256x16xf32>
    %27 = arith.truncf %26 : vector<256x16xf32> to vector<256x16xbf16>
    %c0_31 = arith.constant 0 : index
    %c80 = arith.constant 80 : index
    %28 = vector.load %arg7[%c0_31, %c80] : memref<256x144xbf16, #tpu.memory_space<vmem>>, vector<256x16xbf16>
    tpu.vector_store %arg7[%c0_31, %c80], %27 {strides = array<i32>} : memref<256x144xbf16, #tpu.memory_space<vmem>>, vector<256x16xbf16>,
    %c2_32 = arith.constant 2 : index
    %c0_33 = arith.constant 0 : index
    %c0_34 = arith.constant 0 : index
    %29 = vector.load %arg6[%c2_32, %c0_33, %c0_34] : memref<18x18x16xf32, #tpu.memory_space<vmem>>, vector<16x16x16xf32>
    %30 = vector.shape_cast %29 : vector<16x16x16xf32> to vector<256x16xf32>
    %31 = arith.truncf %30 : vector<256x16xf32> to vector<256x16xbf16>
    %c0_35 = arith.constant 0 : index
    %c96 = arith.constant 96 : index
    %32 = vector.load %arg7[%c0_35, %c96] : memref<256x144xbf16, #tpu.memory_space<vmem>>, vector<256x16xbf16>
    tpu.vector_store %arg7[%c0_35, %c96], %31 {strides = array<i32>} : memref<256x144xbf16, #tpu.memory_space<vmem>>, vector<256x16xbf16>,
    %c2_36 = arith.constant 2 : index
    %c1_37 = arith.constant 1 : index
    %c0_38 = arith.constant 0 : index
    %33 = vector.load %arg6[%c2_36, %c1_37, %c0_38] : memref<18x18x16xf32, #tpu.memory_space<vmem>>, vector<16x16x16xf32>
    %34 = vector.shape_cast %33 : vector<16x16x16xf32> to vector<256x16xf32>
    %35 = arith.truncf %34 : vector<256x16xf32> to vector<256x16xbf16>
    %c0_39 = arith.constant 0 : index
    %c112 = arith.constant 112 : index
    %36 = vector.load %arg7[%c0_39, %c112] : memref<256x144xbf16, #tpu.memory_space<vmem>>, vector<256x16xbf16>
    tpu.vector_store %arg7[%c0_39, %c112], %35 {strides = array<i32>} : memref<256x144xbf16, #tpu.memory_space<vmem>>, vector<256x16xbf16>,
    %c2_40 = arith.constant 2 : index
    %c2_41 = arith.constant 2 : index
    %c0_42 = arith.constant 0 : index
    %37 = vector.load %arg6[%c2_40, %c2_41, %c0_42] : memref<18x18x16xf32, #tpu.memory_space<vmem>>, vector<16x16x16xf32>
    %38 = vector.shape_cast %37 : vector<16x16x16xf32> to vector<256x16xf32>
    %39 = arith.truncf %38 : vector<256x16xf32> to vector<256x16xbf16>
    %c0_43 = arith.constant 0 : index
    %c128 = arith.constant 128 : index
    %40 = vector.load %arg7[%c0_43, %c128] : memref<256x144xbf16, #tpu.memory_space<vmem>>, vector<256x16xbf16>
    tpu.vector_store %arg7[%c0_43, %c128], %39 {strides = array<i32>} : memref<256x144xbf16, #tpu.memory_space<vmem>>, vector<256x16xbf16>,
    %c0_44 = arith.constant 0 : index
    %c0_45 = arith.constant 0 : index
    %41 = vector.load %arg7[%c0_44, %c0_45] : memref<256x144xbf16, #tpu.memory_space<vmem>>, vector<256x144xbf16>
    %c0_46 = arith.constant 0 : index
    %c0_47 = arith.constant 0 : index
    %42 = vector.load %arg2[%c0_46, %c0_47] : memref<144x16xbf16, #tpu.memory_space<vmem>>, vector<144x16xbf16>
    %cst_48 = arith.constant dense<0.000000e+00> : vector<256x16xf32>
    %43 = tpu.matmul %41, %42, %cst_48 {dimension_numbers = #tpu.dot_dimension_numbers<[1], [0], [0], [1], [0, 0, 1, 1], [], []>} : vector<256x144xbf16>, vector<144x16xbf16>, vector<256x16xf32> -> vector<256x16xf32>
    %cst_49 = arith.constant dense<0.000000e+00> : vector<16xf32>
    %44 = vector.multi_reduction <add>, %43, %cst_49 [0] : vector<256x16xf32> to vector<16xf32>
    %45 = vector.shape_cast %44 : vector<16xf32> to vector<1x16xf32>
    %c0_50 = arith.constant 0 : index
    %c0_51 = arith.constant 0 : index
    %c0_52 = arith.constant 0 : index
    %46 = vector.load %arg4[%c0_50, %c0_51, %c0_52] : memref<1x1x16xf32, #tpu.memory_space<vmem>>, vector<1x1x16xf32>
    %47 = vector.shape_cast %46 : vector<1x1x16xf32> to vector<1x16xf32>
    %48 = vector.shape_cast %45 : vector<1x16xf32> to vector<1x1x16xf32>
    tpu.vector_store %arg4[%c0_50, %c0_51, %c0_52], %48 {strides = array<i32>} : memref<1x1x16xf32, #tpu.memory_space<vmem>>, vector<1x1x16xf32>,
    %49 = arith.mulf %43, %43 : vector<256x16xf32>
    %cst_53 = arith.constant dense<0.000000e+00> : vector<16xf32>
    %50 = vector.multi_reduction <add>, %49, %cst_53 [0] : vector<256x16xf32> to vector<16xf32>
    %51 = vector.shape_cast %50 : vector<16xf32> to vector<1x16xf32>
    %c0_54 = arith.constant 0 : index
    %c0_55 = arith.constant 0 : index
    %c0_56 = arith.constant 0 : index
    %52 = vector.load %arg5[%c0_54, %c0_55, %c0_56] : memref<1x1x16xf32, #tpu.memory_space<vmem>>, vector<1x1x16xf32>
    %53 = vector.shape_cast %52 : vector<1x1x16xf32> to vector<1x16xf32>
    %54 = vector.shape_cast %51 : vector<1x16xf32> to vector<1x1x16xf32>
    tpu.vector_store %arg5[%c0_54, %c0_55, %c0_56], %54 {strides = array<i32>} : memref<1x1x16xf32, #tpu.memory_space<vmem>>, vector<1x1x16xf32>,
    %55 = vector.shape_cast %43 : vector<256x16xf32> to vector<16x16x16xf32>
    %56 = arith.truncf %55 : vector<16x16x16xf32> to vector<16x16x16xbf16>
    %c0_57 = arith.constant 0 : index
    %c0_58 = arith.constant 0 : index
    %c0_59 = arith.constant 0 : index
    %c0_60 = arith.constant 0 : index
    %57 = vector.load %arg3[%c0_57, %c0_58, %c0_59, %c0_60] : memref<1x16x16x16xbf16, #tpu.memory_space<vmem>>, vector<1x16x16x16xbf16>
    %58 = vector.shape_cast %57 : vector<1x16x16x16xbf16> to vector<16x16x16xbf16>
    %59 = vector.shape_cast %56 : vector<16x16x16xbf16> to vector<1x16x16x16xbf16>
    tpu.vector_store %arg3[%c0_57, %c0_58, %c0_59, %c0_60], %59 {strides = array<i32>} : memref<1x16x16x16xbf16, #tpu.memory_space<vmem>>, vector<1x16x16x16xbf16>,
    return
  }
  func.func @transform_0(%arg0: i32) -> (i32, i32, i32, i32) {
    %c0_i32 = arith.constant 0 : i32
    %c0_i32_0 = arith.constant 0 : i32
    %c0_i32_1 = arith.constant 0 : i32
    %c0_i32_2 = arith.constant 0 : i32
    return %arg0, %c0_i32, %c0_i32_0, %c0_i32_1 : i32, i32, i32, i32
  }
  func.func @transform_1(%arg0: i32) -> (i32, i32) {
    %c0_i32 = arith.constant 0 : i32
    %c0_i32_0 = arith.constant 0 : i32
    %c0_i32_1 = arith.constant 0 : i32
    return %c0_i32, %c0_i32_0 : i32, i32
  }
  func.func @transform_2(%arg0: i32) -> (i32, i32, i32, i32) {
    %c0_i32 = arith.constant 0 : i32
    %c0_i32_0 = arith.constant 0 : i32
    %c0_i32_1 = arith.constant 0 : i32
    %c0_i32_2 = arith.constant 0 : i32
    return %arg0, %c0_i32, %c0_i32_0, %c0_i32_1 : i32, i32, i32, i32
  }
  func.func @transform_3(%arg0: i32) -> (i32, i32, i32) {
    %c0_i32 = arith.constant 0 : i32
    %c0_i32_0 = arith.constant 0 : i32
    %c0_i32_1 = arith.constant 0 : i32
    return %arg0, %c0_i32, %c0_i32_0 : i32, i32, i32
  }
  func.func @transform_4(%arg0: i32) -> (i32, i32, i32) {
    %c0_i32 = arith.constant 0 : i32
    %c0_i32_0 = arith.constant 0 : i32
    %c0_i32_1 = arith.constant 0 : i32
    return %arg0, %c0_i32, %c0_i32_0 : i32, i32, i32
  }
}

module attributes {stable_mosaic.version = 11 : i64} {
  func.func @_bn_add_relu_kernel(%arg0: i32, %arg1: memref<1x16x16x16xbf16, #tpu.memory_space<vmem>>, %arg2: memref<2x16xf32, #tpu.memory_space<vmem>>, %arg3: memref<1x16x16x16xf32, #tpu.memory_space<vmem>>, %arg4: memref<1x16x16x16xf32, #tpu.memory_space<vmem>>) attributes {dimension_semantics = [#tpu.dimension_semantics<parallel>], iteration_bounds = array<i64: 2>, scalar_prefetch = 0 : i64, scratch_operands = 0 : i64, tpu.core_type = #tpu.core_type<tc>, window_params = [{transform_indices = @transform_0, window_bounds = array<i64: 1, 16, 16, 16>}, {pipeline_mode = #tpu.pipeline_mode<synchronous>, transform_indices = @transform_1, window_bounds = array<i64: 2, 16>}, {transform_indices = @transform_2, window_bounds = array<i64: 1, 16, 16, 16>}, {transform_indices = @transform_3, window_bounds = array<i64: 1, 16, 16, 16>}]} {
    %c0 = arith.constant 0 : index
    %c0_0 = arith.constant 0 : index
    %c0_1 = arith.constant 0 : index
    %c0_2 = arith.constant 0 : index
    %0 = vector.load %arg1[%c0, %c0_0, %c0_1, %c0_2] : memref<1x16x16x16xbf16, #tpu.memory_space<vmem>>, vector<1x16x16x16xbf16>
    %1 = vector.shape_cast %0 : vector<1x16x16x16xbf16> to vector<16x16x16xbf16>
    %2 = arith.extf %1 : vector<16x16x16xbf16> to vector<16x16x16xf32>
    %c0_3 = arith.constant 0 : index
    %c0_4 = arith.constant 0 : index
    %3 = vector.load %arg2[%c0_3, %c0_4] : memref<2x16xf32, #tpu.memory_space<vmem>>, vector<1x16xf32>
    %4 = vector.shape_cast %3 : vector<1x16xf32> to vector<1x1x16xf32>
    %5 = vector.broadcast %4 : vector<1x1x16xf32> to vector<16x16x16xf32>
    %6 = arith.mulf %2, %5 : vector<16x16x16xf32>
    %c1 = arith.constant 1 : index
    %c0_5 = arith.constant 0 : index
    %7 = vector.load %arg2[%c1, %c0_5] : memref<2x16xf32, #tpu.memory_space<vmem>>, vector<1x16xf32>
    %8 = vector.shape_cast %7 : vector<1x16xf32> to vector<1x1x16xf32>
    %9 = vector.broadcast %8 : vector<1x1x16xf32> to vector<16x16x16xf32>
    %10 = arith.addf %6, %9 : vector<16x16x16xf32>
    %c0_6 = arith.constant 0 : index
    %c0_7 = arith.constant 0 : index
    %c0_8 = arith.constant 0 : index
    %c0_9 = arith.constant 0 : index
    %11 = vector.load %arg3[%c0_6, %c0_7, %c0_8, %c0_9] : memref<1x16x16x16xf32, #tpu.memory_space<vmem>>, vector<1x16x16x16xf32>
    %12 = vector.shape_cast %11 : vector<1x16x16x16xf32> to vector<16x16x16xf32>
    %13 = arith.addf %10, %12 : vector<16x16x16xf32>
    %cst = arith.constant 0.000000e+00 : f32
    %14 = vector.broadcast %cst : f32 to vector<16x16x16xf32>
    %15 = arith.maximumf %13, %14 : vector<16x16x16xf32>
    %c0_10 = arith.constant 0 : index
    %c0_11 = arith.constant 0 : index
    %c0_12 = arith.constant 0 : index
    %c0_13 = arith.constant 0 : index
    %16 = vector.load %arg4[%c0_10, %c0_11, %c0_12, %c0_13] : memref<1x16x16x16xf32, #tpu.memory_space<vmem>>, vector<1x16x16x16xf32>
    %17 = vector.shape_cast %16 : vector<1x16x16x16xf32> to vector<16x16x16xf32>
    %18 = vector.shape_cast %15 : vector<16x16x16xf32> to vector<1x16x16x16xf32>
    tpu.vector_store %arg4[%c0_10, %c0_11, %c0_12, %c0_13], %18 {strides = array<i32>} : memref<1x16x16x16xf32, #tpu.memory_space<vmem>>, vector<1x16x16x16xf32>,
    return
  }
  func.func @transform_0(%arg0: i32) -> (i32, i32, i32, i32) {
    %c0_i32 = arith.constant 0 : i32
    %c0_i32_0 = arith.constant 0 : i32
    %c0_i32_1 = arith.constant 0 : i32
    %c0_i32_2 = arith.constant 0 : i32
    return %arg0, %c0_i32, %c0_i32_0, %c0_i32_1 : i32, i32, i32, i32
  }
  func.func @transform_1(%arg0: i32) -> (i32, i32) {
    %c0_i32 = arith.constant 0 : i32
    %c0_i32_0 = arith.constant 0 : i32
    %c0_i32_1 = arith.constant 0 : i32
    return %c0_i32, %c0_i32_0 : i32, i32
  }
  func.func @transform_2(%arg0: i32) -> (i32, i32, i32, i32) {
    %c0_i32 = arith.constant 0 : i32
    %c0_i32_0 = arith.constant 0 : i32
    %c0_i32_1 = arith.constant 0 : i32
    %c0_i32_2 = arith.constant 0 : i32
    return %arg0, %c0_i32, %c0_i32_0, %c0_i32_1 : i32, i32, i32, i32
  }
  func.func @transform_3(%arg0: i32) -> (i32, i32, i32, i32) {
    %c0_i32 = arith.constant 0 : i32
    %c0_i32_0 = arith.constant 0 : i32
    %c0_i32_1 = arith.constant 0 : i32
    %c0_i32_2 = arith.constant 0 : i32
    return %arg0, %c0_i32, %c0_i32_0, %c0_i32_1 : i32, i32, i32, i32
  }
}

module attributes {stable_mosaic.version = 11 : i64} {
  func.func @_bn_relu_conv2_stats_kernel(%arg0: i32, %arg1: memref<1x16x16x16xbf16, #tpu.memory_space<vmem>>, %arg2: memref<2x16xf32, #tpu.memory_space<vmem>>, %arg3: memref<144x16xbf16, #tpu.memory_space<vmem>>, %arg4: memref<1x16x16x16xbf16, #tpu.memory_space<vmem>>, %arg5: memref<1x1x16xf32, #tpu.memory_space<vmem>>, %arg6: memref<1x1x16xf32, #tpu.memory_space<vmem>>, %arg7: memref<18x18x16xf32, #tpu.memory_space<vmem>>, %arg8: memref<256x144xbf16, #tpu.memory_space<vmem>>) attributes {dimension_semantics = [#tpu.dimension_semantics<parallel>], iteration_bounds = array<i64: 2>, scalar_prefetch = 0 : i64, scratch_operands = 2 : i64, tpu.core_type = #tpu.core_type<tc>, window_params = [{transform_indices = @transform_0, window_bounds = array<i64: 1, 16, 16, 16>}, {pipeline_mode = #tpu.pipeline_mode<synchronous>, transform_indices = @transform_1, window_bounds = array<i64: 2, 16>}, {pipeline_mode = #tpu.pipeline_mode<synchronous>, transform_indices = @transform_2, window_bounds = array<i64: 144, 16>}, {transform_indices = @transform_3, window_bounds = array<i64: 1, 16, 16, 16>}, {transform_indices = @transform_4, window_bounds = array<i64: 1, 1, 16>}, {transform_indices = @transform_5, window_bounds = array<i64: 1, 1, 16>}]} {
    %c0 = arith.constant 0 : index
    %c0_0 = arith.constant 0 : index
    %c0_1 = arith.constant 0 : index
    %c0_2 = arith.constant 0 : index
    %0 = vector.load %arg1[%c0, %c0_0, %c0_1, %c0_2] : memref<1x16x16x16xbf16, #tpu.memory_space<vmem>>, vector<1x16x16x16xbf16>
    %1 = vector.shape_cast %0 : vector<1x16x16x16xbf16> to vector<16x16x16xbf16>
    %2 = arith.extf %1 : vector<16x16x16xbf16> to vector<16x16x16xf32>
    %c0_3 = arith.constant 0 : index
    %c0_4 = arith.constant 0 : index
    %3 = vector.load %arg2[%c0_3, %c0_4] : memref<2x16xf32, #tpu.memory_space<vmem>>, vector<1x16xf32>
    %4 = vector.shape_cast %3 : vector<1x16xf32> to vector<1x1x16xf32>
    %5 = vector.broadcast %4 : vector<1x1x16xf32> to vector<16x16x16xf32>
    %6 = arith.mulf %2, %5 : vector<16x16x16xf32>
    %c1 = arith.constant 1 : index
    %c0_5 = arith.constant 0 : index
    %7 = vector.load %arg2[%c1, %c0_5] : memref<2x16xf32, #tpu.memory_space<vmem>>, vector<1x16xf32>
    %8 = vector.shape_cast %7 : vector<1x16xf32> to vector<1x1x16xf32>
    %9 = vector.broadcast %8 : vector<1x1x16xf32> to vector<16x16x16xf32>
    %10 = arith.addf %6, %9 : vector<16x16x16xf32>
    %cst = arith.constant 0.000000e+00 : f32
    %11 = vector.broadcast %cst : f32 to vector<16x16x16xf32>
    %12 = arith.maximumf %10, %11 : vector<16x16x16xf32>
    %cst_6 = arith.constant 0.000000e+00 : f32
    %13 = vector.broadcast %cst_6 : f32 to vector<18x18x16xf32>
    %c0_7 = arith.constant 0 : index
    %c0_8 = arith.constant 0 : index
    %c0_9 = arith.constant 0 : index
    %14 = vector.load %arg7[%c0_7, %c0_8, %c0_9] : memref<18x18x16xf32, #tpu.memory_space<vmem>>, vector<18x18x16xf32>
    tpu.vector_store %arg7[%c0_7, %c0_8, %c0_9], %13 {strides = array<i32>} : memref<18x18x16xf32, #tpu.memory_space<vmem>>, vector<18x18x16xf32>,
    %c1_10 = arith.constant 1 : index
    %c1_11 = arith.constant 1 : index
    %c0_12 = arith.constant 0 : index
    %15 = vector.load %arg7[%c1_10, %c1_11, %c0_12] : memref<18x18x16xf32, #tpu.memory_space<vmem>>, vector<16x16x16xf32>
    tpu.vector_store %arg7[%c1_10, %c1_11, %c0_12], %12 {strides = array<i32>} : memref<18x18x16xf32, #tpu.memory_space<vmem>>, vector<16x16x16xf32>,
    %c0_13 = arith.constant 0 : index
    %c0_14 = arith.constant 0 : index
    %c0_15 = arith.constant 0 : index
    %16 = vector.load %arg7[%c0_13, %c0_14, %c0_15] : memref<18x18x16xf32, #tpu.memory_space<vmem>>, vector<16x16x16xf32>
    %17 = vector.shape_cast %16 : vector<16x16x16xf32> to vector<256x16xf32>
    %18 = arith.truncf %17 : vector<256x16xf32> to vector<256x16xbf16>
    %c0_16 = arith.constant 0 : index
    %c0_17 = arith.constant 0 : index
    %19 = vector.load %arg8[%c0_16, %c0_17] : memref<256x144xbf16, #tpu.memory_space<vmem>>, vector<256x16xbf16>
    tpu.vector_store %arg8[%c0_16, %c0_17], %18 {strides = array<i32>} : memref<256x144xbf16, #tpu.memory_space<vmem>>, vector<256x16xbf16>,
    %c0_18 = arith.constant 0 : index
    %c1_19 = arith.constant 1 : index
    %c0_20 = arith.constant 0 : index
    %20 = vector.load %arg7[%c0_18, %c1_19, %c0_20] : memref<18x18x16xf32, #tpu.memory_space<vmem>>, vector<16x16x16xf32>
    %21 = vector.shape_cast %20 : vector<16x16x16xf32> to vector<256x16xf32>
    %22 = arith.truncf %21 : vector<256x16xf32> to vector<256x16xbf16>
    %c0_21 = arith.constant 0 : index
    %c16 = arith.constant 16 : index
    %23 = vector.load %arg8[%c0_21, %c16] : memref<256x144xbf16, #tpu.memory_space<vmem>>, vector<256x16xbf16>
    tpu.vector_store %arg8[%c0_21, %c16], %22 {strides = array<i32>} : memref<256x144xbf16, #tpu.memory_space<vmem>>, vector<256x16xbf16>,
    %c0_22 = arith.constant 0 : index
    %c2 = arith.constant 2 : index
    %c0_23 = arith.constant 0 : index
    %24 = vector.load %arg7[%c0_22, %c2, %c0_23] : memref<18x18x16xf32, #tpu.memory_space<vmem>>, vector<16x16x16xf32>
    %25 = vector.shape_cast %24 : vector<16x16x16xf32> to vector<256x16xf32>
    %26 = arith.truncf %25 : vector<256x16xf32> to vector<256x16xbf16>
    %c0_24 = arith.constant 0 : index
    %c32 = arith.constant 32 : index
    %27 = vector.load %arg8[%c0_24, %c32] : memref<256x144xbf16, #tpu.memory_space<vmem>>, vector<256x16xbf16>
    tpu.vector_store %arg8[%c0_24, %c32], %26 {strides = array<i32>} : memref<256x144xbf16, #tpu.memory_space<vmem>>, vector<256x16xbf16>,
    %c1_25 = arith.constant 1 : index
    %c0_26 = arith.constant 0 : index
    %c0_27 = arith.constant 0 : index
    %28 = vector.load %arg7[%c1_25, %c0_26, %c0_27] : memref<18x18x16xf32, #tpu.memory_space<vmem>>, vector<16x16x16xf32>
    %29 = vector.shape_cast %28 : vector<16x16x16xf32> to vector<256x16xf32>
    %30 = arith.truncf %29 : vector<256x16xf32> to vector<256x16xbf16>
    %c0_28 = arith.constant 0 : index
    %c48 = arith.constant 48 : index
    %31 = vector.load %arg8[%c0_28, %c48] : memref<256x144xbf16, #tpu.memory_space<vmem>>, vector<256x16xbf16>
    tpu.vector_store %arg8[%c0_28, %c48], %30 {strides = array<i32>} : memref<256x144xbf16, #tpu.memory_space<vmem>>, vector<256x16xbf16>,
    %c1_29 = arith.constant 1 : index
    %c1_30 = arith.constant 1 : index
    %c0_31 = arith.constant 0 : index
    %32 = vector.load %arg7[%c1_29, %c1_30, %c0_31] : memref<18x18x16xf32, #tpu.memory_space<vmem>>, vector<16x16x16xf32>
    %33 = vector.shape_cast %32 : vector<16x16x16xf32> to vector<256x16xf32>
    %34 = arith.truncf %33 : vector<256x16xf32> to vector<256x16xbf16>
    %c0_32 = arith.constant 0 : index
    %c64 = arith.constant 64 : index
    %35 = vector.load %arg8[%c0_32, %c64] : memref<256x144xbf16, #tpu.memory_space<vmem>>, vector<256x16xbf16>
    tpu.vector_store %arg8[%c0_32, %c64], %34 {strides = array<i32>} : memref<256x144xbf16, #tpu.memory_space<vmem>>, vector<256x16xbf16>,
    %c1_33 = arith.constant 1 : index
    %c2_34 = arith.constant 2 : index
    %c0_35 = arith.constant 0 : index
    %36 = vector.load %arg7[%c1_33, %c2_34, %c0_35] : memref<18x18x16xf32, #tpu.memory_space<vmem>>, vector<16x16x16xf32>
    %37 = vector.shape_cast %36 : vector<16x16x16xf32> to vector<256x16xf32>
    %38 = arith.truncf %37 : vector<256x16xf32> to vector<256x16xbf16>
    %c0_36 = arith.constant 0 : index
    %c80 = arith.constant 80 : index
    %39 = vector.load %arg8[%c0_36, %c80] : memref<256x144xbf16, #tpu.memory_space<vmem>>, vector<256x16xbf16>
    tpu.vector_store %arg8[%c0_36, %c80], %38 {strides = array<i32>} : memref<256x144xbf16, #tpu.memory_space<vmem>>, vector<256x16xbf16>,
    %c2_37 = arith.constant 2 : index
    %c0_38 = arith.constant 0 : index
    %c0_39 = arith.constant 0 : index
    %40 = vector.load %arg7[%c2_37, %c0_38, %c0_39] : memref<18x18x16xf32, #tpu.memory_space<vmem>>, vector<16x16x16xf32>
    %41 = vector.shape_cast %40 : vector<16x16x16xf32> to vector<256x16xf32>
    %42 = arith.truncf %41 : vector<256x16xf32> to vector<256x16xbf16>
    %c0_40 = arith.constant 0 : index
    %c96 = arith.constant 96 : index
    %43 = vector.load %arg8[%c0_40, %c96] : memref<256x144xbf16, #tpu.memory_space<vmem>>, vector<256x16xbf16>
    tpu.vector_store %arg8[%c0_40, %c96], %42 {strides = array<i32>} : memref<256x144xbf16, #tpu.memory_space<vmem>>, vector<256x16xbf16>,
    %c2_41 = arith.constant 2 : index
    %c1_42 = arith.constant 1 : index
    %c0_43 = arith.constant 0 : index
    %44 = vector.load %arg7[%c2_41, %c1_42, %c0_43] : memref<18x18x16xf32, #tpu.memory_space<vmem>>, vector<16x16x16xf32>
    %45 = vector.shape_cast %44 : vector<16x16x16xf32> to vector<256x16xf32>
    %46 = arith.truncf %45 : vector<256x16xf32> to vector<256x16xbf16>
    %c0_44 = arith.constant 0 : index
    %c112 = arith.constant 112 : index
    %47 = vector.load %arg8[%c0_44, %c112] : memref<256x144xbf16, #tpu.memory_space<vmem>>, vector<256x16xbf16>
    tpu.vector_store %arg8[%c0_44, %c112], %46 {strides = array<i32>} : memref<256x144xbf16, #tpu.memory_space<vmem>>, vector<256x16xbf16>,
    %c2_45 = arith.constant 2 : index
    %c2_46 = arith.constant 2 : index
    %c0_47 = arith.constant 0 : index
    %48 = vector.load %arg7[%c2_45, %c2_46, %c0_47] : memref<18x18x16xf32, #tpu.memory_space<vmem>>, vector<16x16x16xf32>
    %49 = vector.shape_cast %48 : vector<16x16x16xf32> to vector<256x16xf32>
    %50 = arith.truncf %49 : vector<256x16xf32> to vector<256x16xbf16>
    %c0_48 = arith.constant 0 : index
    %c128 = arith.constant 128 : index
    %51 = vector.load %arg8[%c0_48, %c128] : memref<256x144xbf16, #tpu.memory_space<vmem>>, vector<256x16xbf16>
    tpu.vector_store %arg8[%c0_48, %c128], %50 {strides = array<i32>} : memref<256x144xbf16, #tpu.memory_space<vmem>>, vector<256x16xbf16>,
    %c0_49 = arith.constant 0 : index
    %c0_50 = arith.constant 0 : index
    %52 = vector.load %arg8[%c0_49, %c0_50] : memref<256x144xbf16, #tpu.memory_space<vmem>>, vector<256x144xbf16>
    %c0_51 = arith.constant 0 : index
    %c0_52 = arith.constant 0 : index
    %53 = vector.load %arg3[%c0_51, %c0_52] : memref<144x16xbf16, #tpu.memory_space<vmem>>, vector<144x16xbf16>
    %cst_53 = arith.constant dense<0.000000e+00> : vector<256x16xf32>
    %54 = tpu.matmul %52, %53, %cst_53 {dimension_numbers = #tpu.dot_dimension_numbers<[1], [0], [0], [1], [0, 0, 1, 1], [], []>} : vector<256x144xbf16>, vector<144x16xbf16>, vector<256x16xf32> -> vector<256x16xf32>
    %cst_54 = arith.constant dense<0.000000e+00> : vector<16xf32>
    %55 = vector.multi_reduction <add>, %54, %cst_54 [0] : vector<256x16xf32> to vector<16xf32>
    %56 = vector.shape_cast %55 : vector<16xf32> to vector<1x16xf32>
    %c0_55 = arith.constant 0 : index
    %c0_56 = arith.constant 0 : index
    %c0_57 = arith.constant 0 : index
    %57 = vector.load %arg5[%c0_55, %c0_56, %c0_57] : memref<1x1x16xf32, #tpu.memory_space<vmem>>, vector<1x1x16xf32>
    %58 = vector.shape_cast %57 : vector<1x1x16xf32> to vector<1x16xf32>
    %59 = vector.shape_cast %56 : vector<1x16xf32> to vector<1x1x16xf32>
    tpu.vector_store %arg5[%c0_55, %c0_56, %c0_57], %59 {strides = array<i32>} : memref<1x1x16xf32, #tpu.memory_space<vmem>>, vector<1x1x16xf32>,
    %60 = arith.mulf %54, %54 : vector<256x16xf32>
    %cst_58 = arith.constant dense<0.000000e+00> : vector<16xf32>
    %61 = vector.multi_reduction <add>, %60, %cst_58 [0] : vector<256x16xf32> to vector<16xf32>
    %62 = vector.shape_cast %61 : vector<16xf32> to vector<1x16xf32>
    %c0_59 = arith.constant 0 : index
    %c0_60 = arith.constant 0 : index
    %c0_61 = arith.constant 0 : index
    %63 = vector.load %arg6[%c0_59, %c0_60, %c0_61] : memref<1x1x16xf32, #tpu.memory_space<vmem>>, vector<1x1x16xf32>
    %64 = vector.shape_cast %63 : vector<1x1x16xf32> to vector<1x16xf32>
    %65 = vector.shape_cast %62 : vector<1x16xf32> to vector<1x1x16xf32>
    tpu.vector_store %arg6[%c0_59, %c0_60, %c0_61], %65 {strides = array<i32>} : memref<1x1x16xf32, #tpu.memory_space<vmem>>, vector<1x1x16xf32>,
    %66 = vector.shape_cast %54 : vector<256x16xf32> to vector<16x16x16xf32>
    %67 = arith.truncf %66 : vector<16x16x16xf32> to vector<16x16x16xbf16>
    %c0_62 = arith.constant 0 : index
    %c0_63 = arith.constant 0 : index
    %c0_64 = arith.constant 0 : index
    %c0_65 = arith.constant 0 : index
    %68 = vector.load %arg4[%c0_62, %c0_63, %c0_64, %c0_65] : memref<1x16x16x16xbf16, #tpu.memory_space<vmem>>, vector<1x16x16x16xbf16>
    %69 = vector.shape_cast %68 : vector<1x16x16x16xbf16> to vector<16x16x16xbf16>
    %70 = vector.shape_cast %67 : vector<16x16x16xbf16> to vector<1x16x16x16xbf16>
    tpu.vector_store %arg4[%c0_62, %c0_63, %c0_64, %c0_65], %70 {strides = array<i32>} : memref<1x16x16x16xbf16, #tpu.memory_space<vmem>>, vector<1x16x16x16xbf16>,
    return
  }
  func.func @transform_0(%arg0: i32) -> (i32, i32, i32, i32) {
    %c0_i32 = arith.constant 0 : i32
    %c0_i32_0 = arith.constant 0 : i32
    %c0_i32_1 = arith.constant 0 : i32
    %c0_i32_2 = arith.constant 0 : i32
    return %arg0, %c0_i32, %c0_i32_0, %c0_i32_1 : i32, i32, i32, i32
  }
  func.func @transform_1(%arg0: i32) -> (i32, i32) {
    %c0_i32 = arith.constant 0 : i32
    %c0_i32_0 = arith.constant 0 : i32
    %c0_i32_1 = arith.constant 0 : i32
    return %c0_i32, %c0_i32_0 : i32, i32
  }
  func.func @transform_2(%arg0: i32) -> (i32, i32) {
    %c0_i32 = arith.constant 0 : i32
    %c0_i32_0 = arith.constant 0 : i32
    %c0_i32_1 = arith.constant 0 : i32
    return %c0_i32, %c0_i32_0 : i32, i32
  }
  func.func @transform_3(%arg0: i32) -> (i32, i32, i32, i32) {
    %c0_i32 = arith.constant 0 : i32
    %c0_i32_0 = arith.constant 0 : i32
    %c0_i32_1 = arith.constant 0 : i32
    %c0_i32_2 = arith.constant 0 : i32
    return %arg0, %c0_i32, %c0_i32_0, %c0_i32_1 : i32, i32, i32, i32
  }
  func.func @transform_4(%arg0: i32) -> (i32, i32, i32) {
    %c0_i32 = arith.constant 0 : i32
    %c0_i32_0 = arith.constant 0 : i32
    %c0_i32_1 = arith.constant 0 : i32
    return %arg0, %c0_i32, %c0_i32_0 : i32, i32, i32
  }
  func.func @transform_5(%arg0: i32) -> (i32, i32, i32) {
    %c0_i32 = arith.constant 0 : i32
    %c0_i32_0 = arith.constant 0 : i32
    %c0_i32_1 = arith.constant 0 : i32
    return %arg0, %c0_i32, %c0_i32_0 : i32, i32, i32
  }
}

</mosaic_0001>

<bundles_post_ra>
// kernel: basic_block_group_forward.5
= control target key start
LH: loop header
LB: loop body
LE: loop exit
PB: predicated region body
PF: predicated region fallthrough
CT: control target
= control target key end

     0   :  { %s658_s12 = smov 0   ;;  %s878_s0 = inlined_call_operand.vmem [shape: bf16[2,16,16,16], index: 0, kind: input, shape index: {}]   ;;  %s879_s1 = inlined_call_operand.vmem [shape: f32[2,16], index: 1, kind: input, shape index: {}]   ;;  %s880_s2 = inlined_call_operand.vmem [shape: f32[2,16,16,16], index: 2, kind: input, shape index: {}]   ;;  %s881_s3 = inlined_call_operand.vmem [shape: f32[2,16,16,16], index: 3, kind: output, shape index: {}]  }
   0x1 LB: > { %s525_s13 = sadd.s32 4294967295, %s636_s12   ;;  %p529_p0 = scmp.ge.s32.totalorder %s636_s12, 1  ;;  %s636_s12 = sphi %s658_s12, %s13_s12  }
   0x2   : > { %p147_p1 = scmp.lt.s32.totalorder %s636_s12, 3 }
   0x4   : > { %p148_p2 = pnand %p529_p0, %p147_p1 }
   0x5   : > { %p176_p3 = scmp.lt.s32.totalorder (!%p148_p2), %s525_s13, 1  ;;  %v679_v1 = vld [vmem:[%s879_s1] ss:$0 sm:$0xff] (!%p148_p2)  ;;  %v692_v5 = vld [vmem:[%s879_s1 + $0x1] ss:$0 sm:$0xff] (!%p148_p2)  ;;  %vm425_vm0 = vcmask (!%p148_p2), 130048  }
   0x6   : > { %151 = sbr.rel (%p148_p2) target bundleno = 60 (0x3c), region = 32 }
   0xd   : > { %s883_s13 = smov (!%p176_p3, %s525_s13), 1 }
   0xe   : > { %s540_s14 = sshll.u32 %s883_s13, 7  ;;  %s541_s15 = sshll.u32 %s883_s13, 8 }
   0xf   : > { %s673_s18 = scalar_lea.vmem %s878_s0, %s540_s14  ;;  %s686_s23 = scalar_lea.vmem %s880_s2, %s541_s15 }
  0x10   : > { %v544_v0 = vld [vmem:[%s673_s18] sm:$0xff]   ;;  %v607_v4 = vld [vmem:[%s673_s18 + $0x8] sm:$0xff]   ;;  %v608_v8 = vld [vmem:[%s673_s18 + $0x10] sm:$0xff]   ;;  %s723_s28 = scalar_lea.vmem %s881_s3, %s541_s15 }
  0x11   : > { %v545_v2 = vunpack.c.l.bf16 %v544_v0  ;;  %v546_v3 = vunpack.c.h.bf16 %v544_v0  ;;  %v549_v6 = vunpack.c.l.bf16 %v607_v4  ;;  %v550_v7 = vunpack.c.h.bf16 %v607_v4  ;;  %v609_v13 = vld [vmem:[%s673_s18 + $0x18] sm:$0xff]   ;;  %v329_v14 = vld [vmem:[%s686_s23] sm:$0xff]  ;;  %v330_v15 = vld [vmem:[%s686_s23 + $0x8] sm:$0xff] }
  0x12   : > { %v553_v11 = vunpack.c.l.bf16 %v608_v8  ;;  %v554_v12 = vunpack.c.h.bf16 %v608_v8  ;;  %v557_v18 = vunpack.c.l.bf16 %v609_v13  ;;  %v558_v19 = vunpack.c.h.bf16 %v609_v13  ;;  %v331_v22 = vld [vmem:[%s686_s23 + $0x10] sm:$0xff]  ;;  %v332_v23 = vld [vmem:[%s686_s23 + $0x18] sm:$0xff]  ;;  %v333_v28 = vld [vmem:[%s686_s23 + $0x20] sm:$0xff] }
  0x13   : > { %v260_v9 = vmul.f32 %v545_v2, %v679_v1  ;;  %v261_v10 = vmul.f32 %v546_v3, %v679_v1  ;;  %v262_v16 = vmul.f32 %v549_v6, %v679_v1  ;;  %v263_v17 = vmul.f32 %v550_v7, %v679_v1  ;;  %v334_v29 = vld [vmem:[%s686_s23 + $0x28] sm:$0xff]  ;;  %v335_v36 = vld [vmem:[%s686_s23 + $0x30] sm:$0xff]  ;;  %v336_v37 = vld [vmem:[%s686_s23 + $0x38] sm:$0xff] }
  0x14   : > { %v264_v24 = vmul.f32 %v553_v11, %v679_v1  ;;  %v265_v25 = vmul.f32 %v554_v12, %v679_v1  ;;  %v266_v30 = vmul.f32 %v557_v18, %v679_v1  ;;  %v267_v31 = vmul.f32 %v558_v19, %v679_v1  ;;  %v610_v42 = vld [vmem:[%s673_s18 + $0x20] sm:$0xff]   ;;  %v611_v47 = vld [vmem:[%s673_s18 + $0x28] sm:$0xff]   ;;  %v612_v52 = vld [vmem:[%s673_s18 + $0x30] sm:$0xff]  }
  0x15   : > { %v297_v20 = vadd.f32 %v692_v5, %v260_v9  ;;  %v298_v21 = vadd.f32 %v692_v5, %v261_v10  ;;  %v299_v26 = vadd.f32 %v692_v5, %v262_v16  ;;  %v300_v27 = vadd.f32 %v692_v5, %v263_v17  ;;  %v613_v57 = vld [vmem:[%s673_s18 + $0x38] sm:$0xff]   ;;  %v337_v3 = vld [vmem:[%s686_s23 + $0x40] sm:$0xff]  ;;  %v338_v4 = vld [vmem:[%s686_s23 + $0x48] sm:$0xff] }
  0x16   : > { %v301_v34 = vadd.f32 %v692_v5, %v264_v24  ;;  %v302_v35 = vadd.f32 %v692_v5, %v265_v25  ;;  %v303_v40 = vadd.f32 %v692_v5, %v266_v30  ;;  %v304_v41 = vadd.f32 %v692_v5, %v267_v31  ;;  %v339_v12 = vld [vmem:[%s686_s23 + $0x50] sm:$0xff]  ;;  %v340_v13 = vld [vmem:[%s686_s23 + $0x58] sm:$0xff]  ;;  %v341_v18 = vld [vmem:[%s686_s23 + $0x60] sm:$0xff] }
  0x17   : > { %v361_v32 = vadd.f32 %v329_v14, %v297_v20  ;;  %v362_v33 = vadd.f32 %v330_v15, %v298_v21  ;;  %v363_v38 = vadd.f32 %v331_v22, %v299_v26  ;;  %v364_v39 = vadd.f32 %v332_v23, %v300_v27  ;;  %v342_v19 = vld [vmem:[%s686_s23 + $0x68] sm:$0xff]  ;;  %v343_v26 = vld [vmem:[%s686_s23 + $0x70] sm:$0xff]  ;;  %v344_v27 = vld [vmem:[%s686_s23 + $0x78] sm:$0xff] }
  0x18   : > { %v365_v45 = vadd.f32 %v333_v28, %v301_v34  ;;  %v366_v46 = vadd.f32 %v334_v29, %v302_v35  ;;  %v367_v50 = vadd.f32 %v335_v36, %v303_v40  ;;  %v368_v51 = vadd.f32 %v336_v37, %v304_v41  ;;  %v615_v37 = vld [vmem:[%s673_s18 + $0x48] sm:$0xff]  }
  0x19   : > { %v393_v43 = vmax.f32 %v361_v32, 0.0  ;;  %v394_v44 = vmax.f32 %v362_v33, 0.0  ;;  %v395_v48 = vmax.f32 %v363_v38, 0.0  ;;  %v396_v49 = vmax.f32 %v364_v39, 0.0  ;;  %v614_v32 = vld [vmem:[%s673_s18 + $0x40] sm:$0xff]  }
  0x1a   : > { %v397_v53 = vmax.f32 %v365_v45, 0.0  ;;  %v398_v54 = vmax.f32 %v366_v46, 0.0  ;;  %v561_v55 = vunpack.c.l.bf16 %v610_v42  ;;  %v562_v56 = vunpack.c.h.bf16 %v610_v42  ;;  %v616_v42 = vld [vmem:[%s673_s18 + $0x50] sm:$0xff]  }
  0x1b   : > { %426 = vst.msk [vmem:[%s723_s28] sm:$0xff] %vm425_vm0, %v393_v43  ;;  %427 = vst.msk [vmem:[%s723_s28 + $0x8] sm:$0xff] %vm425_vm0, %v394_v44  ;;  %v399_v58 = vmax.f32 %v367_v50, 0.0  ;;  %v400_v59 = vmax.f32 %v368_v51, 0.0  ;;  %v565_v60 = vunpack.c.l.bf16 %v611_v47  ;;  %v566_v61 = vunpack.c.h.bf16 %v611_v47  ;;  %v617_v47 = vld [vmem:[%s673_s18 + $0x58] sm:$0xff]  }
  0x1c   : > { %428 = vst.msk [vmem:[%s723_s28 + $0x10] sm:$0xff] %vm425_vm0, %v395_v48  ;;  %429 = vst.msk [vmem:[%s723_s28 + $0x18] sm:$0xff] %vm425_vm0, %v396_v49  ;;  %v268_v62 = vmul.f32 %v561_v55, %v679_v1  ;;  %v269_v63 = vmul.f32 %v562_v56, %v679_v1  ;;  %v569_v0 = vunpack.c.l.bf16 %v612_v52  ;;  %v570_v2 = vunpack.c.h.bf16 %v612_v52  ;;  %v345_v56 = vld [vmem:[%s686_s23 + $0x80] sm:$0xff] }
  0x1d   : > { %430 = vst.msk [vmem:[%s723_s28 + $0x20] sm:$0xff] %vm425_vm0, %v397_v53  ;;  %431 = vst.msk [vmem:[%s723_s28 + $0x28] sm:$0xff] %vm425_vm0, %v398_v54  ;;  %v270_v6 = vmul.f32 %v565_v60, %v679_v1  ;;  %v271_v7 = vmul.f32 %v566_v61, %v679_v1  ;;  %v573_v8 = vunpack.c.l.bf16 %v613_v57  ;;  %v574_v9 = vunpack.c.h.bf16 %v613_v57  ;;  %v346_v57 = vld [vmem:[%s686_s23 + $0x88] sm:$0xff] }
  0x1e   : > { %432 = vst.msk [vmem:[%s723_s28 + $0x30] sm:$0xff] %vm425_vm0, %v399_v58  ;;  %433 = vst.msk [vmem:[%s723_s28 + $0x38] sm:$0xff] %vm425_vm0, %v400_v59  ;;  %v305_v10 = vadd.f32 %v692_v5, %v268_v62  ;;  %v306_v11 = vadd.f32 %v692_v5, %v269_v63  ;;  %v272_v14 = vmul.f32 %v569_v0, %v679_v1  ;;  %v577_v45 = vunpack.c.l.bf16 %v614_v32  ;;  %v347_v0 = vld [vmem:[%s686_s23 + $0x90] sm:$0xff] }
  0x1f   : > { %v273_v15 = vmul.f32 %v570_v2, %v679_v1  ;;  %v307_v16 = vadd.f32 %v692_v5, %v270_v6  ;;  %v308_v17 = vadd.f32 %v692_v5, %v271_v7  ;;  %v274_v20 = vmul.f32 %v573_v8, %v679_v1  ;;  %v348_v2 = vld [vmem:[%s686_s23 + $0x98] sm:$0xff]  ;;  %v349_v8 = vld [vmem:[%s686_s23 + $0xa0] sm:$0xff] }
  0x20   : > { %v275_v21 = vmul.f32 %v574_v9, %v679_v1  ;;  %v369_v22 = vadd.f32 %v337_v3, %v305_v10  ;;  %v370_v23 = vadd.f32 %v338_v4, %v306_v11  ;;  %v309_v24 = vadd.f32 %v692_v5, %v272_v14  ;;  %v350_v9 = vld [vmem:[%s686_s23 + $0xa8] sm:$0xff] }
  0x21   : > { %v310_v25 = vadd.f32 %v692_v5, %v273_v15  ;;  %v371_v28 = vadd.f32 %v339_v12, %v307_v16  ;;  %v372_v29 = vadd.f32 %v340_v13, %v308_v17  ;;  %v311_v30 = vadd.f32 %v692_v5, %v274_v20  ;;  %v351_v16 = vld [vmem:[%s686_s23 + $0xb0] sm:$0xff]  ;;  %v352_v17 = vld [vmem:[%s686_s23 + $0xb8] sm:$0xff] }
  0x22   : > { %v312_v31 = vadd.f32 %v692_v5, %v275_v21  ;;  %v401_v33 = vmax.f32 %v369_v22, 0.0  ;;  %v402_v34 = vmax.f32 %v370_v23, 0.0  ;;  %v373_v35 = vadd.f32 %v341_v18, %v309_v24  ;;  %v618_v22 = vld [vmem:[%s673_s18 + $0x60] sm:$0xff]  }
  0x23   : > { %v374_v36 = vadd.f32 %v342_v19, %v310_v25  ;;  %v403_v38 = vmax.f32 %v371_v28, 0.0  ;;  %v404_v39 = vmax.f32 %v372_v29, 0.0  ;;  %v375_v40 = vadd.f32 %v343_v26, %v311_v30 }
  0x24   : > { %v376_v41 = vadd.f32 %v344_v27, %v312_v31  ;;  %434 = vst.msk [vmem:[%s723_s28 + $0x40] sm:$0xff] %vm425_vm0, %v401_v33  ;;  %435 = vst.msk [vmem:[%s723_s28 + $0x48] sm:$0xff] %vm425_vm0, %v402_v34  ;;  %v405_v43 = vmax.f32 %v373_v35, 0.0  ;;  %v578_v46 = vunpack.c.h.bf16 %v614_v32  ;;  %v581_v50 = vunpack.c.l.bf16 %v615_v37  ;;  %v619_v27 = vld [vmem:[%s673_s18 + $0x68] sm:$0xff]   ;;  %v620_v32 = vld [vmem:[%s673_s18 + $0x70] sm:$0xff]  }
  0x25   : > { %v406_v44 = vmax.f32 %v374_v36, 0.0  ;;  %436 = vst.msk [vmem:[%s723_s28 + $0x50] sm:$0xff] %vm425_vm0, %v403_v38  ;;  %437 = vst.msk [vmem:[%s723_s28 + $0x58] sm:$0xff] %vm425_vm0, %v404_v39  ;;  %v407_v48 = vmax.f32 %v375_v40, 0.0  ;;  %v582_v51 = vunpack.c.h.bf16 %v615_v37  ;;  %v276_v52 = vmul.f32 %v577_v45, %v679_v1  ;;  %v621_v37 = vld [vmem:[%s673_s18 + $0x78] sm:$0xff]  }
  0x26   : > { %v408_v49 = vmax.f32 %v376_v41, 0.0  ;;  %438 = vst.msk [vmem:[%s723_s28 + $0x60] sm:$0xff] %vm425_vm0, %v405_v43  ;;  %v277_v53 = vmul.f32 %v578_v46, %v679_v1  ;;  %v585_v54 = vunpack.c.l.bf16 %v616_v42  ;;  %v586_v55 = vunpack.c.h.bf16 %v616_v42  ;;  %v353_v46 = vld [vmem:[%s686_s23 + $0xc0] sm:$0xff] }
  0x27   : > { %439 = vst.msk [vmem:[%s723_s28 + $0x68] sm:$0xff] %vm425_vm0, %v406_v44  ;;  %440 = vst.msk [vmem:[%s723_s28 + $0x70] sm:$0xff] %vm425_vm0, %v407_v48  ;;  %v278_v58 = vmul.f32 %v581_v50, %v679_v1  ;;  %v279_v59 = vmul.f32 %v582_v51, %v679_v1  ;;  %v589_v60 = vunpack.c.l.bf16 %v617_v47  ;;  %v590_v61 = vunpack.c.h.bf16 %v617_v47  ;;  %v354_v47 = vld [vmem:[%s686_s23 + $0xc8] sm:$0xff] }
  0x28   : > { %441 = vst.msk [vmem:[%s723_s28 + $0x78] sm:$0xff] %vm425_vm0, %v408_v49  ;;  %v313_v62 = vadd.f32 %v692_v5, %v276_v52  ;;  %v314_v63 = vadd.f32 %v692_v5, %v277_v53  ;;  %v280_v3 = vmul.f32 %v585_v54, %v679_v1  ;;  %v281_v4 = vmul.f32 %v586_v55, %v679_v1  ;;  %v355_v54 = vld [vmem:[%s686_s23 + $0xd0] sm:$0xff]  ;;  %v356_v55 = vld [vmem:[%s686_s23 + $0xd8] sm:$0xff] }
  0x29   : > { %v315_v6 = vadd.f32 %v692_v5, %v278_v58  ;;  %v316_v7 = vadd.f32 %v692_v5, %v279_v59  ;;  %v282_v10 = vmul.f32 %v589_v60, %v679_v1  ;;  %v283_v11 = vmul.f32 %v590_v61, %v679_v1  ;;  %v357_v60 = vld [vmem:[%s686_s23 + $0xe0] sm:$0xff]  ;;  %v358_v61 = vld [vmem:[%s686_s23 + $0xe8] sm:$0xff] }
  0x2a   : > { %v377_v12 = vadd.f32 %v345_v56, %v313_v62  ;;  %v378_v13 = vadd.f32 %v346_v57, %v314_v63  ;;  %v317_v14 = vadd.f32 %v692_v5, %v280_v3  ;;  %v318_v15 = vadd.f32 %v692_v5, %v281_v4 }
  0x2b   : > { %v379_v18 = vadd.f32 %v347_v0, %v315_v6  ;;  %v380_v19 = vadd.f32 %v348_v2, %v316_v7  ;;  %v319_v20 = vadd.f32 %v692_v5, %v282_v10  ;;  %v320_v21 = vadd.f32 %v692_v5, %v283_v11  ;;  %v359_v6 = vld [vmem:[%s686_s23 + $0xf0] sm:$0xff]  ;;  %v360_v7 = vld [vmem:[%s686_s23 + $0xf8] sm:$0xff] }
  0x2c   : > { %v409_v23 = vmax.f32 %v377_v12, 0.0  ;;  %v410_v24 = vmax.f32 %v378_v13, 0.0  ;;  %v381_v25 = vadd.f32 %v349_v8, %v317_v14  ;;  %v382_v26 = vadd.f32 %v350_v9, %v318_v15 }
  0x2d   : > { %v411_v28 = vmax.f32 %v379_v18, 0.0  ;;  %v412_v29 = vmax.f32 %v380_v19, 0.0  ;;  %v383_v30 = vadd.f32 %v351_v16, %v319_v20  ;;  %v384_v31 = vadd.f32 %v352_v17, %v320_v21 }
  0x2e   : > { %442 = vst.msk [vmem:[%s723_s28 + $0x80] sm:$0xff] %vm425_vm0, %v409_v23  ;;  %443 = vst.msk [vmem:[%s723_s28 + $0x88] sm:$0xff] %vm425_vm0, %v410_v24  ;;  %v413_v33 = vmax.f32 %v381_v25, 0.0  ;;  %v414_v34 = vmax.f32 %v382_v26, 0.0  ;;  %v593_v35 = vunpack.c.l.bf16 %v618_v22  ;;  %v594_v36 = vunpack.c.h.bf16 %v618_v22 }
  0x2f   : > { %444 = vst.msk [vmem:[%s723_s28 + $0x90] sm:$0xff] %vm425_vm0, %v411_v28  ;;  %445 = vst.msk [vmem:[%s723_s28 + $0x98] sm:$0xff] %vm425_vm0, %v412_v29  ;;  %v415_v38 = vmax.f32 %v383_v30, 0.0  ;;  %v416_v39 = vmax.f32 %v384_v31, 0.0  ;;  %v597_v40 = vunpack.c.l.bf16 %v619_v27  ;;  %v598_v41 = vunpack.c.h.bf16 %v619_v27 }
  0x30   : > { %446 = vst.msk [vmem:[%s723_s28 + $0xa0] sm:$0xff] %vm425_vm0, %v413_v33  ;;  %447 = vst.msk [vmem:[%s723_s28 + $0xa8] sm:$0xff] %vm425_vm0, %v414_v34  ;;  %v284_v42 = vmul.f32 %v593_v35, %v679_v1  ;;  %v285_v43 = vmul.f32 %v594_v36, %v679_v1  ;;  %v601_v44 = vunpack.c.l.bf16 %v620_v32  ;;  %v602_v45 = vunpack.c.h.bf16 %v620_v32 }
  0x31   : > { %448 = vst.msk [vmem:[%s723_s28 + $0xb0] sm:$0xff] %vm425_vm0, %v415_v38  ;;  %449 = vst.msk [vmem:[%s723_s28 + $0xb8] sm:$0xff] %vm425_vm0, %v416_v39  ;;  %v286_v48 = vmul.f32 %v597_v40, %v679_v1  ;;  %v287_v49 = vmul.f32 %v598_v41, %v679_v1  ;;  %v605_v50 = vunpack.c.l.bf16 %v621_v37  ;;  %v606_v51 = vunpack.c.h.bf16 %v621_v37 }
  0x32   : > { %v321_v52 = vadd.f32 %v692_v5, %v284_v42  ;;  %v322_v53 = vadd.f32 %v692_v5, %v285_v43  ;;  %v288_v56 = vmul.f32 %v601_v44, %v679_v1  ;;  %v289_v57 = vmul.f32 %v602_v45, %v679_v1 }
  0x33   : > { %v323_v58 = vadd.f32 %v692_v5, %v286_v48  ;;  %v324_v59 = vadd.f32 %v692_v5, %v287_v49  ;;  %v290_v62 = vmul.f32 %v605_v50, %v679_v1  ;;  %v291_v63 = vmul.f32 %v606_v51, %v679_v1 }
  0x34   : > { %v385_v0 = vadd.f32 %v353_v46, %v321_v52  ;;  %v386_v2 = vadd.f32 %v354_v47, %v322_v53  ;;  %v325_v3 = vadd.f32 %v692_v5, %v288_v56  ;;  %v326_v4 = vadd.f32 %v692_v5, %v289_v57 }
  0x35   : > { %v387_v8 = vadd.f32 %v355_v54, %v323_v58  ;;  %v388_v9 = vadd.f32 %v356_v55, %v324_v59  ;;  %v327_v10 = vadd.f32 %v692_v5, %v290_v62  ;;  %v328_v11 = vadd.f32 %v692_v5, %v291_v63 }
  0x36   : > { %v417_v12 = vmax.f32 %v385_v0, 0.0  ;;  %v418_v1 = vmax.f32 %v386_v2, 0.0  ;;  %v389_v13 = vadd.f32 %v357_v60, %v325_v3  ;;  %v390_v14 = vadd.f32 %v358_v61, %v326_v4 }
  0x37   : > { %v419_v15 = vmax.f32 %v387_v8, 0.0  ;;  %v420_v16 = vmax.f32 %v388_v9, 0.0  ;;  %v391_v17 = vadd.f32 %v359_v6, %v327_v10  ;;  %v392_v18 = vadd.f32 %v360_v7, %v328_v11 }
  0x38   : > { %450 = vst.msk [vmem:[%s723_s28 + $0xc0] sm:$0xff] %vm425_vm0, %v417_v12  ;;  %451 = vst.msk [vmem:[%s723_s28 + $0xc8] sm:$0xff] %vm425_vm0, %v418_v1  ;;  %v421_v19 = vmax.f32 %v389_v13, 0.0  ;;  %v422_v20 = vmax.f32 %v390_v14, 0.0 }
  0x39   : > { %452 = vst.msk [vmem:[%s723_s28 + $0xd0] sm:$0xff] %vm425_vm0, %v419_v15  ;;  %453 = vst.msk [vmem:[%s723_s28 + $0xd8] sm:$0xff] %vm425_vm0, %v420_v16  ;;  %v423_v5 = vmax.f32 %v391_v17, 0.0  ;;  %v424_v21 = vmax.f32 %v392_v18, 0.0 }
  0x3a   : > { %454 = vst.msk [vmem:[%s723_s28 + $0xe0] sm:$0xff] %vm425_vm0, %v421_v19  ;;  %455 = vst.msk [vmem:[%s723_s28 + $0xe8] sm:$0xff] %vm425_vm0, %v422_v20 }
  0x3b   : > { %456 = vst.msk [vmem:[%s723_s28 + $0xf0] sm:$0xff] %vm425_vm0, %v423_v5  ;;  %457 = vst.msk [vmem:[%s723_s28 + $0xf8] sm:$0xff] %vm425_vm0, %v424_v21 }
  0x3c PF: > { %s13_s12 = sadd.s32 1, %s636_s12  }
  0x3d   : > { %p10_p4 = scmp.ge.s32.totalorder %s13_s12, 4  }
  0x3f   :  { %12 = sbr.rel (!%p10_p4) target bundleno = 1 (0x1), region = 65 }

// kernel: basic_block_group_forward.3
= control target key start
LH: loop header
LB: loop body
LE: loop exit
PB: predicated region body
PF: predicated region fallthrough
CT: control target
= control target key end

     0   :  { %s2309_s15 = smov 0   ;;  %s3079_s0 = inlined_call_operand.vmem [shape: f32[2,16,16,16], index: 0, kind: input, shape index: {}]   ;;  %s3080_s1 = inlined_call_operand.vmem [shape: bf16[144,16], index: 1, kind: input, shape index: {}]   ;;  %s3081_s2 = inlined_call_operand.vmem [shape: bf16[2,16,16,16], index: 2, kind: output, shape index: {0}]   ;;  %s3082_s3 = inlined_call_operand.vmem [shape: f32[2,1,16], index: 3, kind: output, shape index: {1}]   ;;  %s3083_s4 = inlined_call_operand.vmem [shape: f32[2,1,16], index: 4, kind: output, shape index: {2}]  }
   0x1 LB: > { %s2121_s16 = sadd.s32 4294967295, %s2273_s15   ;;  %p2125_p0 = scmp.ge.s32.totalorder %s2273_s15, 1  ;;  %s2273_s15 = sphi %s2309_s15, %s15_s15  }
   0x2   : > { %p167_p1 = scmp.lt.s32.totalorder %s2273_s15, 3 }
   0x4   : > { %p168_p2 = pnand %p2125_p0, %p167_p1 }
   0x5   : > { %vm248_vm0 = vcmask (!%p168_p2), 130048   ;;  %vm251_vm1 = vcmask (!%p168_p2), 123904   ;;  %v2275_v0 = vmov (!%p168_p2), 0.0   ;;  %p199_p3 = scmp.lt.s32.totalorder (!%p168_p2), %s2121_s16, 1  ;;  %v2276_v1 = vmov (!%p168_p2), 0   ;;  %v2258_v2 = vld [vmem:[%s3080_s1] sm:$0xff] (!%p168_p2)  }
   0x6   : > { %171 = sbr.rel (%p168_p2) target bundleno = 618 (0x26a), region = 28  ;;  %249 = vst.msk [vmem:[#allocation2] sm:$0xff] (!%p168_p2), %vm248_vm0, %v2275_v0  ;;  %250 = vst.msk [vmem:[#allocation2 + $0x8] sm:$0xff] (!%p168_p2), %vm248_vm0, %v2275_v0  ;;  %1521 = vmatprep.subr.bf16.mxu0 (!%p168_p2), %v2276_v1  ;;  %2223 = vmatprep.subr.bf16.mxu1 (!%p168_p2), %v2276_v1  ;;  %v2259_v3 = vld [vmem:[%s3080_s1 + $0x8] sm:$0xff] (!%p168_p2)   ;;  %v2260_v4 = vld [vmem:[%s3080_s1 + $0x10] sm:$0xff] (!%p168_p2)   ;;  %s2277_s29 = smov (!%p168_p2), 16  }
   0x7   : > { %252 = vst.msk [vmem:[#allocation2 + $0x10] sm:$0x3] (!%p168_p2), %vm251_vm1, %v2275_v0  ;;  %255 = vst.msk [vmem:[#allocation2 + $0x28] sm:$0x3] (!%p168_p2), %vm251_vm1, %v2275_v0  ;;  %1522 = vmatpush1.bf16.msra.mxu0 (!%p168_p2), %v2258_v2  ;;  %2232 = vmatpush1.bf16.msra.mxu1 (!%p168_p2), %v2258_v2  ;;  %v2261_v18 = vld [vmem:[%s3080_s1 + $0x18] sm:$0xff] (!%p168_p2)   ;;  %v2262_v32 = vld [vmem:[%s3080_s1 + $0x20] sm:$0xff] (!%p168_p2)  }
   0x8   : > { %253 = vst.msk [vmem:[#allocation2 + $0x18] sm:$0xff] (!%p168_p2), %vm248_vm0, %v2275_v0  ;;  %254 = vst.msk [vmem:[#allocation2 + $0x20] sm:$0xff] (!%p168_p2), %vm248_vm0, %v2275_v0  ;;  %1523 = vmatprep.subr.bf16.mxu0 (!%p168_p2), %v2276_v1  ;;  %2224 = vmatprep.subr.bf16.mxu1 (!%p168_p2), %v2276_v1  ;;  %s2278_s6 = smov (!%p168_p2), 32   ;;  %s2279_s7 = smov (!%p168_p2), 48   ;;  %vm513_vm2 = vcmask (!%p168_p2), 261248   ;;  %vm642_vm3 = vcmask (!%p168_p2), 392448  }
   0x9   : > { %256 = vst.msk [vmem:[#allocation2 + $0x30] sm:$0xff] (!%p168_p2), %vm248_vm0, %v2275_v0  ;;  %257 = vst.msk [vmem:[#allocation2 + $0x38] sm:$0xff] (!%p168_p2), %vm248_vm0, %v2275_v0  ;;  %s2280_s8 = smov (!%p168_p2), 80   ;;  %s2281_s9 = smov (!%p168_p2), 64   ;;  %vm771_vm4 = vcmask (!%p168_p2), 523648   ;;  %vm900_vm5 = vcmask (!%p168_p2), 654848  }
   0xa   : > { %258 = vst.msk [vmem:[#allocation2 + $0x40] sm:$0x3] (!%p168_p2), %vm251_vm1, %v2275_v0  ;;  %261 = vst.msk [vmem:[#allocation2 + $0x58] sm:$0x3] (!%p168_p2), %vm251_vm1, %v2275_v0  ;;  %s2282_s10 = smov (!%p168_p2), 112   ;;  %s2283_s11 = smov (!%p168_p2), 96  }
   0xb   : > { %259 = vst.msk [vmem:[#allocation2 + $0x48] sm:$0xff] (!%p168_p2), %vm248_vm0, %v2275_v0  ;;  %260 = vst.msk [vmem:[#allocation2 + $0x50] sm:$0xff] (!%p168_p2), %vm248_vm0, %v2275_v0  ;;  %1524 = vmatpush1.bf16.msra.mxu0 (!%p168_p2), %v2259_v3  ;;  %2233 = vmatpush1.bf16.msra.mxu1 (!%p168_p2), %v2259_v3  ;;  %vm1029_vm6 = vcmask (!%p168_p2), 786048   ;;  %vm1159_vm7 = vcmask (!%p168_p2), 917248   ;;  %vm1288_vm8 = vcmask (!%p168_p2), 1048448   ;;  %vm1983_vm9 = vcmask (!%p168_p2), 125952  }
   0xc   : > { %262 = vst.msk [vmem:[#allocation2 + $0x60] sm:$0xff] (!%p168_p2), %vm248_vm0, %v2275_v0  ;;  %263 = vst.msk [vmem:[#allocation2 + $0x68] sm:$0xff] (!%p168_p2), %vm248_vm0, %v2275_v0  ;;  %1525 = vmatprep.subr.bf16.mxu0 (!%p168_p2), %v2276_v1  ;;  %2225 = vmatprep.subr.bf16.mxu1 (!%p168_p2), %v2276_v1  ;;  %vm1751_vm10 = vcmask (!%p168_p2), 122880  }
   0xd   : > { %264 = vst.msk [vmem:[#allocation2 + $0x70] sm:$0x3] %vm251_vm1, %v2275_v0  ;;  %267 = vst.msk [vmem:[#allocation2 + $0x88] sm:$0x3] %vm251_vm1, %v2275_v0  ;;  %s3085_s16 = smov (!%p199_p3, %s2121_s16), 1  ;;  %v401_v8 = vld [vmem:[#allocation2 + $0x1] sm:$0xff] }
   0xe   : > { %265 = vst.msk [vmem:[#allocation2 + $0x78] sm:$0xff] %vm248_vm0, %v2275_v0  ;;  %266 = vst.msk [vmem:[#allocation2 + $0x80] sm:$0xff] %vm248_vm0, %v2275_v0  ;;  %s2189_s21 = sshll.u32 %s3085_s16, 8  ;;  %v402_v9 = vld [vmem:[#allocation2 + $0x9] sm:$0xff]  ;;  %s2190_s22 = sshll.u32 %s3085_s16, 7 }
   0xf   : > { %268 = vst.msk [vmem:[#allocation2 + $0x90] sm:$0xff] %vm248_vm0, %v2275_v0  ;;  %269 = vst.msk [vmem:[#allocation2 + $0x98] sm:$0xff] %vm248_vm0, %v2275_v0  ;;  %s2391_s24 = scalar_lea.vmem %s3079_s0, %s2189_s21  ;;  %v530_v10 = vld [vmem:[#allocation2 + $0x2] sm:$0xff]  ;;  %v433_v11 = vpack.c.bf16 %v402_v9, %v401_v8  ;;  %v531_v12 = vld [vmem:[#allocation2 + $0xa] sm:$0xff]  ;;  %1526 = vmatpush1.bf16.msra.mxu0 %v2260_v4  ;;  %2234 = vmatpush1.bf16.msra.mxu1 %v2260_v4  ;;  %s2910_s25 = scalar_lea.vmem %s3081_s2, %s2190_s22 }
  0x10   : > { %270 = vst.msk [vmem:[#allocation2 + $0xa0] sm:$0x3] %vm251_vm1, %v2275_v0  ;;  %273 = vst.msk [vmem:[#allocation2 + $0xb8] sm:$0x3] %vm251_vm1, %v2275_v0  ;;  %v216_v5 = vld [vmem:[%s2391_s24] sm:$0xff]  ;;  %v217_v6 = vld [vmem:[%s2391_s24 + $0x8] sm:$0xff]  ;;  %v562_v19 = vpack.c.bf16 %v531_v12, %v530_v10  ;;  %1527 = vmatprep.subr.bf16.mxu0 %v2276_v1  ;;  %2226 = vmatprep.subr.bf16.mxu1 %v2276_v1  ;;  %s211_s28 = scalar_lea.vmem %s3082_s3, %s3085_s16  ;;  %s214_s5 = scalar_lea.vmem %s3083_s4, %s3085_s16 }
  0x11   : > { %271 = vst.msk [vmem:[#allocation2 + $0xa8] sm:$0xff] %vm248_vm0, %v2275_v0  ;;  %272 = vst.msk [vmem:[#allocation2 + $0xb0] sm:$0xff] %vm248_vm0, %v2275_v0  ;;  %v218_v7 = vld [vmem:[%s2391_s24 + $0x10] sm:$0xff]  ;;  %v219_v13 = vld [vmem:[%s2391_s24 + $0x18] sm:$0xff]  ;;  %465 = vrot.lane.b32.xlu0 %v433_v11, %s2277_s29 }
  0x12   : > { %274 = vst.msk [vmem:[#allocation2 + $0xc0] sm:$0xff] %vm248_vm0, %v2275_v0  ;;  %275 = vst.msk [vmem:[#allocation2 + $0xc8] sm:$0xff] %vm248_vm0, %v2275_v0  ;;  %v220_v14 = vld [vmem:[%s2391_s24 + $0x20] sm:$0xff]  ;;  %v221_v15 = vld [vmem:[%s2391_s24 + $0x28] sm:$0xff] }
  0x13   : > { %276 = vst.msk [vmem:[#allocation2 + $0xd0] sm:$0x3] %vm251_vm1, %v2275_v0  ;;  %279 = vst.msk [vmem:[#allocation2 + $0xe8] sm:$0x3] %vm251_vm1, %v2275_v0  ;;  %v222_v16 = vld [vmem:[%s2391_s24 + $0x30] sm:$0xff]  ;;  %v223_v17 = vld [vmem:[%s2391_s24 + $0x38] sm:$0xff]  ;;  %1528 = vmatpush1.bf16.msra.mxu0 %v2261_v18  ;;  %2235 = vmatpush1.bf16.msra.mxu1 %v2261_v18 }
  0x14   : > { %277 = vst.msk [vmem:[#allocation2 + $0xd8] sm:$0xff] %vm248_vm0, %v2275_v0  ;;  %278 = vst.msk [vmem:[#allocation2 + $0xe0] sm:$0xff] %vm248_vm0, %v2275_v0  ;;  %v224_v20 = vld [vmem:[%s2391_s24 + $0x40] sm:$0xff]  ;;  %v225_v21 = vld [vmem:[%s2391_s24 + $0x48] sm:$0xff]  ;;  %1529 = vmatprep.subr.bf16.mxu0 %v2276_v1  ;;  %2227 = vmatprep.subr.bf16.mxu1 %v2276_v1 }
  0x15   : > { %280 = vst.msk [vmem:[#allocation2 + $0xf0] sm:$0xff] %vm248_vm0, %v2275_v0  ;;  %281 = vst.msk [vmem:[#allocation2 + $0xf8] sm:$0xff] %vm248_vm0, %v2275_v0  ;;  %v230_v22 = vld [vmem:[%s2391_s24 + $0x70] sm:$0xff]  ;;  %v231_v23 = vld [vmem:[%s2391_s24 + $0x78] sm:$0xff]  ;;  %594 = vrot.lane.b32.xlu0 %v562_v19, %s2278_s6 }
  0x16   : > { %282 = vst.msk [vmem:[#allocation2 + $0x100] sm:$0x3] %vm251_vm1, %v2275_v0  ;;  %285 = vst.msk [vmem:[#allocation2 + $0x118] sm:$0x3] %vm251_vm1, %v2275_v0  ;;  %v232_v24 = vld [vmem:[%s2391_s24 + $0x80] sm:$0xff]  ;;  %v233_v25 = vld [vmem:[%s2391_s24 + $0x88] sm:$0xff] }
  0x17   : > { %283 = vst.msk [vmem:[#allocation2 + $0x108] sm:$0xff] %vm248_vm0, %v2275_v0  ;;  %284 = vst.msk [vmem:[#allocation2 + $0x110] sm:$0xff] %vm248_vm0, %v2275_v0  ;;  %v226_v26 = vld [vmem:[%s2391_s24 + $0x50] sm:$0xff]  ;;  %v227_v27 = vld [vmem:[%s2391_s24 + $0x58] sm:$0xff]  ;;  %1530 = vmatpush1.bf16.msra.mxu0 %v2262_v32  ;;  %2236 = vmatpush1.bf16.msra.mxu1 %v2262_v32 }
  0x18   : > { %286 = vst.msk [vmem:[#allocation2 + $0x120] sm:$0xff] %vm248_vm0, %v2275_v0  ;;  %287 = vst.msk [vmem:[#allocation2 + $0x128] sm:$0xff] %vm248_vm0, %v2275_v0  ;;  %v234_v28 = vld [vmem:[%s2391_s24 + $0x90] sm:$0xff]  ;;  %v235_v29 = vld [vmem:[%s2391_s24 + $0x98] sm:$0xff]  ;;  %1531 = vmatprep.subr.bf16.mxu0 %v2276_v1  ;;  %2228 = vmatprep.subr.bf16.mxu1 %v2276_v1 }
  0x19   : > { %288 = vst.msk [vmem:[#allocation2 + $0x130] sm:$0x3] %vm251_vm1, %v2275_v0  ;;  %291 = vst.msk [vmem:[#allocation2 + $0x148] sm:$0x3] %vm251_vm1, %v2275_v0  ;;  %v228_v30 = vld [vmem:[%s2391_s24 + $0x60] sm:$0xff]  ;;  %v229_v31 = vld [vmem:[%s2391_s24 + $0x68] sm:$0xff] }
  0x1a   : > { %289 = vst.msk [vmem:[#allocation2 + $0x138] sm:$0xff] %vm248_vm0, %v2275_v0  ;;  %290 = vst.msk [vmem:[#allocation2 + $0x140] sm:$0xff] %vm248_vm0, %v2275_v0  ;;  %v236_v11 = vld [vmem:[%s2391_s24 + $0xa0] sm:$0xff]  ;;  %v237_v12 = vld [vmem:[%s2391_s24 + $0xa8] sm:$0xff] }
  0x1b   : > { %292 = vst.msk [vmem:[#allocation2 + $0x150] sm:$0xff] %vm248_vm0, %v2275_v0  ;;  %293 = vst.msk [vmem:[#allocation2 + $0x158] sm:$0xff] %vm248_vm0, %v2275_v0 }
  0x1c   : > { %294 = vst.msk [vmem:[#allocation2 + $0x160] sm:$0x3] %vm251_vm1, %v2275_v0  ;;  %297 = vst.msk [vmem:[#allocation2 + $0x178] sm:$0x3] %vm251_vm1, %v2275_v0 }
  0x1d   : > { %295 = vst.msk [vmem:[#allocation2 + $0x168] sm:$0xff] %vm248_vm0, %v2275_v0  ;;  %296 = vst.msk [vmem:[#allocation2 + $0x170] sm:$0xff] %vm248_vm0, %v2275_v0 }
  0x1e   : > { %298 = vst.msk [vmem:[#allocation2 + $0x180] sm:$0xff] %vm248_vm0, %v2275_v0  ;;  %299 = vst.msk [vmem:[#allocation2 + $0x188] sm:$0xff] %vm248_vm0, %v2275_v0 }
  0x1f   : > { %300 = vst.msk [vmem:[#allocation2 + $0x190] sm:$0x3] %vm251_vm1, %v2275_v0  ;;  %303 = vst.msk [vmem:[#allocation2 + $0x1a8] sm:$0x3] %vm251_vm1, %v2275_v0 }
  0x20   : > { %301 = vst.msk [vmem:[#allocation2 + $0x198] sm:$0xff] %vm248_vm0, %v2275_v0  ;;  %302 = vst.msk [vmem:[#allocation2 + $0x1a0] sm:$0xff] %vm248_vm0, %v2275_v0 }
  0x21   : > { %305 = vst.msk [vmem:[#allocation2 + $0x19] sm:$0xff] %vm248_vm0, %v216_v5  ;;  %306 = vst.msk [vmem:[#allocation2 + $0x21] sm:$0xff] %vm248_vm0, %v217_v6 }
  0x22   : > { %307 = vst.msk [vmem:[#allocation2 + $0x31] sm:$0xff] %vm248_vm0, %v218_v7  ;;  %308 = vst.msk [vmem:[#allocation2 + $0x39] sm:$0xff] %vm248_vm0, %v219_v13  ;;  %v338_v13 = vld [vmem:[#allocation2 + $0x8] sm:$0xff] }
  0x23   : > { %309 = vst.msk [vmem:[#allocation2 + $0x49] sm:$0xff] %vm248_vm0, %v220_v14  ;;  %310 = vst.msk [vmem:[#allocation2 + $0x51] sm:$0xff] %vm248_vm0, %v221_v15  ;;  %v337_v14 = vld [vmem:[#allocation2] sm:$0xff] }
  0x24   : > { %311 = vst.msk [vmem:[#allocation2 + $0x61] sm:$0xff] %vm248_vm0, %v222_v16  ;;  %312 = vst.msk [vmem:[#allocation2 + $0x69] sm:$0xff] %vm248_vm0, %v223_v17  ;;  %v369_v15 = vpack.c.bf16 %v338_v13, %v337_v14  ;;  %v2263_v16 = vld [vmem:[%s3080_s1 + $0x28] sm:$0xff]   ;;  %v2264_v17 = vld [vmem:[%s3080_s1 + $0x30] sm:$0xff]  }
  0x25   : > { %313 = vst.msk [vmem:[#allocation2 + $0x79] sm:$0xff] %vm248_vm0, %v224_v20  ;;  %314 = vst.msk [vmem:[#allocation2 + $0x81] sm:$0xff] %vm248_vm0, %v225_v21  ;;  %1532 = vmatpush1.bf16.msra.mxu0 %v2263_v16  ;;  %2237 = vmatpush1.bf16.msra.mxu1 %v2263_v16 }
  0x26   : > { %319 = vst.msk [vmem:[#allocation2 + $0xc1] sm:$0xff] %vm248_vm0, %v230_v22  ;;  %320 = vst.msk [vmem:[#allocation2 + $0xc9] sm:$0xff] %vm248_vm0, %v231_v23  ;;  %1533 = vmatprep.subr.bf16.mxu0 %v2276_v1  ;;  %2229 = vmatprep.subr.bf16.mxu1 %v2276_v1 }
  0x27   : > { %321 = vst.msk [vmem:[#allocation2 + $0xd9] sm:$0xff] %vm248_vm0, %v232_v24  ;;  %322 = vst.msk [vmem:[#allocation2 + $0xe1] sm:$0xff] %vm248_vm0, %v233_v25 }
  0x28   : > { %315 = vst.msk [vmem:[#allocation2 + $0x91] sm:$0xff] %vm248_vm0, %v226_v26  ;;  %316 = vst.msk [vmem:[#allocation2 + $0x99] sm:$0xff] %vm248_vm0, %v227_v27  ;;  %v659_v33 = vld [vmem:[#allocation2 + $0x18] sm:$0xff]  ;;  %v660_v34 = vld [vmem:[#allocation2 + $0x20] sm:$0xff] }
  0x29   : > { %323 = vst.msk [vmem:[#allocation2 + $0xf1] sm:$0xff] %vm248_vm0, %v234_v28  ;;  %v917_v35 = vld [vmem:[#allocation2 + $0x1a] sm:$0xff]  ;;  %324 = vst.msk [vmem:[#allocation2 + $0xf9] sm:$0xff] %vm248_vm0, %v235_v29  ;;  %v691_v36 = vpack.c.bf16 %v660_v34, %v659_v33  ;;  %v918_v37 = vld [vmem:[#allocation2 + $0x22] sm:$0xff]  ;;  %1534 = vmatpush1.bf16.msra.mxu0 %v2264_v17  ;;  %2238 = vmatpush1.bf16.msra.mxu1 %v2264_v17 }
  0x2a   : > { %317 = vst.msk [vmem:[#allocation2 + $0xa9] sm:$0xff] %vm248_vm0, %v228_v30  ;;  %318 = vst.msk [vmem:[#allocation2 + $0xb1] sm:$0xff] %vm248_vm0, %v229_v31  ;;  %v788_v38 = vld [vmem:[#allocation2 + $0x19] sm:$0xff]  ;;  %v789_v39 = vld [vmem:[#allocation2 + $0x21] sm:$0xff]  ;;  %v949_v40 = vpack.c.bf16 %v918_v37, %v917_v35  ;;  %1535 = vmatprep.subr.bf16.mxu0 %v2276_v1  ;;  %2230 = vmatprep.subr.bf16.mxu1 %v2276_v1 }
  0x2b   : > { %v1176_v41 = vld [vmem:[#allocation2 + $0x31] sm:$0xff]  ;;  %v1177_v42 = vld [vmem:[#allocation2 + $0x39] sm:$0xff]  ;;  %723 = vrot.lane.b32.xlu1 %v691_v36, %s2279_s7  ;;  %v820_v44 = vpack.c.bf16 %v789_v39, %v788_v38  ;;  %v1049_v46 = vld [vmem:[#allocation2 + $0x48] sm:$0xff]  ;;  %386 = vst.msk [vmem:[#allocation3 + $0x10] sm:$0xff] %vm248_vm0, %v691_v36 }
  0x2c   : > { %v1047_v43 = vld [vmem:[#allocation2 + $0x30] sm:$0xff]  ;;  %v1048_v45 = vld [vmem:[#allocation2 + $0x38] sm:$0xff]  ;;  %981 = vrot.lane.b32.xlu0 %v949_v40, %s2280_s8  ;;  %v2453_v48 = vpack.c.bf16 %v1177_v42, %v1176_v41  ;;  %v1051_v57 = vld [vmem:[#allocation2 + $0x60] sm:$0xff]  ;;  %325 = vst.msk [vmem:[#allocation2 + $0x109] sm:$0xff] %vm248_vm0, %v236_v11 }
  0x2d   : > { %v1050_v47 = vld [vmem:[#allocation2 + $0x50] sm:$0xff]  ;;  %v1079_v49 = vpack.c.bf16 %v1048_v45, %v1047_v43  ;;  %v920_v52 = vld [vmem:[#allocation2 + $0x3a] sm:$0xff]  ;;  %v1052_v58 = vld [vmem:[#allocation2 + $0x68] sm:$0xff]  ;;  %326 = vst.msk [vmem:[#allocation2 + $0x111] sm:$0xff] %vm248_vm0, %v237_v12 }
  0x2e   : > { %v2455_v50 = vpack.c.bf16 %v1050_v47, %v1049_v46  ;;  %v919_v51 = vld [vmem:[#allocation2 + $0x32] sm:$0xff]  ;;  %v921_v54 = vld [vmem:[#allocation2 + $0x4a] sm:$0xff]  ;;  %v2471_v59 = vpack.c.bf16 %v1052_v58, %v1051_v57  ;;  %v923_v60 = vld [vmem:[#allocation2 + $0x62] sm:$0xff]  ;;  %385 = vst.msk [vmem:[#allocation3] sm:$0xff] %vm248_vm0, %v369_v15 }
  0x2f   : > { %v2457_v53 = vpack.c.bf16 %v920_v52, %v919_v51  ;;  %v922_v55 = vld [vmem:[#allocation2 + $0x52] sm:$0xff]  ;;  %387 = vst.msk [vmem:[#allocation3 + $0x20] sm:$0xff] %vm248_vm0, %v1079_v49  ;;  %852 = vrot.lane.b32.xlu1 %v820_v44, %s2281_s9  ;;  %v924_v61 = vld [vmem:[#allocation2 + $0x6a] sm:$0xff]  ;;  %v925_v63 = vld [vmem:[#allocation2 + $0x7a] sm:$0xff] }
  0x30   : > { %v2459_v56 = vpack.c.bf16 %v922_v55, %v921_v54  ;;  %388 = vst.msk [vmem:[#allocation3 + $0x30] sm:$0xff] %vm248_vm0, %v2455_v50  ;;  %1240 = vrot.lane.b32.xlu0 %v2453_v48, %s2282_s10  ;;  %v2475_v62 = vpack.c.bf16 %v924_v61, %v923_v60  ;;  %389 = vst.msk [vmem:[#allocation3 + $0x40] sm:$0xff] %vm248_vm0, %v2471_v59  ;;  %v926_v0 = vld [vmem:[#allocation2 + $0x82] sm:$0xff]  ;;  %v927_v3 = vld [vmem:[#allocation2 + $0x92] sm:$0xff] }
  0x31   : > { %1353 = vst.msk [vmem:[#allocation3 + $0x8] sm:$0xff] %vm248_vm0, %v2457_v53  ;;  %v2483_v2 = vpack.c.bf16 %v926_v0, %v925_v63  ;;  %v928_v4 = vld [vmem:[#allocation2 + $0x9a] sm:$0xff]  ;;  %v935_v6 = vld [vmem:[#allocation2 + $0xf2] sm:$0xff]  ;;  %v1178_v8 = vld [vmem:[#allocation2 + $0x49] sm:$0xff] }
  0x32   : > { %1354 = vst.msk [vmem:[#allocation3 + $0x18] sm:$0xff] %vm248_vm0, %v2459_v56  ;;  %1355 = vst.msk [vmem:[#allocation3 + $0x28] sm:$0xff] %vm248_vm0, %v2475_v62  ;;  %v2490_v5 = vpack.c.bf16 %v928_v4, %v927_v3  ;;  %v936_v7 = vld [vmem:[#allocation2 + $0xfa] sm:$0xff]  ;;  %v1179_v9 = vld [vmem:[#allocation2 + $0x51] sm:$0xff] }
  0x33   : > { %1111 = vrot.lane.b32.xlu1 %v1079_v49, %s2283_s11  ;;  %1356 = vst.msk [vmem:[#allocation3 + $0x38] sm:$0xff] %vm248_vm0, %v2483_v2  ;;  %v2492_v10 = vpack.c.bf16 %v936_v7, %v935_v6  ;;  %v929_v18 = vld [vmem:[#allocation2 + $0xaa] sm:$0xff]  ;;  %v930_v19 = vld [vmem:[#allocation2 + $0xb2] sm:$0xff]  ;;  %v2514_v20 = vpack.c.bf16 %v1179_v9, %v1178_v8  ;;  %v1059_v22 = vld [vmem:[#allocation2 + $0xc0] sm:$0xff] }
  0x34   : > { %596 = vrot.lane.b32.xlu0 %v949_v40, %s2278_s6  ;;  %1357 = vst.msk [vmem:[#allocation3 + $0x48] sm:$0xff] %vm248_vm0, %v2490_v5  ;;  %v2517_v21 = vpack.c.bf16 %v930_v19, %v929_v18  ;;  %v1060_v23 = vld [vmem:[#allocation2 + $0xc8] sm:$0xff]  ;;  %v238_v26 = vld [vmem:[%s2391_s24 + $0xb0] sm:$0xff]  ;;  %v2265_v27 = vld [vmem:[%s3080_s1 + $0x38] sm:$0xff]  }
  0x35   : > { %1361 = vst.msk [vmem:[#allocation3 + $0x88] sm:$0xff] %vm248_vm0, %v2492_v10  ;;  %v2522_v24 = vpack.c.bf16 %v1060_v23, %v1059_v22  ;;  %v239_v28 = vld [vmem:[%s2391_s24 + $0xb8] sm:$0xff]  ;;  %327 = vst.msk [vmem:[#allocation2 + $0x121] sm:$0xff] %vm248_vm0, %v238_v26  ;;  %v937_v29 = vld [vmem:[#allocation2 + $0x10a] sm:$0xff]  ;;  %1536 = vmatpush1.bf16.msra.mxu0 %v2265_v27  ;;  %2239 = vmatpush1.bf16.msra.mxu1 %v2265_v27 }
  0x36   : > { %1358 = vst.msk [vmem:[#allocation3 + $0x58] sm:$0xff] %vm248_vm0, %v2517_v21  ;;  %328 = vst.msk [vmem:[#allocation2 + $0x129] sm:$0xff] %vm248_vm0, %v239_v28  ;;  %v938_v30 = vld [vmem:[#allocation2 + $0x112] sm:$0xff]  ;;  %v240_v31 = vld [vmem:[%s2391_s24 + $0xc0] sm:$0xff]  ;;  %1537 = vmatprep.subr.bf16.mxu0 %v2276_v1  ;;  %2231 = vmatprep.subr.bf16.mxu1 %v2276_v1 }
  0x37   : > { %467 = vrot.lane.b32.xlu1 %v820_v44, %s2277_s29  ;;  %393 = vst.msk [vmem:[#allocation3 + $0x80] sm:$0xff] %vm248_vm0, %v2522_v24  ;;  %v1180_v32 = vld [vmem:[#allocation2 + $0x61] sm:$0xff]  ;;  %v1181_v33 = vld [vmem:[#allocation2 + $0x69] sm:$0xff]  ;;  %v2542_v34 = vpack.c.bf16 %v938_v30, %v937_v29  ;;  %329 = vst.msk [vmem:[#allocation2 + $0x139] sm:$0xff] %vm248_vm0, %v240_v31 }
  0x38   : > { %854 = vrot.lane.b32.xlu0 %v2453_v48, %s2281_s9  ;;  %v1370_v25 = vld [vmem:[#allocation3 + $0x8] sm:$0xff]  ;;  %v241_v35 = vld [vmem:[%s2391_s24 + $0xc8] sm:$0xff]  ;;  %v2266_v36 = vld [vmem:[%s3080_s1 + $0x40] sm:$0xff]   ;;  %v1210_v37 = vpack.c.bf16 %v1181_v33, %v1180_v32 }
  0x39   : > { %2139 = vmatprep.mubr.msk.bf16.mxu0 %vm248_vm0, %v1370_v25  ;;  %330 = vst.msk [vmem:[#allocation2 + $0x141] sm:$0xff] %vm248_vm0, %v241_v35  ;;  %1362 = vst.msk [vmem:[#allocation3 + $0x98] sm:$0xff] %vm248_vm0, %v2542_v34  ;;  %1538 = vmatpush1.bf16.msra.mxu0 %v2266_v36  ;;  %v242_v46 = vld [vmem:[%s2391_s24 + $0xd0] sm:$0xff]  ;;  %v243_v47 = vld [vmem:[%s2391_s24 + $0xd8] sm:$0xff] }
  0x3a   : > { %2240 = vmatpush1.bf16.msra.mxu1 %v2266_v36  ;;  %331 = vst.msk [vmem:[#allocation2 + $0x151] sm:$0xff] %vm248_vm0, %v242_v46  ;;  %332 = vst.msk [vmem:[#allocation2 + $0x159] sm:$0xff] %vm248_vm0, %v243_v47  ;;  %v1182_v54 = vld [vmem:[#allocation2 + $0x79] sm:$0xff]  ;;  %v1183_v55 = vld [vmem:[#allocation2 + $0x81] sm:$0xff] }
  0x3b   : > { %725 = vrot.lane.b32.xlu1 %v1079_v49, %s2279_s7  ;;  %v1054_v49 = vld [vmem:[#allocation2 + $0x80] sm:$0xff]  ;;  %v2596_v60 = vpack.c.bf16 %v1183_v55, %v1182_v54  ;;  %v418_v61 = vld [vmem:[#allocation2 + $0xc9] sm:$0xff]  ;;  %v675_v8 = vld [vmem:[#allocation2 + $0xd8] sm:$0xff] }
  0x3c   : > { %1113 = vrot.lane.b32.xlu0 %v2455_v50, %s2283_s11  ;;  %v1067_v38 = vld [vmem:[#allocation2 + $0x120] sm:$0xff]  ;;  %v245_v0 = vld [vmem:[%s2391_s24 + $0xe8] sm:$0xff]  ;;  %v1055_v19 = vld [vmem:[#allocation2 + $0x90] sm:$0xff] }
  0x3d   : > { %v1068_v39 = vld [vmem:[#allocation2 + $0x128] sm:$0xff]  ;;  %v244_v63 = vld [vmem:[%s2391_s24 + $0xe0] sm:$0xff]  ;;  %334 = vst.msk [vmem:[#allocation2 + $0x171] sm:$0xff] %vm248_vm0, %v245_v0  ;;  %v347_v22 = vld [vmem:[#allocation2 + $0x78] sm:$0xff] }
  0x3e   : > { %v939_v40 = vld [vmem:[#allocation2 + $0x122] sm:$0xff]  ;;  %v2561_v41 = vpack.c.bf16 %v1068_v39, %v1067_v38  ;;  %v940_v42 = vld [vmem:[#allocation2 + $0x12a] sm:$0xff]  ;;  %v1069_v44 = vld [vmem:[#allocation2 + $0x138] sm:$0xff]  ;;  %333 = vst.msk [vmem:[#allocation2 + $0x169] sm:$0xff] %vm248_vm0, %v244_v63 }
  0x3f   : > { %983 = vrot.lane.b32.xlu1 %v2457_v53, %s2280_s8  ;;  %v2564_v43 = vpack.c.bf16 %v940_v42, %v939_v40  ;;  %v546_v4 = vld [vmem:[#allocation2 + $0xc2] sm:$0xff]  ;;  %v547_v6 = vld [vmem:[#allocation2 + $0xca] sm:$0xff]  ;;  %v804_v17 = vld [vmem:[#allocation2 + $0xd9] sm:$0xff] }
  0x40   : > { %469 = vrot.lane.b32.xlu0 %v2453_v48, %s2277_s29  ;;  %v1070_v45 = vld [vmem:[#allocation2 + $0x140] sm:$0xff]  ;;  %397 = vst.msk [vmem:[#allocation3 + $0xc0] sm:$0xff] %vm248_vm0, %v2561_v41  ;;  %v1053_v48 = vld [vmem:[#allocation2 + $0x78] sm:$0xff]  ;;  %v2613_v7 = vpack.c.bf16 %v547_v6, %v546_v4  ;;  %v246_v30 = vld [vmem:[%s2391_s24 + $0xf0] sm:$0xff] }
  0x41   : > { %v2568_v1 = vpack.c.bf16 %v1070_v45, %v1069_v44  ;;  %1363 = vst.msk [vmem:[#allocation3 + $0xa8] sm:$0xff] %vm248_vm0, %v2564_v43  ;;  %v941_v51 = vld [vmem:[#allocation2 + $0x13a] sm:$0xff]  ;;  %v942_v52 = vld [vmem:[#allocation2 + $0x142] sm:$0xff]  ;;  %v943_v11 = vld [vmem:[#allocation2 + $0x152] sm:$0xff] }
  0x42   : > { %v1072_v57 = vld [vmem:[#allocation2 + $0x158] sm:$0xff]  ;;  %v676_v9 = vld [vmem:[#allocation2 + $0xe0] sm:$0xff]  ;;  %335 = vst.msk [vmem:[#allocation2 + $0x181] sm:$0xff] %vm248_vm0, %v246_v30  ;;  %v1063_v40 = vld [vmem:[#allocation2 + $0xf0] sm:$0xff] }
  0x43   : > { %1242 = vrot.lane.b32.xlu1 %v2514_v20, %s2282_s10  ;;  %398 = vst.msk [vmem:[#allocation3 + $0xd0] sm:$0xff] %vm248_vm0, %v2568_v1  ;;  %v944_v12 = vld [vmem:[#allocation2 + $0x15a] sm:$0xff]  ;;  %v934_v29 = vld [vmem:[#allocation2 + $0xe2] sm:$0xff]  ;;  %v1184_v32 = vld [vmem:[#allocation2 + $0x91] sm:$0xff] }
  0x44   : > { %727 = vrot.lane.b32.xlu0 %v2455_v50, %s2279_s7  ;;  %v1082_v50 = vpack.c.bf16 %v1054_v49, %v1053_v48  ;;  %v2616_v13 = vpack.c.bf16 %v944_v12, %v943_v11  ;;  %v805_v18 = vld [vmem:[#allocation2 + $0xe1] sm:$0xff]  ;;  %v247_v31 = vld [vmem:[%s2391_s24 + $0xf8] sm:$0xff]  ;;  %v1186_v63 = vld [vmem:[#allocation2 + $0xa9] sm:$0xff] }
  0x45   : > { %v1073_v14 = vld [vmem:[#allocation2 + $0x168] sm:$0xff]  ;;  %v1074_v15 = vld [vmem:[#allocation2 + $0x170] sm:$0xff]  ;;  %v348_v23 = vld [vmem:[#allocation2 + $0x80] sm:$0xff]  ;;  %v2632_v25 = vpack.c.bf16 %v805_v18, %v804_v17  ;;  %336 = vst.msk [vmem:[#allocation2 + $0x189] sm:$0xff] %vm248_vm0, %v247_v31 }
  0x46   : > { %v2618_v16 = vpack.c.bf16 %v1074_v15, %v1073_v14  ;;  %1365 = vst.msk [vmem:[#allocation3 + $0xc8] sm:$0xff] %vm248_vm0, %v2616_v13  ;;  %v933_v26 = vld [vmem:[#allocation2 + $0xda] sm:$0xff]  ;;  %v374_v27 = vpack.c.bf16 %v348_v23, %v347_v22  ;;  %v945_v44 = vld [vmem:[#allocation2 + $0x16a] sm:$0xff]  ;;  %v946_v45 = vld [vmem:[#allocation2 + $0x172] sm:$0xff] }
  0x47   : > { %598 = vrot.lane.b32.xlu1 %v2457_v53, %s2278_s6  ;;  %v2585_v53 = vpack.c.bf16 %v942_v52, %v941_v51  ;;  %v1185_v33 = vld [vmem:[#allocation2 + $0x99] sm:$0xff]  ;;  %v2645_v46 = vpack.c.bf16 %v946_v45, %v945_v44  ;;  %v1192_v49 = vld [vmem:[#allocation2 + $0xf1] sm:$0xff]  ;;  %v1065_v11 = vld [vmem:[#allocation2 + $0x108] sm:$0xff] }
  0x48   : > { %985 = vrot.lane.b32.xlu0 %v2459_v56, %s2280_s8  ;;  %400 = vst.msk [vmem:[#allocation3 + $0xf0] sm:$0xff] %vm248_vm0, %v2618_v16  ;;  %390 = vst.msk [vmem:[#allocation3 + $0x50] sm:$0xff] %vm248_vm0, %v374_v27  ;;  %v355_v35 = vld [vmem:[#allocation2 + $0xd8] sm:$0xff]  ;;  %v356_v36 = vld [vmem:[#allocation2 + $0xe0] sm:$0xff]  ;;  %v1212_v39 = vpack.c.bf16 %v1185_v33, %v1184_v32 }
  0x49   : > { %1364 = vst.msk [vmem:[#allocation3 + $0xb8] sm:$0xff] %vm248_vm0, %v2585_v53  ;;  %v378_v38 = vpack.c.bf16 %v356_v36, %v355_v35  ;;  %v1064_v42 = vld [vmem:[#allocation2 + $0xf8] sm:$0xff]  ;;  %1366 = vst.msk [vmem:[#allocation3 + $0xd8] sm:$0xff] %vm248_vm0, %v2645_v46  ;;  %v357_v4 = vld [vmem:[#allocation2 + $0xf0] sm:$0xff] }
  0x4a   : > { %v1087_v47 = vpack.c.bf16 %v1064_v42, %v1063_v40  ;;  %v1386_v48 = vld [vmem:[#allocation3 + $0x88] sm:$0xff]  ;;  %v1066_v12 = vld [vmem:[#allocation2 + $0x110] sm:$0xff]  ;;  %v1317_v22 = vld [vmem:[#allocation2 + $0xc2] sm:$0xff] }
  0x4b   : > { %856 = vrot.lane.b32.xlu1 %v2514_v20, %s2281_s9  ;;  %394 = vst.msk [vmem:[#allocation3 + $0x90] sm:$0xff] %vm248_vm0, %v378_v38  ;;  %2147 = vmatprep.mubr.msk.bf16.mxu1 %vm248_vm0, %v1386_v48  ;;  %v1187_v0 = vld [vmem:[#allocation2 + $0xb1] sm:$0xff]  ;;  %v1088_v14 = vpack.c.bf16 %v1066_v12, %v1065_v11  ;;  %v1194_v15 = vld [vmem:[#allocation2 + $0x109] sm:$0xff]  ;;  %v1196_v40 = vld [vmem:[#allocation2 + $0x121] sm:$0xff] }
  0x4c   : > { %1244 = vrot.lane.b32.xlu0 %v1210_v37, %s2282_s10  ;;  %v947_v52 = vld [vmem:[#allocation2 + $0x182] sm:$0xff]  ;;  %v948_v54 = vld [vmem:[#allocation2 + $0x18a] sm:$0xff]  ;;  %v358_v6 = vld [vmem:[#allocation2 + $0xf8] sm:$0xff] }
  0x4d   : > { %v2661_v55 = vpack.c.bf16 %v948_v54, %v947_v52  ;;  %v1195_v17 = vld [vmem:[#allocation2 + $0x111] sm:$0xff]  ;;  %v351_v30 = vld [vmem:[#allocation2 + $0xa8] sm:$0xff] }
  0x4e   : > { %v2681_v18 = vpack.c.bf16 %v1195_v17, %v1194_v15  ;;  %v1318_v23 = vld [vmem:[#allocation2 + $0xca] sm:$0xff]  ;;  %v1201_v17 = vld [vmem:[#allocation2 + $0x159] sm:$0xff] }
  0x4f   : > { %1115 = vrot.lane.b32.xlu1 %v2471_v59, %s2283_s11  ;;  %1367 = vst.msk [vmem:[#allocation3 + $0xe8] sm:$0xff] %vm248_vm0, %v2661_v55  ;;  %v1343_v27 = vpack.c.bf16 %v1318_v23, %v1317_v22  ;;  %v352_v31 = vld [vmem:[#allocation2 + $0xb0] sm:$0xff]  ;;  %v359_v35 = vld [vmem:[#allocation2 + $0x108] sm:$0xff] }
  0x50   : > { %600 = vrot.lane.b32.xlu0 %v2459_v56, %s2278_s6  ;;  %v1071_v56 = vld [vmem:[#allocation2 + $0x150] sm:$0xff]  ;;  %v376_v32 = vpack.c.bf16 %v352_v31, %v351_v30  ;;  %v1372_v45 = vld [vmem:[#allocation3 + $0x18] sm:$0xff] }
  0x51   : > { %v2592_v58 = vpack.c.bf16 %v1072_v57, %v1071_v56  ;;  %v1057_v56 = vld [vmem:[#allocation2 + $0xa8] sm:$0xff]  ;;  %v1058_v57 = vld [vmem:[#allocation2 + $0xb0] sm:$0xff]  ;;  %1359 = vst.msk [vmem:[#allocation3 + $0x68] sm:$0xff] %vm248_vm0, %v1343_v27 }
  0x52   : > { %392 = vst.msk [vmem:[#allocation3 + $0x70] sm:$0xff] %vm248_vm0, %v376_v32  ;;  %v360_v36 = vld [vmem:[#allocation2 + $0x110] sm:$0xff] }
  0x53   : > { %471 = vrot.lane.b32.xlu1 %v2514_v20, %s2277_s29  ;;  %399 = vst.msk [vmem:[#allocation3 + $0xe0] sm:$0xff] %vm248_vm0, %v2592_v58  ;;  %v1056_v20 = vld [vmem:[#allocation2 + $0x98] sm:$0xff]  ;;  %v1197_v42 = vld [vmem:[#allocation2 + $0x129] sm:$0xff] }
  0x54   : > { %858 = vrot.lane.b32.xlu0 %v1210_v37, %s2281_s9  ;;  %v1083_v28 = vpack.c.bf16 %v1056_v20, %v1055_v19  ;;  %v1200_v15 = vld [vmem:[#allocation2 + $0x151] sm:$0xff] }
  0x55   : > { %v1203_v30 = vld [vmem:[#allocation2 + $0x171] sm:$0xff] }
  0x57   : > { %729 = vrot.lane.b32.xlu1 %v2471_v59, %s2279_s7  ;;  %v417_v59 = vld [vmem:[#allocation2 + $0xc1] sm:$0xff] }
  0x58   : > { %1117 = vrot.lane.b32.xlu0 %v1082_v50, %s2283_s11  ;;  %v2607_v3 = vpack.c.bf16 %v418_v61, %v417_v59  ;;  %v1084_v61 = vpack.c.bf16 %v1058_v57, %v1057_v56  ;;  %v1319_v56 = vld [vmem:[#allocation2 + $0xda] sm:$0xff]  ;;  %v1320_v57 = vld [vmem:[#allocation2 + $0xe2] sm:$0xff] }
  0x5b   : > { %987 = vrot.lane.b32.xlu1 %v2475_v62, %s2280_s8 }
  0x5c   : > { %473 = vrot.lane.b32.xlu0 %v1210_v37, %s2277_s29  ;;  %v957_v37 = vpack.c.bf16 %v934_v29, %v933_v26 }
  0x5f   : > { %1246 = vrot.lane.b32.xlu1 %v2596_v60, %s2282_s10 }
  0x60   : > { %602 = vrot.lane.b32.xlu0 %v2475_v62, %s2278_s6  ;;  %v2622_v62 = vpack.c.bf16 %v676_v9, %v675_v8  ;;  %v379_v8 = vpack.c.bf16 %v358_v6, %v357_v4  ;;  %v2673_v9 = vpack.c.bf16 %v1187_v0, %v1186_v63  ;;  %v1199_v4 = vld [vmem:[#allocation2 + $0x141] sm:$0xff] }
  0x62   : > { %395 = vst.msk [vmem:[#allocation3 + $0xa0] sm:$0xff] %vm248_vm0, %v379_v8  ;;  %v1376_v8 = vld [vmem:[#allocation3 + $0x38] sm:$0xff] }
  0x63   : > { %481 = vrot.lane.b32.xlu1 %v2607_v3, %s2277_s29 }
  0x64   : > { %731 = vrot.lane.b32.xlu0 %v1082_v50, %s2279_s7  ;;  %v1193_v50 = vld [vmem:[#allocation2 + $0xf9] sm:$0xff] }
  0x65   : > { %v1216_v51 = vpack.c.bf16 %v1193_v50, %v1192_v49  ;;  %v1218_v49 = vpack.c.bf16 %v1197_v42, %v1196_v40  ;;  %v1075_v42 = vld [vmem:[#allocation2 + $0x180] sm:$0xff] }
  0x67   : > { %610 = vrot.lane.b32.xlu1 %v2613_v7, %s2278_s6 }
  0x68   : > { %860 = vrot.lane.b32.xlu0 %v2596_v60, %s2281_s9 }
  0x6b   : > { %739 = vrot.lane.b32.xlu1 %v2622_v62, %s2279_s7 }
  0x6c   : > { %989 = vrot.lane.b32.xlu0 %v2483_v2, %s2280_s8 }
  0x6f   : > { %868 = vrot.lane.b32.xlu1 %v2632_v25, %s2281_s9 }
  0x70   : > { %1119 = vrot.lane.b32.xlu0 %v1083_v28, %s2283_s11 }
  0x73   : > { %997 = vrot.lane.b32.xlu1 %v957_v37, %s2280_s8 }
  0x74   : > { %1248 = vrot.lane.b32.xlu0 %v1212_v39, %s2282_s10 }
  0x77   : > { %1127 = vrot.lane.b32.xlu1 %v1087_v47, %s2283_s11 }
  0x78   : > { %475 = vrot.lane.b32.xlu0 %v2596_v60, %s2277_s29  ;;  %v349_v60 = vld [vmem:[#allocation2 + $0x90] sm:$0xff] }
  0x7b   : > { %1256 = vrot.lane.b32.xlu1 %v1216_v51, %s2282_s10 }
  0x7c   : > { %604 = vrot.lane.b32.xlu0 %v2483_v2, %s2278_s6  ;;  %v350_v2 = vld [vmem:[#allocation2 + $0x98] sm:$0xff] }
  0x7d   : > { %v375_v59 = vpack.c.bf16 %v350_v2, %v349_v60  ;;  %v1344_v2 = vpack.c.bf16 %v1320_v57, %v1319_v56 }
  0x7f   : > { %483 = vrot.lane.b32.xlu1 %v2632_v25, %s2277_s29  ;;  %391 = vst.msk [vmem:[#allocation3 + $0x60] sm:$0xff] %vm248_vm0, %v375_v59  ;;  %1360 = vst.msk [vmem:[#allocation3 + $0x78] sm:$0xff] %vm248_vm0, %v1344_v2  ;;  %v1078_v2 = vld [vmem:[#allocation2 + $0x1a0] sm:$0xff] }
  0x80   : > { %733 = vrot.lane.b32.xlu0 %v1083_v28, %s2279_s7 }
  0x83   : > { %612 = vrot.lane.b32.xlu1 %v957_v37, %s2278_s6  ;;  %v466_v19 = vpop.permute.xlu0 %465  ;;  %v380_v37 = vpack.c.bf16 %v360_v36, %v359_v35  ;;  %v1204_v36 = vld [vmem:[#allocation2 + $0x181] sm:$0xff] }
  0x84   : > { %862 = vrot.lane.b32.xlu0 %v1212_v39, %s2281_s9  ;;  %514 = vst.msk [vmem:[#allocation3] sm:$0xff] %vm513_vm2, %v466_v19  ;;  %v1220_v19 = vpack.c.bf16 %v1201_v17, %v1200_v15 }
  0x85   : > { %396 = vst.msk [vmem:[#allocation3 + $0xb0] sm:$0xff] %vm248_vm0, %v380_v37  ;;  %v1205_v37 = vld [vmem:[#allocation2 + $0x189] sm:$0xff] }
  0x87   : > { %741 = vrot.lane.b32.xlu1 %v1087_v47, %s2279_s7  ;;  %v595_v20 = vpop.permute.xlu0 %594 }
  0x88   : > { %991 = vrot.lane.b32.xlu0 %v2490_v5, %s2280_s8  ;;  %643 = vst.msk [vmem:[#allocation3] sm:$0xff] %vm642_vm3, %v595_v20 }
  0x8b   : > { %870 = vrot.lane.b32.xlu1 %v1216_v51, %s2281_s9 }
  0x8c   : > { %1121 = vrot.lane.b32.xlu0 %v1084_v61, %s2283_s11 }
  0x8f   : > { %999 = vrot.lane.b32.xlu1 %v2492_v10, %s2280_s8 }
  0x90   : > { %1250 = vrot.lane.b32.xlu0 %v2673_v9, %s2282_s10 }
  0x93   : > { %1129 = vrot.lane.b32.xlu1 %v1088_v14, %s2283_s11 }
  0x94   : > { %477 = vrot.lane.b32.xlu0 %v1212_v39, %s2277_s29 }
  0x97   : > { %1258 = vrot.lane.b32.xlu1 %v2681_v18, %s2282_s10 }
  0x98   : > { %606 = vrot.lane.b32.xlu0 %v2490_v5, %s2278_s6 }
  0x9b   : > { %485 = vrot.lane.b32.xlu1 %v1216_v51, %s2277_s29 }
  0x9c   : > { %735 = vrot.lane.b32.xlu0 %v1084_v61, %s2279_s7 }
  0x9d   : > { %v724_v26 = vpop.permute.xlu1 %723 }
  0x9e   : > { %772 = vst.msk [vmem:[#allocation3] sm:$0xff] %vm771_vm4, %v724_v26  ;;  %v982_v28 = vpop.permute.xlu0 %981 }
  0x9f   : > { %614 = vrot.lane.b32.xlu1 %v2492_v10, %s2278_s6 }
  0xa0   : > { %864 = vrot.lane.b32.xlu0 %v2673_v9, %s2281_s9 }
  0xa1   : > { %v853_v5 = vpop.permute.xlu1 %852 }
  0xa2   : > { %901 = vst.msk [vmem:[#allocation3] sm:$0xff] %vm900_vm5, %v853_v5  ;;  %v1241_v29 = vpop.permute.xlu0 %1240 }
  0xa3   : > { %743 = vrot.lane.b32.xlu1 %v1088_v14, %s2279_s7  ;;  %1030 = vst.msk [vmem:[#allocation3] sm:$0xff] %vm1029_vm6, %v982_v28 }
  0xa4   : > { %993 = vrot.lane.b32.xlu0 %v2517_v21, %s2280_s8 }
  0xa5   : > { %v1112_v10 = vpop.permute.xlu1 %1111 }
  0xa6   : > { %1160 = vst.msk [vmem:[#allocation3] sm:$0xff] %vm1159_vm7, %v1112_v10  ;;  %v597_v33 = vpop.permute.xlu0 %596 }
  0xa7   : > { %1289 = vst.msk [vmem:[#allocation3] sm:$0xff] %vm1288_vm8, %v1241_v29  ;;  %872 = vrot.lane.b32.xlu1 %v2681_v18, %s2281_s9 }
  0xa8   : > { %1123 = vrot.lane.b32.xlu0 %v2522_v24, %s2283_s11 }
  0xa9   : > { %v468_v38 = vpop.permute.xlu1 %467 }
  0xaa   : > { %515 = vst.msk [vmem:[#allocation3 + $0x10] sm:$0xff] %vm513_vm2, %v468_v38  ;;  %v855_v39 = vpop.permute.xlu0 %854  ;;  %v1380_v38 = vld [vmem:[#allocation3 + $0x58] sm:$0xff] }
  0xab   : > { %644 = vst.msk [vmem:[#allocation3 + $0x10] sm:$0xff] %vm642_vm3, %v597_v33  ;;  %1001 = vrot.lane.b32.xlu1 %v2542_v34, %s2280_s8 }
  0xac   : > { %1252 = vrot.lane.b32.xlu0 %v2607_v3, %s2282_s10 }
  0xad   : > { %v726_v44 = vpop.permute.xlu1 %725 }
  0xae   : > { %773 = vst.msk [vmem:[#allocation3 + $0x10] sm:$0xff] %vm771_vm4, %v726_v44  ;;  %v1369_v47 = vld [vmem:[#allocation3] sm:$0xff]  ;;  %v1114_v48 = vpop.permute.xlu0 %1113  ;;  %v1076_v44 = vld [vmem:[#allocation2 + $0x188] sm:$0xff] }
  0xaf   : > { %902 = vst.msk [vmem:[#allocation3 + $0x10] sm:$0xff] %vm900_vm5, %v855_v39  ;;  %1554 = vmatmul.mubr.bf16.vlgmr.msra.gmra.mrb[0].mxu0 %v1369_v47  ;;  %1131 = vrot.lane.b32.xlu1 %v2561_v41, %s2283_s11 }
  0xb0   : > { %479 = vrot.lane.b32.xlu0 %v2673_v9, %s2277_s29  ;;  %2140 = vmatprep.mubr.msk.bf16.mxu0 %vm248_vm0, %v1372_v45 }
  0xb1   : > { %v984_v50 = vpop.permute.xlu1 %983 }
  0xb2   : > { %1031 = vst.msk [vmem:[#allocation3 + $0x10] sm:$0xff] %vm1029_vm6, %v984_v50  ;;  %v470_v51 = vpop.permute.xlu0 %469 }
  0xb3   : > { %1161 = vst.msk [vmem:[#allocation3 + $0x10] sm:$0xff] %vm1159_vm7, %v1114_v48  ;;  %1260 = vrot.lane.b32.xlu1 %v1218_v49, %s2282_s10  ;;  %v1093_v48 = vpack.c.bf16 %v1076_v44, %v1075_v42 }
  0xb4   : > { %516 = vst.msk [vmem:[#allocation3 + $0x20] sm:$0xff] %vm513_vm2, %v470_v51  ;;  %608 = vrot.lane.b32.xlu0 %v2517_v21, %s2278_s6  ;;  %v1374_v21 = vld [vmem:[#allocation3 + $0x28] sm:$0xff] }
  0xb5   : > { %v1243_v52 = vpop.permute.xlu1 %1242 }
  0xb6   : > { %1290 = vst.msk [vmem:[#allocation3 + $0x10] sm:$0xff] %vm1288_vm8, %v1243_v52  ;;  %v728_v54 = vpop.permute.xlu0 %727  ;;  %v1335_v52 = vld [vmem:[#allocation2 + $0x19a] sm:$0xff] }
  0xb7   : > { %487 = vrot.lane.b32.xlu1 %v2681_v18, %s2277_s29 }
  0xb8   : > { %737 = vrot.lane.b32.xlu0 %v2522_v24, %s2279_s7 }
  0xb9   : > { %v599_v60 = vpop.permute.xlu1 %598 }
  0xba   : > { %645 = vst.msk [vmem:[#allocation3 + $0x20] sm:$0xff] %vm642_vm3, %v599_v60  ;;  %v986_v59 = vpop.permute.xlu0 %985  ;;  %v1077_v60 = vld [vmem:[#allocation2 + $0x198] sm:$0xff] }
  0xbb   : > { %774 = vst.msk [vmem:[#allocation3 + $0x20] sm:$0xff] %vm771_vm4, %v728_v54  ;;  %616 = vrot.lane.b32.xlu1 %v2542_v34, %s2278_s6  ;;  %v1336_v54 = vld [vmem:[#allocation2 + $0x1a2] sm:$0xff] }
  0xbc   : > { %866 = vrot.lane.b32.xlu0 %v2607_v3, %s2281_s9  ;;  %v1352_v56 = vpack.c.bf16 %v1336_v54, %v1335_v52 }
  0xbd   : > { %v857_v61 = vpop.permute.xlu1 %856  ;;  %v1371_v24 = vld [vmem:[#allocation3 + $0x10] sm:$0xff] }
  0xbe   : > { %903 = vst.msk [vmem:[#allocation3 + $0x20] sm:$0xff] %vm900_vm5, %v857_v61  ;;  %1562 = vmatmul.mubr.bf16.gmra.mrb[4].mxu0 %v1371_v24  ;;  %v1245_v63 = vpop.permute.xlu0 %1244 }
  0xbf   : > { %1032 = vst.msk [vmem:[#allocation3 + $0x20] sm:$0xff] %vm1029_vm6, %v986_v59  ;;  %745 = vrot.lane.b32.xlu1 %v2561_v41, %s2279_s7  ;;  %2141 = vmatprep.mubr.msk.bf16.mxu0 %vm248_vm0, %v1374_v21  ;;  %v1094_v21 = vpack.c.bf16 %v1078_v2, %v1077_v60 }
  0xc0   : > { %995 = vrot.lane.b32.xlu0 %v2613_v7, %s2280_s8  ;;  %v1198_v7 = vld [vmem:[#allocation2 + $0x139] sm:$0xff]  ;;  %1368 = vst.msk [vmem:[#allocation3 + $0xf8] sm:$0xff] %vm248_vm0, %v1352_v56 }
  0xc1   : > { %v1116_v34 = vpop.permute.xlu1 %1115  ;;  %v1219_v11 = vpack.c.bf16 %v1199_v4, %v1198_v7 }
  0xc2   : > { %1162 = vst.msk [vmem:[#allocation3 + $0x20] sm:$0xff] %vm1159_vm7, %v1116_v34  ;;  %v601_v3 = vpop.permute.xlu0 %600 }
  0xc3   : > { %1291 = vst.msk [vmem:[#allocation3 + $0x20] sm:$0xff] %vm1288_vm8, %v1245_v63  ;;  %874 = vrot.lane.b32.xlu1 %v1218_v49, %s2281_s9  ;;  %v1207_v63 = vld [vmem:[#allocation2 + $0x1a1] sm:$0xff] }
  0xc4   : > { %1125 = vrot.lane.b32.xlu0 %v2622_v62, %s2283_s11 }
  0xc5   : > { %v472_v0 = vpop.permute.xlu1 %471 }
  0xc6   : > { %517 = vst.msk [vmem:[#allocation3 + $0x30] sm:$0xff] %vm513_vm2, %v472_v0  ;;  %v859_v41 = vpop.permute.xlu0 %858 }
  0xc7   : > { %646 = vst.msk [vmem:[#allocation3 + $0x30] sm:$0xff] %vm642_vm3, %v601_v3  ;;  %1003 = vrot.lane.b32.xlu1 %v2564_v43, %s2280_s8 }
  0xc8   : > { %1254 = vrot.lane.b32.xlu0 %v2632_v25, %s2282_s10 }
  0xc9   : > { %v730_v6 = vpop.permute.xlu1 %729 }
  0xca   : > { %775 = vst.msk [vmem:[#allocation3 + $0x30] sm:$0xff] %vm771_vm4, %v730_v6  ;;  %v1118_v9 = vpop.permute.xlu0 %1117  ;;  %v1373_v62 = vld [vmem:[#allocation3 + $0x20] sm:$0xff]  ;;  %v1382_v6 = vld [vmem:[#allocation3 + $0x68] sm:$0xff] }
  0xcb   : > { %904 = vst.msk [vmem:[#allocation3 + $0x30] sm:$0xff] %vm900_vm5, %v859_v41  ;;  %1133 = vrot.lane.b32.xlu1 %v2568_v1, %s2283_s11  ;;  %1570 = vmatmul.mubr.bf16.gmra.mrb[8].mxu0 %v1373_v62 }
  0xcc   : > { %489 = vrot.lane.b32.xlu0 %v1218_v49, %s2277_s29  ;;  %2142 = vmatprep.mubr.msk.bf16.mxu0 %vm248_vm0, %v1376_v8 }
  0xcd   : > { %v988_v25 = vpop.permute.xlu1 %987 }
  0xce   : > { %1033 = vst.msk [vmem:[#allocation3 + $0x30] sm:$0xff] %vm1029_vm6, %v988_v25  ;;  %v474_v12 = vpop.permute.xlu0 %473 }
  0xcf   : > { %1163 = vst.msk [vmem:[#allocation3 + $0x30] sm:$0xff] %vm1159_vm7, %v1118_v9  ;;  %1262 = vrot.lane.b32.xlu1 %v1219_v11, %s2282_s10 }
  0xd0   : > { %518 = vst.msk [vmem:[#allocation3 + $0x40] sm:$0xff] %vm513_vm2, %v474_v12  ;;  %747 = vrot.lane.b32.xlu0 %v2568_v1, %s2279_s7  ;;  %v1378_v1 = vld [vmem:[#allocation3 + $0x48] sm:$0xff] }
  0xd1   : > { %v1247_v14 = vpop.permute.xlu1 %1246 }
  0xd2   : > { %1292 = vst.msk [vmem:[#allocation3 + $0x30] sm:$0xff] %vm1288_vm8, %v1247_v14  ;;  %v603_v18 = vpop.permute.xlu0 %602 }
  0xd3   : > { %647 = vst.msk [vmem:[#allocation3 + $0x40] sm:$0xff] %vm642_vm3, %v603_v18  ;;  %618 = vrot.lane.b32.xlu1 %v2564_v43, %s2278_s6 }
  0xd4   : > { %1005 = vrot.lane.b32.xlu0 %v2585_v53, %s2280_s8 }
  0xd5   : > { %v482_v20 = vpop.permute.xlu1 %481 }
  0xd6   : > { %522 = vst.msk [vmem:[#allocation3 + $0x80] sm:$0xff] %vm513_vm2, %v482_v20  ;;  %v732_v22 = vpop.permute.xlu0 %731 }
  0xd7   : > { %776 = vst.msk [vmem:[#allocation3 + $0x40] sm:$0xff] %vm771_vm4, %v732_v22  ;;  %876 = vrot.lane.b32.xlu1 %v1219_v11, %s2281_s9 }
  0xd8   : > { %1264 = vrot.lane.b32.xlu0 %v1220_v19, %s2282_s10 }
  0xd9   : > { %v611_v23 = vpop.permute.xlu1 %610  ;;  %v1375_v26 = vld [vmem:[#allocation3 + $0x30] sm:$0xff] }
  0xda   : > { %651 = vst.msk [vmem:[#allocation3 + $0x80] sm:$0xff] %vm642_vm3, %v611_v23  ;;  %1578 = vmatmul.mubr.bf16.gmra.mrb[12].mxu0 %v1375_v26  ;;  %v861_v43 = vpop.permute.xlu0 %860 }
  0xdb   : > { %905 = vst.msk [vmem:[#allocation3 + $0x40] sm:$0xff] %vm900_vm5, %v861_v43  ;;  %1135 = vrot.lane.b32.xlu1 %v2592_v58, %s2283_s11  ;;  %2143 = vmatprep.mubr.msk.bf16.mxu0 %vm248_vm0, %v1378_v1  ;;  %v1384_v43 = vld [vmem:[#allocation3 + $0x78] sm:$0xff] }
  0xdc   : > { %620 = vrot.lane.b32.xlu0 %v2585_v53, %s2278_s6  ;;  %v1202_v53 = vld [vmem:[#allocation2 + $0x169] sm:$0xff] }
  0xdd   : > { %v740_v27 = vpop.permute.xlu1 %739  ;;  %v1221_v10 = vpack.c.bf16 %v1203_v30, %v1202_v53  ;;  %v1392_v53 = vld [vmem:[#allocation3 + $0xb8] sm:$0xff] }
  0xde   : > { %780 = vst.msk [vmem:[#allocation3 + $0x80] sm:$0xff] %vm771_vm4, %v740_v27  ;;  %v990_v28 = vpop.permute.xlu0 %989 }
  0xdf   : > { %1034 = vst.msk [vmem:[#allocation3 + $0x40] sm:$0xff] %vm1029_vm6, %v990_v28  ;;  %491 = vrot.lane.b32.xlu1 %v1219_v11, %s2277_s29  ;;  %v1390_v11 = vld [vmem:[#allocation3 + $0xa8] sm:$0xff] }
  0xe0   : > { %878 = vrot.lane.b32.xlu0 %v1220_v19, %s2281_s9 }
  0xe1   : > { %v869_v5 = vpop.permute.xlu1 %868 }
  0xe2   : > { %909 = vst.msk [vmem:[#allocation3 + $0x80] sm:$0xff] %vm900_vm5, %v869_v5  ;;  %v1120_v29 = vpop.permute.xlu0 %1119 }
  0xe3   : > { %1164 = vst.msk [vmem:[#allocation3 + $0x40] sm:$0xff] %vm1159_vm7, %v1120_v29  ;;  %749 = vrot.lane.b32.xlu1 %v2592_v58, %s2279_s7 }
  0xe4   : > { %1137 = vrot.lane.b32.xlu0 %v2618_v16, %s2283_s11 }
  0xe5   : > { %v998_v31 = vpop.permute.xlu1 %997 }
  0xe6   : > { %1038 = vst.msk [vmem:[#allocation3 + $0x80] sm:$0xff] %vm1029_vm6, %v998_v31  ;;  %v1249_v32 = vpop.permute.xlu0 %1248 }
  0xe7   : > { %1293 = vst.msk [vmem:[#allocation3 + $0x40] sm:$0xff] %vm1288_vm8, %v1249_v32  ;;  %1007 = vrot.lane.b32.xlu1 %v2616_v13, %s2280_s8 }
  0xe8   : > { %493 = vrot.lane.b32.xlu0 %v1220_v19, %s2277_s29 }
  0xe9   : > { %v1128_v33 = vpop.permute.xlu1 %1127 }
  0xea   : > { %1168 = vst.msk [vmem:[#allocation3 + $0x80] sm:$0xff] %vm1159_vm7, %v1128_v33  ;;  %v476_v58 = vpop.permute.xlu0 %475 }
  0xeb   : > { %519 = vst.msk [vmem:[#allocation3 + $0x50] sm:$0xff] %vm513_vm2, %v476_v58  ;;  %1266 = vrot.lane.b32.xlu1 %v1221_v10, %s2282_s10 }
  0xec   : > { %751 = vrot.lane.b32.xlu0 %v2618_v16, %s2279_s7  ;;  %v1222_v16 = vpack.c.bf16 %v1205_v37, %v1204_v36 }
  0xed   : > { %v1257_v35 = vpop.permute.xlu1 %1256 }
  0xee   : > { %1297 = vst.msk [vmem:[#allocation3 + $0x80] sm:$0xff] %vm1288_vm8, %v1257_v35  ;;  %v605_v39 = vpop.permute.xlu0 %604  ;;  %v1377_v40 = vld [vmem:[#allocation3 + $0x40] sm:$0xff] }
  0xef   : > { %648 = vst.msk [vmem:[#allocation3 + $0x50] sm:$0xff] %vm642_vm3, %v605_v39  ;;  %622 = vrot.lane.b32.xlu1 %v2616_v13, %s2278_s6  ;;  %1586 = vmatmul.mubr.bf16.gmra.mrb[16].mxu0 %v1377_v40  ;;  %v1388_v13 = vld [vmem:[#allocation3 + $0x98] sm:$0xff] }
  0xf0   : > { %1009 = vrot.lane.b32.xlu0 %v2645_v46, %s2280_s8  ;;  %2144 = vmatprep.mubr.msk.bf16.mxu0 %vm248_vm0, %v1380_v38 }
  0xf1   : > { %v484_v45 = vpop.permute.xlu1 %483 }
  0xf2   : > { %523 = vst.msk [vmem:[#allocation3 + $0x90] sm:$0xff] %vm513_vm2, %v484_v45  ;;  %v734_v47 = vpop.permute.xlu0 %733 }
  0xf3   : > { %777 = vst.msk [vmem:[#allocation3 + $0x50] sm:$0xff] %vm771_vm4, %v734_v47  ;;  %880 = vrot.lane.b32.xlu1 %v1221_v10, %s2281_s9  ;;  %v1394_v47 = vld [vmem:[#allocation3 + $0xc8] sm:$0xff] }
  0xf4   : > { %1268 = vrot.lane.b32.xlu0 %v1222_v16, %s2282_s10 }
  0xf5   : > { %v613_v49 = vpop.permute.xlu1 %612  ;;  %v1385_v50 = vld [vmem:[#allocation3 + $0x80] sm:$0xff] }
  0xf6   : > { %652 = vst.msk [vmem:[#allocation3 + $0x90] sm:$0xff] %vm642_vm3, %v613_v49  ;;  %1618 = vmatmul.mubr.bf16.vlgmr.msra.gmra.mrb[0].mxu1 %v1385_v50  ;;  %v863_v51 = vpop.permute.xlu0 %862 }
  0xf7   : > { %906 = vst.msk [vmem:[#allocation3 + $0x50] sm:$0xff] %vm900_vm5, %v863_v51  ;;  %1139 = vrot.lane.b32.xlu1 %v1093_v48, %s2283_s11  ;;  %2148 = vmatprep.mubr.msk.bf16.mxu1 %vm248_vm0, %v1388_v13 }
  0xf8   : > { %624 = vrot.lane.b32.xlu0 %v2645_v46, %s2278_s6  ;;  %v1206_v46 = vld [vmem:[#allocation2 + $0x199] sm:$0xff] }
  0xf9   : > { %v742_v57 = vpop.permute.xlu1 %741  ;;  %v1223_v0 = vpack.c.bf16 %v1207_v63, %v1206_v46 }
  0xfa   : > { %781 = vst.msk [vmem:[#allocation3 + $0x90] sm:$0xff] %vm771_vm4, %v742_v57  ;;  %v992_v59 = vpop.permute.xlu0 %991  ;;  %v1396_v57 = vld [vmem:[#allocation3 + $0xd8] sm:$0xff] }
  0xfb   : > { %1035 = vst.msk [vmem:[#allocation3 + $0x50] sm:$0xff] %vm1029_vm6, %v992_v59  ;;  %495 = vrot.lane.b32.xlu1 %v1221_v10, %s2277_s29 }
  0xfc   : > { %882 = vrot.lane.b32.xlu0 %v1222_v16, %s2281_s9 }
  0xfd   : > { %v871_v61 = vpop.permute.xlu1 %870 }
  0xfe   : > { %910 = vst.msk [vmem:[#allocation3 + $0x90] sm:$0xff] %vm900_vm5, %v871_v61  ;;  %v1122_v24 = vpop.permute.xlu0 %1121 }
  0xff   : > { %1165 = vst.msk [vmem:[#allocation3 + $0x50] sm:$0xff] %vm1159_vm7, %v1122_v24  ;;  %753 = vrot.lane.b32.xlu1 %v1093_v48, %s2279_s7 }
 0x100   : > { %1141 = vrot.lane.b32.xlu0 %v1094_v21, %s2283_s11 }
 0x101   : > { %v1000_v34 = vpop.permute.xlu1 %999 }
 0x102   : > { %1039 = vst.msk [vmem:[#allocation3 + $0x90] sm:$0xff] %vm1029_vm6, %v1000_v34  ;;  %v1251_v3 = vpop.permute.xlu0 %1250  ;;  %v1398_v34 = vld [vmem:[#allocation3 + $0xe8] sm:$0xff] }
 0x103   : > { %1294 = vst.msk [vmem:[#allocation3 + $0x50] sm:$0xff] %vm1288_vm8, %v1251_v3  ;;  %1011 = vrot.lane.b32.xlu1 %v2661_v55, %s2280_s8 }
 0x105   : > { %v1130_v41 = vpop.permute.xlu1 %1129 }
 0x106   : > { %1169 = vst.msk [vmem:[#allocation3 + $0x90] sm:$0xff] %vm1159_vm7, %v1130_v41  ;;  %v478_v7 = vpop.permute.xlu0 %477 }
 0x107   : > { %520 = vst.msk [vmem:[#allocation3 + $0x60] sm:$0xff] %vm513_vm2, %v478_v7  ;;  %1270 = vrot.lane.b32.xlu1 %v1223_v0, %s2282_s10 }
 0x109   : > { %v1259_v4 = vpop.permute.xlu1 %1258 }
 0x10a   : > { %1298 = vst.msk [vmem:[#allocation3 + $0x90] sm:$0xff] %vm1288_vm8, %v1259_v4  ;;  %v607_v8 = vpop.permute.xlu0 %606  ;;  %v1379_v9 = vld [vmem:[#allocation3 + $0x50] sm:$0xff] }
 0x10b   : > { %649 = vst.msk [vmem:[#allocation3 + $0x60] sm:$0xff] %vm642_vm3, %v607_v8  ;;  %1594 = vmatmul.mubr.bf16.gmra.mrb[20].mxu0 %v1379_v9 }
 0x10c   : > { %2145 = vmatprep.mubr.msk.bf16.mxu0 %vm248_vm0, %v1382_v6 }
 0x10d   : > { %v486_v55 = vpop.permute.xlu1 %485 }
 0x10e   : > { %524 = vst.msk [vmem:[#allocation3 + $0xa0] sm:$0xff] %vm513_vm2, %v486_v55  ;;  %v736_v62 = vpop.permute.xlu0 %735  ;;  %v1400_v55 = vld [vmem:[#allocation3 + $0xf8] sm:$0xff] }
 0x10f   : > { %778 = vst.msk [vmem:[#allocation3 + $0x60] sm:$0xff] %vm771_vm4, %v736_v62 }
 0x111   : > { %v615_v25 = vpop.permute.xlu1 %614  ;;  %v1387_v12 = vld [vmem:[#allocation3 + $0x90] sm:$0xff] }
 0x112   : > { %653 = vst.msk [vmem:[#allocation3 + $0xa0] sm:$0xff] %vm642_vm3, %v615_v25  ;;  %1626 = vmatmul.mubr.bf16.gmra.mrb[4].mxu1 %v1387_v12  ;;  %v865_v14 = vpop.permute.xlu0 %864 }
 0x113   : > { %907 = vst.msk [vmem:[#allocation3 + $0x60] sm:$0xff] %vm900_vm5, %v865_v14  ;;  %2149 = vmatprep.mubr.msk.bf16.mxu1 %vm248_vm0, %v1390_v11 }
 0x115   : > { %v744_v15 = vpop.permute.xlu1 %743 }
 0x116   : > { %782 = vst.msk [vmem:[#allocation3 + $0xa0] sm:$0xff] %vm771_vm4, %v744_v15  ;;  %v994_v17 = vpop.permute.xlu0 %993 }
 0x117   : > { %1036 = vst.msk [vmem:[#allocation3 + $0x60] sm:$0xff] %vm1029_vm6, %v994_v17 }
 0x119   : > { %v873_v18 = vpop.permute.xlu1 %872 }
 0x11a   : > { %911 = vst.msk [vmem:[#allocation3 + $0xa0] sm:$0xff] %vm900_vm5, %v873_v18  ;;  %v1124_v19 = vpop.permute.xlu0 %1123 }
 0x11b   : > { %1166 = vst.msk [vmem:[#allocation3 + $0x60] sm:$0xff] %vm1159_vm7, %v1124_v19 }
 0x11d   : > { %v1002_v20 = vpop.permute.xlu1 %1001 }
 0x11e   : > { %1040 = vst.msk [vmem:[#allocation3 + $0xa0] sm:$0xff] %vm1029_vm6, %v1002_v20  ;;  %v1253_v22 = vpop.permute.xlu0 %1252 }
 0x11f   : > { %1295 = vst.msk [vmem:[#allocation3 + $0x60] sm:$0xff] %vm1288_vm8, %v1253_v22 }
 0x121   : > { %v1132_v1 = vpop.permute.xlu1 %1131 }
 0x122   : > { %1170 = vst.msk [vmem:[#allocation3 + $0xa0] sm:$0xff] %vm1159_vm7, %v1132_v1  ;;  %v480_v23 = vpop.permute.xlu0 %479 }
 0x123   : > { %521 = vst.msk [vmem:[#allocation3 + $0x70] sm:$0xff] %vm513_vm2, %v480_v23 }
 0x125   : > { %v1261_v26 = vpop.permute.xlu1 %1260 }
 0x126   : > { %1299 = vst.msk [vmem:[#allocation3 + $0xa0] sm:$0xff] %vm1288_vm8, %v1261_v26  ;;  %v609_v27 = vpop.permute.xlu0 %608  ;;  %v1381_v28 = vld [vmem:[#allocation3 + $0x60] sm:$0xff] }
 0x127   : > { %650 = vst.msk [vmem:[#allocation3 + $0x70] sm:$0xff] %vm642_vm3, %v609_v27  ;;  %1602 = vmatmul.mubr.bf16.gmra.mrb[24].mxu0 %v1381_v28 }
 0x128   : > { %2146 = vmatprep.mubr.msk.bf16.mxu0 %vm248_vm0, %v1384_v43 }
 0x129   : > { %v488_v5 = vpop.permute.xlu1 %487 }
 0x12a   : > { %525 = vst.msk [vmem:[#allocation3 + $0xb0] sm:$0xff] %vm513_vm2, %v488_v5  ;;  %v738_v29 = vpop.permute.xlu0 %737 }
 0x12b   : > { %779 = vst.msk [vmem:[#allocation3 + $0x70] sm:$0xff] %vm771_vm4, %v738_v29 }
 0x12d   : > { %v617_v30 = vpop.permute.xlu1 %616  ;;  %v1389_v31 = vld [vmem:[#allocation3 + $0xa0] sm:$0xff] }
 0x12e   : > { %654 = vst.msk [vmem:[#allocation3 + $0xb0] sm:$0xff] %vm642_vm3, %v617_v30  ;;  %1634 = vmatmul.mubr.bf16.gmra.mrb[8].mxu1 %v1389_v31  ;;  %v867_v32 = vpop.permute.xlu0 %866 }
 0x12f   : > { %908 = vst.msk [vmem:[#allocation3 + $0x70] sm:$0xff] %vm900_vm5, %v867_v32  ;;  %2150 = vmatprep.mubr.msk.bf16.mxu1 %vm248_vm0, %v1392_v53 }
 0x131   : > { %v746_v10 = vpop.permute.xlu1 %745 }
 0x132   : > { %783 = vst.msk [vmem:[#allocation3 + $0xb0] sm:$0xff] %vm771_vm4, %v746_v10  ;;  %v996_v33 = vpop.permute.xlu0 %995 }
 0x133   : > { %1037 = vst.msk [vmem:[#allocation3 + $0x70] sm:$0xff] %vm1029_vm6, %v996_v33 }
 0x135   : > { %v875_v58 = vpop.permute.xlu1 %874 }
 0x136   : > { %912 = vst.msk [vmem:[#allocation3 + $0xb0] sm:$0xff] %vm900_vm5, %v875_v58  ;;  %v1126_v35 = vpop.permute.xlu0 %1125 }
 0x137   : > { %1167 = vst.msk [vmem:[#allocation3 + $0x70] sm:$0xff] %vm1159_vm7, %v1126_v35 }
 0x139   : > { %v1004_v36 = vpop.permute.xlu1 %1003 }
 0x13a   : > { %1041 = vst.msk [vmem:[#allocation3 + $0xb0] sm:$0xff] %vm1029_vm6, %v1004_v36  ;;  %v1255_v37 = vpop.permute.xlu0 %1254 }
 0x13b   : > { %1296 = vst.msk [vmem:[#allocation3 + $0x70] sm:$0xff] %vm1288_vm8, %v1255_v37 }
 0x13d   : > { %v1134_v38 = vpop.permute.xlu1 %1133 }
 0x13e   : > { %1171 = vst.msk [vmem:[#allocation3 + $0xb0] sm:$0xff] %vm1159_vm7, %v1134_v38  ;;  %v490_v39 = vpop.permute.xlu0 %489 }
 0x13f   : > { %526 = vst.msk [vmem:[#allocation3 + $0xc0] sm:$0xff] %vm513_vm2, %v490_v39 }
 0x141   : > { %v1263_v40 = vpop.permute.xlu1 %1262 }
 0x142   : > { %1300 = vst.msk [vmem:[#allocation3 + $0xb0] sm:$0xff] %vm1288_vm8, %v1263_v40  ;;  %v1383_v42 = vld [vmem:[#allocation3 + $0x70] sm:$0xff]  ;;  %v748_v44 = vpop.permute.xlu0 %747 }
 0x143   : > { %1610 = vmatmul.mubr.bf16.gmra.mrb[28].mxu0 %v1383_v42 }
 0x145   : > { %v619_v16 = vpop.permute.xlu1 %618 }
 0x146   : > { %655 = vst.msk [vmem:[#allocation3 + $0xc0] sm:$0xff] %vm642_vm3, %v619_v16  ;;  %v1006_v45 = vpop.permute.xlu0 %1005 }
 0x147   : > { %784 = vst.msk [vmem:[#allocation3 + $0xc0] sm:$0xff] %vm771_vm4, %v748_v44 }
 0x149   : > { %v877_v48 = vpop.permute.xlu1 %876  ;;  %v1391_v13 = vld [vmem:[#allocation3 + $0xb0] sm:$0xff] }
 0x14a   : > { %913 = vst.msk [vmem:[#allocation3 + $0xc0] sm:$0xff] %vm900_vm5, %v877_v48  ;;  %1642 = vmatmul.mubr.bf16.gmra.mrb[12].mxu1 %v1391_v13  ;;  %v1265_v49 = vpop.permute.xlu0 %1264 }
 0x14b   : > { %1042 = vst.msk [vmem:[#allocation3 + $0xc0] sm:$0xff] %vm1029_vm6, %v1006_v45  ;;  %2151 = vmatprep.mubr.msk.bf16.mxu1 %vm248_vm0, %v1394_v47 }
 0x14d   : > { %v1136_v50 = vpop.permute.xlu1 %1135 }
 0x14e   : > { %1172 = vst.msk [vmem:[#allocation3 + $0xc0] sm:$0xff] %vm1159_vm7, %v1136_v50  ;;  %v621_v51 = vpop.permute.xlu0 %620 }
 0x14f   : > { %1301 = vst.msk [vmem:[#allocation3 + $0xc0] sm:$0xff] %vm1288_vm8, %v1265_v49 }
 0x151   : > { %v492_v52 = vpop.permute.xlu1 %491 }
 0x152   : > { %527 = vst.msk [vmem:[#allocation3 + $0xd0] sm:$0xff] %vm513_vm2, %v492_v52  ;;  %v879_v54 = vpop.permute.xlu0 %878 }
 0x153   : > { %656 = vst.msk [vmem:[#allocation3 + $0xd0] sm:$0xff] %vm642_vm3, %v621_v51 }
 0x155   : > { %v750_v56 = vpop.permute.xlu1 %749 }
 0x156   : > { %785 = vst.msk [vmem:[#allocation3 + $0xd0] sm:$0xff] %vm771_vm4, %v750_v56  ;;  %v1393_v60 = vld [vmem:[#allocation3 + $0xc0] sm:$0xff]  ;;  %v1138_v2 = vpop.permute.xlu0 %1137 }
 0x157   : > { %914 = vst.msk [vmem:[#allocation3 + $0xd0] sm:$0xff] %vm900_vm5, %v879_v54  ;;  %1650 = vmatmul.mubr.bf16.gmra.mrb[16].mxu1 %v1393_v60 }
 0x158   : > { %2152 = vmatprep.mubr.msk.bf16.mxu1 %vm248_vm0, %v1396_v57 }
 0x159   : > { %v1008_v59 = vpop.permute.xlu1 %1007 }
 0x15a   : > { %1043 = vst.msk [vmem:[#allocation3 + $0xd0] sm:$0xff] %vm1029_vm6, %v1008_v59  ;;  %v494_v21 = vpop.permute.xlu0 %493 }
 0x15b   : > { %1173 = vst.msk [vmem:[#allocation3 + $0xd0] sm:$0xff] %vm1159_vm7, %v1138_v2 }
 0x15c   : > { %528 = vst.msk [vmem:[#allocation3 + $0xe0] sm:$0xff] %vm513_vm2, %v494_v21 }
 0x15d   : > { %v1267_v61 = vpop.permute.xlu1 %1266 }
 0x15e   : > { %1302 = vst.msk [vmem:[#allocation3 + $0xd0] sm:$0xff] %vm1288_vm8, %v1267_v61  ;;  %v752_v24 = vpop.permute.xlu0 %751 }
 0x161   : > { %v623_v46 = vpop.permute.xlu1 %622 }
 0x162   : > { %657 = vst.msk [vmem:[#allocation3 + $0xe0] sm:$0xff] %vm642_vm3, %v623_v46  ;;  %v1010_v63 = vpop.permute.xlu0 %1009 }
 0x163   : > { %786 = vst.msk [vmem:[#allocation3 + $0xe0] sm:$0xff] %vm771_vm4, %v752_v24 }
 0x165   : > { %v881_v3 = vpop.permute.xlu1 %880  ;;  %v1395_v0 = vld [vmem:[#allocation3 + $0xd0] sm:$0xff] }
 0x166   : > { %915 = vst.msk [vmem:[#allocation3 + $0xe0] sm:$0xff] %vm900_vm5, %v881_v3  ;;  %1658 = vmatmul.mubr.bf16.gmra.mrb[20].mxu1 %v1395_v0  ;;  %v1269_v41 = vpop.permute.xlu0 %1268 }
 0x167   : > { %1044 = vst.msk [vmem:[#allocation3 + $0xe0] sm:$0xff] %vm1029_vm6, %v1010_v63  ;;  %2153 = vmatprep.mubr.msk.bf16.mxu1 %vm248_vm0, %v1398_v34 }
 0x169   : > { %v1140_v7 = vpop.permute.xlu1 %1139 }
 0x16a   : > { %1174 = vst.msk [vmem:[#allocation3 + $0xe0] sm:$0xff] %vm1159_vm7, %v1140_v7  ;;  %v625_v4 = vpop.permute.xlu0 %624 }
 0x16b   : > { %1303 = vst.msk [vmem:[#allocation3 + $0xe0] sm:$0xff] %vm1288_vm8, %v1269_v41 }
 0x16d   : > { %v496_v6 = vpop.permute.xlu1 %495 }
 0x16e   : > { %529 = vst.msk [vmem:[#allocation3 + $0xf0] sm:$0xff] %vm513_vm2, %v496_v6  ;;  %v883_v8 = vpop.permute.xlu0 %882 }
 0x16f   : > { %658 = vst.msk [vmem:[#allocation3 + $0xf0] sm:$0xff] %vm642_vm3, %v625_v4 }
 0x171   : > { %v754_v9 = vpop.permute.xlu1 %753 }
 0x172   : > { %787 = vst.msk [vmem:[#allocation3 + $0xf0] sm:$0xff] %vm771_vm4, %v754_v9  ;;  %v1397_v62 = vld [vmem:[#allocation3 + $0xe0] sm:$0xff]  ;;  %v1142_v11 = vpop.permute.xlu0 %1141 }
 0x173   : > { %1666 = vmatmul.mubr.bf16.gmra.mrb[24].mxu1 %v1397_v62  ;;  %916 = vst.msk [vmem:[#allocation3 + $0xf0] sm:$0xff] %vm900_vm5, %v883_v8 }
 0x174   : > { %2154 = vmatprep.mubr.msk.bf16.mxu1 %vm248_vm0, %v1400_v55 }
 0x175   : > { %v1012_v25 = vpop.permute.xlu1 %1011 }
 0x176   : > { %1045 = vst.msk [vmem:[#allocation3 + $0xf0] sm:$0xff] %vm1029_vm6, %v1012_v25 }
 0x177   : > { %1175 = vst.msk [vmem:[#allocation3 + $0xf0] sm:$0xff] %vm1159_vm7, %v1142_v11 }
 0x179   : > { %v1271_v12 = vpop.permute.xlu1 %1270 }
 0x17a   : > { %1304 = vst.msk [vmem:[#allocation3 + $0xf0] sm:$0xff] %vm1288_vm8, %v1271_v12 }
 0x181   : > { %v1399_v14 = vld [vmem:[#allocation3 + $0xf0] sm:$0xff] }
 0x182   : > { %v1555_v15 = vpop.f32.mrb[0].mxu0  ;;  %1674 = vmatmul.mubr.bf16.gmra.mrb[28].mxu1 %v1399_v14 }
 0x183   : > { %v1682_v17 = vsel %vm248_vm0, %v1555_v15, 0.0  ;;  %v1753_v18 = vmul.f32 %v1555_v15, %v1555_v15  ;;  %v2191_v19 = vpack.c.bf16 %v1555_v15, %v1555_v15  ;;  %v1557_v20 = vpop.f32.mrb[1].mxu0 }
 0x184   : > { %v1558_v22 = vpop.f32.mrb[2].mxu0 }
 0x185   : > { %v1785_v1 = vsel %vm248_vm0, %v1753_v18, 0.0  ;;  %1984 = vst.msk [vmem:[%s2910_s25] sm:$0xf] %vm1983_vm9, %v2191_v19  ;;  %v1683_v23 = vsel %vm248_vm0, %v1558_v22, 0.0  ;;  %v1754_v26 = vmul.f32 %v1558_v22, %v1558_v22  ;;  %v2192_v43 = vpack.c.bf16 %v1558_v22, %v1558_v22  ;;  %v1560_v27 = vpop.f32.mrb[3].mxu0 }
 0x186   : > { %v1684_v28 = vadd.f32 %v1683_v23, %v1682_v17 }
 0x187   : > { %v1786_v5 = vsel %vm248_vm0, %v1754_v26, 0.0  ;;  %1985 = vst.msk [vmem:[%s2910_s25 + $0x4] sm:$0xf] %vm1983_vm9, %v2192_v43 }
 0x188   : > { %v1787_v29 = vadd.f32 %v1786_v5, %v1785_v1 }
 0x191   : > { %v1563_v53 = vpop.f32.mrb[4].mxu0 }
 0x192   : > { %v1685_v30 = vsel %vm248_vm0, %v1563_v53, 0.0  ;;  %v1755_v31 = vmul.f32 %v1563_v53, %v1563_v53  ;;  %v2193_v32 = vpack.c.bf16 %v1563_v53, %v1563_v53  ;;  %v1565_v10 = vpop.f32.mrb[5].mxu0 }
 0x193   : > { %v1686_v33 = vadd.f32 %v1685_v30, %v1684_v28  ;;  %v1566_v58 = vpop.f32.mrb[6].mxu0 }
 0x194   : > { %v1788_v35 = vsel %vm248_vm0, %v1755_v31, 0.0  ;;  %1986 = vst.msk [vmem:[%s2910_s25 + $0x8] sm:$0xf] %vm1983_vm9, %v2193_v32  ;;  %v1687_v36 = vsel %vm248_vm0, %v1566_v58, 0.0  ;;  %v1756_v37 = vmul.f32 %v1566_v58, %v1566_v58  ;;  %v2194_v38 = vpack.c.bf16 %v1566_v58, %v1566_v58  ;;  %v1568_v39 = vpop.f32.mrb[7].mxu0 }
 0x195   : > { %v1789_v40 = vadd.f32 %v1788_v35, %v1787_v29  ;;  %v1688_v42 = vadd.f32 %v1687_v36, %v1686_v33 }
 0x196   : > { %v1790_v44 = vsel %vm248_vm0, %v1756_v37, 0.0  ;;  %1987 = vst.msk [vmem:[%s2910_s25 + $0xc] sm:$0xf] %vm1983_vm9, %v2194_v38 }
 0x197   : > { %v1791_v16 = vadd.f32 %v1790_v44, %v1789_v40 }
 0x19e   : > { %v1571_v45 = vpop.f32.mrb[8].mxu0 }
 0x19f   : > { %v1689_v47 = vsel %vm248_vm0, %v1571_v45, 0.0  ;;  %v1757_v48 = vmul.f32 %v1571_v45, %v1571_v45  ;;  %v2195_v13 = vpack.c.bf16 %v1571_v45, %v1571_v45  ;;  %v1573_v49 = vpop.f32.mrb[9].mxu0 }
 0x1a0   : > { %v1690_v50 = vadd.f32 %v1689_v47, %v1688_v42  ;;  %v1574_v51 = vpop.f32.mrb[10].mxu0 }
 0x1a1   : > { %v1792_v52 = vsel %vm248_vm0, %v1757_v48, 0.0  ;;  %1988 = vst.msk [vmem:[%s2910_s25 + $0x10] sm:$0xf] %vm1983_vm9, %v2195_v13  ;;  %v1691_v54 = vsel %vm248_vm0, %v1574_v51, 0.0  ;;  %v1758_v56 = vmul.f32 %v1574_v51, %v1574_v51  ;;  %v2196_v57 = vpack.c.bf16 %v1574_v51, %v1574_v51  ;;  %v1576_v60 = vpop.f32.mrb[11].mxu0 }
 0x1a2   : > { %v1793_v2 = vadd.f32 %v1792_v52, %v1791_v16  ;;  %v1692_v59 = vadd.f32 %v1691_v54, %v1690_v50 }
 0x1a3   : > { %v1794_v21 = vsel %vm248_vm0, %v1758_v56, 0.0  ;;  %1989 = vst.msk [vmem:[%s2910_s25 + $0x14] sm:$0xf] %vm1983_vm9, %v2196_v57 }
 0x1a4   : > { %v1795_v61 = vadd.f32 %v1794_v21, %v1793_v2 }
 0x1ad   : > { %v1579_v24 = vpop.f32.mrb[12].mxu0 }
 0x1ae   : > { %v1693_v46 = vsel %vm248_vm0, %v1579_v24, 0.0  ;;  %v1759_v63 = vmul.f32 %v1579_v24, %v1579_v24  ;;  %v2197_v34 = vpack.c.bf16 %v1579_v24, %v1579_v24  ;;  %v1581_v3 = vpop.f32.mrb[13].mxu0 }
 0x1af   : > { %v1694_v0 = vadd.f32 %v1693_v46, %v1692_v59  ;;  %v1582_v41 = vpop.f32.mrb[14].mxu0 }
 0x1b0   : > { %v1796_v7 = vsel %vm248_vm0, %v1759_v63, 0.0  ;;  %1990 = vst.msk [vmem:[%s2910_s25 + $0x18] sm:$0xf] %vm1983_vm9, %v2197_v34  ;;  %v1695_v4 = vsel %vm248_vm0, %v1582_v41, 0.0  ;;  %v1760_v6 = vmul.f32 %v1582_v41, %v1582_v41  ;;  %v2198_v8 = vpack.c.bf16 %v1582_v41, %v1582_v41  ;;  %v1584_v9 = vpop.f32.mrb[15].mxu0 }
 0x1b1   : > { %v1797_v55 = vadd.f32 %v1796_v7, %v1795_v61  ;;  %v1696_v62 = vadd.f32 %v1695_v4, %v1694_v0 }
 0x1b2   : > { %v1798_v11 = vsel %vm248_vm0, %v1760_v6, 0.0  ;;  %1991 = vst.msk [vmem:[%s2910_s25 + $0x1c] sm:$0xf] %vm1983_vm9, %v2198_v8 }
 0x1b3   : > { %v1799_v25 = vadd.f32 %v1798_v11, %v1797_v55 }
 0x1c2   : > { %v1587_v12 = vpop.f32.mrb[16].mxu0 }
 0x1c3   : > { %v1697_v14 = vsel %vm248_vm0, %v1587_v12, 0.0  ;;  %v1761_v15 = vmul.f32 %v1587_v12, %v1587_v12  ;;  %v2199_v17 = vpack.c.bf16 %v1587_v12, %v1587_v12  ;;  %v1589_v18 = vpop.f32.mrb[17].mxu0 }
 0x1c4   : > { %v1698_v19 = vadd.f32 %v1697_v14, %v1696_v62  ;;  %v1590_v20 = vpop.f32.mrb[18].mxu0 }
 0x1c5   : > { %v1800_v22 = vsel %vm248_vm0, %v1761_v15, 0.0  ;;  %1992 = vst.msk [vmem:[%s2910_s25 + $0x20] sm:$0xf] %vm1983_vm9, %v2199_v17  ;;  %v1699_v1 = vsel %vm248_vm0, %v1590_v20, 0.0  ;;  %v1762_v23 = vmul.f32 %v1590_v20, %v1590_v20  ;;  %v2200_v26 = vpack.c.bf16 %v1590_v20, %v1590_v20  ;;  %v1592_v43 = vpop.f32.mrb[19].mxu0 }
 0x1c6   : > { %v1801_v27 = vadd.f32 %v1800_v22, %v1799_v25  ;;  %v1700_v28 = vadd.f32 %v1699_v1, %v1698_v19 }
 0x1c7   : > { %v1802_v5 = vsel %vm248_vm0, %v1762_v23, 0.0  ;;  %1993 = vst.msk [vmem:[%s2910_s25 + $0x24] sm:$0xf] %vm1983_vm9, %v2200_v26 }
 0x1c8   : > { %v1803_v29 = vadd.f32 %v1802_v5, %v1801_v27 }
 0x1c9   : > { %v2952_v53 = vpop.f32.mrb[0].mxu1 }
 0x1ca   : > { %v2207_v30 = vpack.c.bf16 %v2952_v53, %v2952_v53  ;;  %v1621_v31 = vpop.f32.mrb[1].mxu1  ;;  %v1769_v22 = vmul.f32 %v2952_v53, %v2952_v53 }
 0x1cb   : > { %v2956_v32 = vpop.f32.mrb[2].mxu1  ;;  %v1713_v31 = vsel %vm248_vm0, %v2952_v53, 0.0 }
 0x1cc   : > { %2000 = vst.msk [vmem:[%s2910_s25 + $0x40] sm:$0xf] %vm1983_vm9, %v2207_v30  ;;  %v2208_v10 = vpack.c.bf16 %v2956_v32, %v2956_v32  ;;  %v1624_v33 = vpop.f32.mrb[3].mxu1 }
 0x1ce   : > { %2001 = vst.msk [vmem:[%s2910_s25 + $0x44] sm:$0xf] %vm1983_vm9, %v2208_v10  ;;  %v1770_v10 = vmul.f32 %v2956_v32, %v2956_v32 }
 0x1de   : > { %v1595_v58 = vpop.f32.mrb[20].mxu0 }
 0x1df   : > { %v1701_v35 = vsel %vm248_vm0, %v1595_v58, 0.0  ;;  %v1763_v36 = vmul.f32 %v1595_v58, %v1595_v58  ;;  %v2201_v37 = vpack.c.bf16 %v1595_v58, %v1595_v58  ;;  %v1597_v38 = vpop.f32.mrb[21].mxu0 }
 0x1e0   : > { %v1702_v39 = vadd.f32 %v1701_v35, %v1700_v28  ;;  %v1598_v40 = vpop.f32.mrb[22].mxu0 }
 0x1e1   : > { %v1804_v42 = vsel %vm248_vm0, %v1763_v36, 0.0  ;;  %1994 = vst.msk [vmem:[%s2910_s25 + $0x28] sm:$0xf] %vm1983_vm9, %v2201_v37  ;;  %v1703_v44 = vsel %vm248_vm0, %v1598_v40, 0.0  ;;  %v1764_v16 = vmul.f32 %v1598_v40, %v1598_v40  ;;  %v2202_v45 = vpack.c.bf16 %v1598_v40, %v1598_v40  ;;  %v1600_v47 = vpop.f32.mrb[23].mxu0 }
 0x1e2   : > { %v1805_v48 = vadd.f32 %v1804_v42, %v1803_v29  ;;  %v1704_v13 = vadd.f32 %v1703_v44, %v1702_v39  ;;  %v1816_v36 = vsel %vm248_vm0, %v1769_v22, 0.0  ;;  %v1715_v37 = vsel %vm248_vm0, %v2956_v32, 0.0 }
 0x1e3   : > { %v1806_v49 = vsel %vm248_vm0, %v1764_v16, 0.0  ;;  %1995 = vst.msk [vmem:[%s2910_s25 + $0x2c] sm:$0xf] %vm1983_vm9, %v2202_v45  ;;  %v1818_v44 = vsel %vm248_vm0, %v1770_v10, 0.0 }
 0x1e4   : > { %v1807_v50 = vadd.f32 %v1806_v49, %v1805_v48 }
 0x1e5   : > { %v2972_v51 = vpop.f32.mrb[4].mxu1 }
 0x1e6   : > { %v2209_v52 = vpack.c.bf16 %v2972_v51, %v2972_v51  ;;  %v1629_v54 = vpop.f32.mrb[5].mxu1  ;;  %v1771_v38 = vmul.f32 %v2972_v51, %v2972_v51  ;;  %v1717_v16 = vsel %vm248_vm0, %v2972_v51, 0.0 }
 0x1e7   : > { %v2976_v56 = vpop.f32.mrb[6].mxu1 }
 0x1e8   : > { %2002 = vst.msk [vmem:[%s2910_s25 + $0x48] sm:$0xf] %vm1983_vm9, %v2209_v52  ;;  %v2210_v57 = vpack.c.bf16 %v2976_v56, %v2976_v56  ;;  %v1632_v60 = vpop.f32.mrb[7].mxu1  ;;  %v1772_v45 = vmul.f32 %v2976_v56, %v2976_v56  ;;  %v1719_v52 = vsel %vm248_vm0, %v2976_v56, 0.0 }
 0x1ea   : > { %2003 = vst.msk [vmem:[%s2910_s25 + $0x4c] sm:$0xf] %vm1983_vm9, %v2210_v57 }
 0x1fa   : > { %v1603_v2 = vpop.f32.mrb[24].mxu0 }
 0x1fb   : > { %v1705_v59 = vsel %vm248_vm0, %v1603_v2, 0.0  ;;  %v1765_v21 = vmul.f32 %v1603_v2, %v1603_v2  ;;  %v2203_v61 = vpack.c.bf16 %v1603_v2, %v1603_v2  ;;  %v1605_v24 = vpop.f32.mrb[25].mxu0  ;;  %v1822_v2 = vsel %vm248_vm0, %v1772_v45, 0.0 }
 0x1fc   : > { %v1706_v46 = vadd.f32 %v1705_v59, %v1704_v13  ;;  %v1606_v63 = vpop.f32.mrb[26].mxu0 }
 0x1fd   : > { %v1808_v34 = vsel %vm248_vm0, %v1765_v21, 0.0  ;;  %1996 = vst.msk [vmem:[%s2910_s25 + $0x30] sm:$0xf] %vm1983_vm9, %v2203_v61  ;;  %v1707_v3 = vsel %vm248_vm0, %v1606_v63, 0.0  ;;  %v1766_v0 = vmul.f32 %v1606_v63, %v1606_v63  ;;  %v2204_v41 = vpack.c.bf16 %v1606_v63, %v1606_v63  ;;  %v1608_v7 = vpop.f32.mrb[27].mxu0 }
 0x1fe   : > { %v1809_v4 = vadd.f32 %v1808_v34, %v1807_v50  ;;  %v1708_v6 = vadd.f32 %v1707_v3, %v1706_v46  ;;  %v1820_v50 = vsel %vm248_vm0, %v1771_v38, 0.0 }
 0x1ff   : > { %v1810_v8 = vsel %vm248_vm0, %v1766_v0, 0.0  ;;  %1997 = vst.msk [vmem:[%s2910_s25 + $0x34] sm:$0xf] %vm1983_vm9, %v2204_v41 }
 0x200   : > { %v1811_v9 = vadd.f32 %v1810_v8, %v1809_v4 }
 0x201   : > { %v1635_v55 = vpop.f32.mrb[8].mxu1 }
 0x202   : > { %v2211_v62 = vpack.c.bf16 %v1635_v55, %v1635_v55  ;;  %v1637_v11 = vpop.f32.mrb[9].mxu1  ;;  %v1773_v54 = vmul.f32 %v1635_v55, %v1635_v55  ;;  %v1721_v59 = vsel %vm248_vm0, %v1635_v55, 0.0 }
 0x203   : > { %v1638_v25 = vpop.f32.mrb[10].mxu1 }
 0x204   : > { %2004 = vst.msk [vmem:[%s2910_s25 + $0x50] sm:$0xf] %vm1983_vm9, %v2211_v62  ;;  %v2212_v12 = vpack.c.bf16 %v1638_v25, %v1638_v25  ;;  %v1640_v14 = vpop.f32.mrb[11].mxu1  ;;  %v1774_v21 = vmul.f32 %v1638_v25, %v1638_v25  ;;  %v1824_v46 = vsel %vm248_vm0, %v1773_v54, 0.0  ;;  %v1723_v63 = vsel %vm248_vm0, %v1638_v25, 0.0 }
 0x206   : > { %2005 = vst.msk [vmem:[%s2910_s25 + $0x54] sm:$0xf] %vm1983_vm9, %v2212_v12  ;;  %v1826_v0 = vsel %vm248_vm0, %v1774_v21, 0.0 }
 0x216   : > { %v1611_v15 = vpop.f32.mrb[28].mxu0 }
 0x217   : > { %v1709_v17 = vsel %vm248_vm0, %v1611_v15, 0.0  ;;  %v1767_v18 = vmul.f32 %v1611_v15, %v1611_v15  ;;  %v2205_v19 = vpack.c.bf16 %v1611_v15, %v1611_v15  ;;  %v1613_v20 = vpop.f32.mrb[29].mxu0 }
 0x218   : > { %v1710_v1 = vadd.f32 %v1709_v17, %v1708_v6  ;;  %v1614_v23 = vpop.f32.mrb[30].mxu0 }
 0x219   : > { %v1812_v26 = vsel %vm248_vm0, %v1767_v18, 0.0  ;;  %1998 = vst.msk [vmem:[%s2910_s25 + $0x38] sm:$0xf] %vm1983_vm9, %v2205_v19  ;;  %v1711_v43 = vsel %vm248_vm0, %v1614_v23, 0.0  ;;  %v1768_v27 = vmul.f32 %v1614_v23, %v1614_v23  ;;  %v2206_v28 = vpack.c.bf16 %v1614_v23, %v1614_v23  ;;  %v1616_v5 = vpop.f32.mrb[31].mxu0 }
 0x21a   : > { %v1813_v29 = vadd.f32 %v1812_v26, %v1811_v9  ;;  %v1712_v30 = vadd.f32 %v1711_v43, %v1710_v1 }
 0x21b   : > { %v1814_v33 = vsel %vm248_vm0, %v1768_v27, 0.0  ;;  %1999 = vst.msk [vmem:[%s2910_s25 + $0x3c] sm:$0xf] %vm1983_vm9, %v2206_v28 }
 0x21c   : > { %v1714_v58 = vadd.f32 %v1713_v31, %v1712_v30  ;;  %v1815_v35 = vadd.f32 %v1814_v33, %v1813_v29 }
 0x21d   : > { %v1643_v39 = vpop.f32.mrb[12].mxu1 }
 0x21e   : > { %v1716_v53 = vadd.f32 %v1715_v37, %v1714_v58  ;;  %v1817_v40 = vadd.f32 %v1816_v36, %v1815_v35  ;;  %v1645_v42 = vpop.f32.mrb[13].mxu1  ;;  %v2213_v47 = vpack.c.bf16 %v1643_v39, %v1643_v39  ;;  %v1775_v56 = vmul.f32 %v1643_v39, %v1643_v39 }
 0x21f   : > { %v1646_v48 = vpop.f32.mrb[14].mxu1  ;;  %v1725_v41 = vsel %vm248_vm0, %v1643_v39, 0.0 }
 0x220   : > { %v1718_v32 = vadd.f32 %v1717_v16, %v1716_v53  ;;  %v1819_v13 = vadd.f32 %v1818_v44, %v1817_v40  ;;  %v1648_v49 = vpop.f32.mrb[15].mxu1  ;;  %2006 = vst.msk [vmem:[%s2910_s25 + $0x58] sm:$0xf] %vm1983_vm9, %v2213_v47  ;;  %v2214_v57 = vpack.c.bf16 %v1646_v48, %v1646_v48  ;;  %v1776_v7 = vmul.f32 %v1646_v48, %v1646_v48 }
 0x221   : > { %v1828_v8 = vsel %vm248_vm0, %v1775_v56, 0.0  ;;  %v1727_v9 = vsel %vm248_vm0, %v1646_v48, 0.0 }
 0x222   : > { %v1821_v60 = vadd.f32 %v1820_v50, %v1819_v13  ;;  %v1720_v51 = vadd.f32 %v1719_v52, %v1718_v32  ;;  %2007 = vst.msk [vmem:[%s2910_s25 + $0x5c] sm:$0xf] %vm1983_vm9, %v2214_v57  ;;  %v1830_v25 = vsel %vm248_vm0, %v1776_v7, 0.0 }
 0x224   : > { %v1722_v61 = vadd.f32 %v1721_v59, %v1720_v51  ;;  %v1823_v24 = vadd.f32 %v1822_v2, %v1821_v60 }
 0x226   : > { %v1724_v34 = vadd.f32 %v1723_v63, %v1722_v61  ;;  %v1825_v3 = vadd.f32 %v1824_v46, %v1823_v24 }
 0x228   : > { %v1726_v4 = vadd.f32 %v1725_v41, %v1724_v34  ;;  %v1827_v6 = vadd.f32 %v1826_v0, %v1825_v3 }
 0x22a   : > { %v1829_v55 = vadd.f32 %v1828_v8, %v1827_v6  ;;  %v1728_v62 = vadd.f32 %v1727_v9, %v1726_v4  ;;  %v1651_v11 = vpop.f32.mrb[16].mxu1 }
 0x22b   : > { %v1729_v12 = vsel %vm248_vm0, %v1651_v11, 0.0  ;;  %v1777_v14 = vmul.f32 %v1651_v11, %v1651_v11  ;;  %v2215_v15 = vpack.c.bf16 %v1651_v11, %v1651_v11  ;;  %v1653_v17 = vpop.f32.mrb[17].mxu1 }
 0x22c   : > { %v1831_v18 = vadd.f32 %v1830_v25, %v1829_v55  ;;  %v1730_v19 = vadd.f32 %v1729_v12, %v1728_v62  ;;  %v1654_v20 = vpop.f32.mrb[18].mxu1 }
 0x22d   : > { %v1832_v22 = vsel %vm248_vm0, %v1777_v14, 0.0  ;;  %2008 = vst.msk [vmem:[%s2910_s25 + $0x60] sm:$0xf] %vm1983_vm9, %v2215_v15  ;;  %v1731_v1 = vsel %vm248_vm0, %v1654_v20, 0.0  ;;  %v1778_v23 = vmul.f32 %v1654_v20, %v1654_v20  ;;  %v2216_v26 = vpack.c.bf16 %v1654_v20, %v1654_v20  ;;  %v1656_v43 = vpop.f32.mrb[19].mxu1 }
 0x22e   : > { %v1833_v27 = vadd.f32 %v1832_v22, %v1831_v18  ;;  %v1732_v28 = vadd.f32 %v1731_v1, %v1730_v19 }
 0x22f   : > { %v1834_v5 = vsel %vm248_vm0, %v1778_v23, 0.0  ;;  %2009 = vst.msk [vmem:[%s2910_s25 + $0x64] sm:$0xf] %vm1983_vm9, %v2216_v26 }
 0x230   : > { %v1835_v29 = vadd.f32 %v1834_v5, %v1833_v27 }
 0x239   : > { %v1659_v30 = vpop.f32.mrb[20].mxu1 }
 0x23a   : > { %v1733_v31 = vsel %vm248_vm0, %v1659_v30, 0.0  ;;  %v1779_v10 = vmul.f32 %v1659_v30, %v1659_v30  ;;  %v2217_v33 = vpack.c.bf16 %v1659_v30, %v1659_v30  ;;  %v1661_v58 = vpop.f32.mrb[21].mxu1 }
 0x23b   : > { %v1734_v35 = vadd.f32 %v1733_v31, %v1732_v28  ;;  %v1662_v36 = vpop.f32.mrb[22].mxu1 }
 0x23c   : > { %v1836_v37 = vsel %vm248_vm0, %v1779_v10, 0.0  ;;  %2010 = vst.msk [vmem:[%s2910_s25 + $0x68] sm:$0xf] %vm1983_vm9, %v2217_v33  ;;  %v1735_v38 = vsel %vm248_vm0, %v1662_v36, 0.0  ;;  %v1780_v39 = vmul.f32 %v1662_v36, %v1662_v36  ;;  %v2218_v53 = vpack.c.bf16 %v1662_v36, %v1662_v36  ;;  %v1664_v40 = vpop.f32.mrb[23].mxu1 }
 0x23d   : > { %v1837_v42 = vadd.f32 %v1836_v37, %v1835_v29  ;;  %v1736_v44 = vadd.f32 %v1735_v38, %v1734_v35 }
 0x23e   : > { %v1838_v16 = vsel %vm248_vm0, %v1780_v39, 0.0  ;;  %2011 = vst.msk [vmem:[%s2910_s25 + $0x6c] sm:$0xf] %vm1983_vm9, %v2218_v53 }
 0x23f   : > { %v1839_v45 = vadd.f32 %v1838_v16, %v1837_v42 }
 0x246   : > { %v1667_v47 = vpop.f32.mrb[24].mxu1 }
 0x247   : > { %v1737_v48 = vsel %vm248_vm0, %v1667_v47, 0.0  ;;  %v1781_v32 = vmul.f32 %v1667_v47, %v1667_v47  ;;  %v2219_v13 = vpack.c.bf16 %v1667_v47, %v1667_v47  ;;  %v1669_v49 = vpop.f32.mrb[25].mxu1 }
 0x248   : > { %v1738_v50 = vadd.f32 %v1737_v48, %v1736_v44  ;;  %v1670_v52 = vpop.f32.mrb[26].mxu1 }
 0x249   : > { %v1840_v54 = vsel %vm248_vm0, %v1781_v32, 0.0  ;;  %2012 = vst.msk [vmem:[%s2910_s25 + $0x70] sm:$0xf] %vm1983_vm9, %v2219_v13  ;;  %v1739_v57 = vsel %vm248_vm0, %v1670_v52, 0.0  ;;  %v1782_v60 = vmul.f32 %v1670_v52, %v1670_v52  ;;  %v2220_v51 = vpack.c.bf16 %v1670_v52, %v1670_v52  ;;  %v1672_v2 = vpop.f32.mrb[27].mxu1 }
 0x24a   : > { %v1841_v59 = vadd.f32 %v1840_v54, %v1839_v45  ;;  %v1740_v21 = vadd.f32 %v1739_v57, %v1738_v50 }
 0x24b   : > { %v1842_v61 = vsel %vm248_vm0, %v1782_v60, 0.0  ;;  %2013 = vst.msk [vmem:[%s2910_s25 + $0x74] sm:$0xf] %vm1983_vm9, %v2220_v51 }
 0x24c   : > { %v1843_v24 = vadd.f32 %v1842_v61, %v1841_v59 }
 0x255   : > { %v1675_v46 = vpop.f32.mrb[28].mxu1 }
 0x256   : > { %v1741_v63 = vsel %vm248_vm0, %v1675_v46, 0.0  ;;  %v1783_v56 = vmul.f32 %v1675_v46, %v1675_v46  ;;  %v2221_v34 = vpack.c.bf16 %v1675_v46, %v1675_v46  ;;  %v1677_v3 = vpop.f32.mrb[29].mxu1 }
 0x257   : > { %v1742_v0 = vadd.f32 %v1741_v63, %v1740_v21  ;;  %v1678_v41 = vpop.f32.mrb[30].mxu1 }
 0x258   : > { %v1844_v7 = vsel %vm248_vm0, %v1783_v56, 0.0  ;;  %2014 = vst.msk [vmem:[%s2910_s25 + $0x78] sm:$0xf] %vm1983_vm9, %v2221_v34  ;;  %v1743_v4 = vsel %vm248_vm0, %v1678_v41, 0.0  ;;  %v1784_v6 = vmul.f32 %v1678_v41, %v1678_v41  ;;  %v2222_v8 = vpack.c.bf16 %v1678_v41, %v1678_v41  ;;  %v1680_v9 = vpop.f32.mrb[31].mxu1 }
 0x259   : > { %v1845_v55 = vadd.f32 %v1844_v7, %v1843_v24  ;;  %v1744_v62 = vadd.f32 %v1743_v4, %v1742_v0 }
 0x25a   : > { %v1846_v11 = vsel %vm248_vm0, %v1784_v6, 0.0  ;;  %2015 = vst.msk [vmem:[%s2910_s25 + $0x7c] sm:$0xf] %vm1983_vm9, %v2222_v8 }
 0x25b   : > { %v1745_v25 = vrot.slane %v1744_v62, 4  ;;  %v1847_v12 = vadd.f32 %v1846_v11, %v1845_v55 }
 0x25d   : > { %v1746_v14 = vadd.f32 %v1745_v25, %v1744_v62  ;;  %v1848_v15 = vrot.slane %v1847_v12, 4 }
 0x25f   : > { %v1747_v17 = vrot.slane %v1746_v14, 2  ;;  %v1849_v18 = vadd.f32 %v1848_v15, %v1847_v12 }
 0x261   : > { %v1748_v19 = vadd.f32 %v1747_v17, %v1746_v14  ;;  %v1850_v20 = vrot.slane %v1849_v18, 2 }
 0x263   : > { %v1749_v22 = vrot.slane %v1748_v19, 1  ;;  %v1851_v1 = vadd.f32 %v1850_v20, %v1849_v18 }
 0x265   : > { %v1750_v23 = vadd.f32 %v1749_v22, %v1748_v19  ;;  %v1852_v26 = vrot.slane %v1851_v1, 1 }
 0x267   : > { %1752 = vst.msk [vmem:[%s211_s28] sm:$0x1] %vm1751_vm10, %v1750_v23  ;;  %v1853_v43 = vadd.f32 %v1852_v26, %v1851_v1 }
 0x269   : > { %1854 = vst.msk [vmem:[%s214_s5] sm:$0x1] %vm1751_vm10, %v1853_v43 }
 0x26a PF: > { %s15_s15 = sadd.s32 1, %s2273_s15  }
 0x26b   : > { %p12_p4 = scmp.ge.s32.totalorder %s15_s15, 4  }
 0x26d   :  { %14 = sbr.rel (!%p12_p4) target bundleno = 1 (0x1), region = 84 }

// kernel: basic_block_group_forward.4
= control target key start
LH: loop header
LB: loop body
LE: loop exit
PB: predicated region body
PF: predicated region fallthrough
CT: control target
= control target key end

     0   :  { %s2560_s18 = smov 0   ;;  %s3404_s0 = inlined_call_operand.vmem [shape: bf16[2,16,16,16], index: 0, kind: input, shape index: {}]   ;;  %s3405_s1 = inlined_call_operand.vmem [shape: f32[2,16], index: 1, kind: input, shape index: {}]   ;;  %s3406_s2 = inlined_call_operand.vmem [shape: bf16[144,16], index: 2, kind: input, shape index: {}]   ;;  %s3407_s3 = inlined_call_operand.vmem [shape: bf16[2,16,16,16], index: 3, kind: output, shape index: {0}]   ;;  %s3408_s4 = inlined_call_operand.vmem [shape: f32[2,1,16], index: 4, kind: output, shape index: {1}]   ;;  %s3409_s5 = inlined_call_operand.vmem [shape: f32[2,1,16], index: 5, kind: output, shape index: {2}]  }
   0x1 LB: > { %s2286_s19 = sadd.s32 4294967295, %s2519_s18   ;;  %p2290_p0 = scmp.ge.s32.totalorder %s2519_s18, 1  ;;  %s2519_s18 = sphi %s2560_s18, %s16_s18  }
   0x2   : > { %p192_p1 = scmp.lt.s32.totalorder %s2519_s18, 3 }
   0x4   : > { %p193_p2 = pnand %p2290_p0, %p192_p1 }
   0x5   : > { %vm413_vm0 = vcmask (!%p193_p2), 130048   ;;  %vm416_vm1 = vcmask (!%p193_p2), 123904   ;;  %v2521_v0 = vmov (!%p193_p2), 0.0   ;;  %p226_p3 = scmp.lt.s32.totalorder (!%p193_p2), %s2286_s19, 1  ;;  %v2522_v1 = vmov (!%p193_p2), 0   ;;  %v2504_v2 = vld [vmem:[%s3406_s2] sm:$0xff] (!%p193_p2)  }
   0x6   : > { %196 = sbr.rel (%p193_p2) target bundleno = 619 (0x26b), region = 32  ;;  %414 = vst.msk [vmem:[#allocation2] sm:$0xff] (!%p193_p2), %vm413_vm0, %v2521_v0  ;;  %415 = vst.msk [vmem:[#allocation2 + $0x8] sm:$0xff] (!%p193_p2), %vm413_vm0, %v2521_v0  ;;  %1686 = vmatprep.subr.bf16.mxu0 (!%p193_p2), %v2522_v1  ;;  %2469 = vmatprep.subr.bf16.mxu1 (!%p193_p2), %v2522_v1  ;;  %v2505_v3 = vld [vmem:[%s3406_s2 + $0x8] sm:$0xff] (!%p193_p2)   ;;  %v2647_v4 = vld [vmem:[%s3405_s1] ss:$0 sm:$0xff] (!%p193_p2) }
   0x7   : > { %417 = vst.msk [vmem:[#allocation2 + $0x10] sm:$0x3] (!%p193_p2), %vm416_vm1, %v2521_v0  ;;  %420 = vst.msk [vmem:[#allocation2 + $0x28] sm:$0x3] (!%p193_p2), %vm416_vm1, %v2521_v0  ;;  %1687 = vmatpush1.bf16.msra.mxu0 (!%p193_p2), %v2504_v2  ;;  %2478 = vmatpush1.bf16.msra.mxu1 (!%p193_p2), %v2504_v2  ;;  %v2655_v6 = vld [vmem:[%s3405_s1 + $0x1] ss:$0 sm:$0xff] (!%p193_p2) }
   0x8   : > { %418 = vst.msk [vmem:[#allocation2 + $0x18] sm:$0xff] (!%p193_p2), %vm413_vm0, %v2521_v0  ;;  %419 = vst.msk [vmem:[#allocation2 + $0x20] sm:$0xff] (!%p193_p2), %vm413_vm0, %v2521_v0  ;;  %1688 = vmatprep.subr.bf16.mxu0 (!%p193_p2), %v2522_v1  ;;  %2470 = vmatprep.subr.bf16.mxu1 (!%p193_p2), %v2522_v1  ;;  %v2506_v21 = vld [vmem:[%s3406_s2 + $0x10] sm:$0xff] (!%p193_p2)   ;;  %s2523_s9 = smov (!%p193_p2), 16   ;;  %v2507_v35 = vld [vmem:[%s3406_s2 + $0x18] sm:$0xff] (!%p193_p2)   ;;  %s2524_s12 = smov (!%p193_p2), 32  }
   0x9   : > { %421 = vst.msk [vmem:[#allocation2 + $0x30] sm:$0xff] (!%p193_p2), %vm413_vm0, %v2521_v0  ;;  %422 = vst.msk [vmem:[#allocation2 + $0x38] sm:$0xff] (!%p193_p2), %vm413_vm0, %v2521_v0  ;;  %v2508_v59 = vld [vmem:[%s3406_s2 + $0x20] sm:$0xff] (!%p193_p2)   ;;  %s2525_s21 = smov (!%p193_p2), 80   ;;  %s2526_s23 = smov (!%p193_p2), 48   ;;  %vm678_vm2 = vcmask (!%p193_p2), 261248  }
   0xa   : > { %423 = vst.msk [vmem:[#allocation2 + $0x40] sm:$0x3] (!%p193_p2), %vm416_vm1, %v2521_v0  ;;  %426 = vst.msk [vmem:[#allocation2 + $0x58] sm:$0x3] (!%p193_p2), %vm416_vm1, %v2521_v0  ;;  %s2527_s26 = smov (!%p193_p2), 112   ;;  %s2528_s28 = smov (!%p193_p2), 64  }
   0xb   : > { %424 = vst.msk [vmem:[#allocation2 + $0x48] sm:$0xff] (!%p193_p2), %vm413_vm0, %v2521_v0  ;;  %425 = vst.msk [vmem:[#allocation2 + $0x50] sm:$0xff] (!%p193_p2), %vm413_vm0, %v2521_v0  ;;  %1689 = vmatpush1.bf16.msra.mxu0 (!%p193_p2), %v2505_v3  ;;  %2479 = vmatpush1.bf16.msra.mxu1 (!%p193_p2), %v2505_v3  ;;  %s2529_s29 = smov (!%p193_p2), 96   ;;  %vm807_vm3 = vcmask (!%p193_p2), 392448   ;;  %vm936_vm4 = vcmask (!%p193_p2), 523648   ;;  %vm1065_vm5 = vcmask (!%p193_p2), 654848  }
   0xc   : > { %427 = vst.msk [vmem:[#allocation2 + $0x60] sm:$0xff] (!%p193_p2), %vm413_vm0, %v2521_v0  ;;  %428 = vst.msk [vmem:[#allocation2 + $0x68] sm:$0xff] (!%p193_p2), %vm413_vm0, %v2521_v0  ;;  %1690 = vmatprep.subr.bf16.mxu0 (!%p193_p2), %v2522_v1  ;;  %2471 = vmatprep.subr.bf16.mxu1 (!%p193_p2), %v2522_v1  ;;  %vm1194_vm6 = vcmask (!%p193_p2), 786048   ;;  %vm1324_vm7 = vcmask (!%p193_p2), 917248   ;;  %vm1453_vm8 = vcmask (!%p193_p2), 1048448   ;;  %vm2148_vm9 = vcmask (!%p193_p2), 125952  }
   0xd   : > { %429 = vst.msk [vmem:[#allocation2 + $0x70] sm:$0x3] %vm416_vm1, %v2521_v0  ;;  %432 = vst.msk [vmem:[#allocation2 + $0x88] sm:$0x3] %vm416_vm1, %v2521_v0  ;;  %s3411_s19 = smov (!%p226_p3, %s2286_s19), 1  ;;  %v566_v9 = vld [vmem:[#allocation2 + $0x1] sm:$0xff] }
   0xe   : > { %430 = vst.msk [vmem:[#allocation2 + $0x78] sm:$0xff] %vm413_vm0, %v2521_v0  ;;  %431 = vst.msk [vmem:[#allocation2 + $0x80] sm:$0xff] %vm413_vm0, %v2521_v0  ;;  %s2356_s22 = sshll.u32 %s3411_s19, 7  ;;  %v567_v10 = vld [vmem:[#allocation2 + $0x9] sm:$0xff]  ;;  %s238_s10 = scalar_lea.vmem %s3408_s4, %s3411_s19  ;;  %vm1916_vm10 = vcmask 122880  }
   0xf   : > { %433 = vst.msk [vmem:[#allocation2 + $0x90] sm:$0xff] %vm413_vm0, %v2521_v0  ;;  %434 = vst.msk [vmem:[#allocation2 + $0x98] sm:$0xff] %vm413_vm0, %v2521_v0  ;;  %s2642_s27 = scalar_lea.vmem %s3404_s0, %s2356_s22  ;;  %v695_v11 = vld [vmem:[#allocation2 + $0x2] sm:$0xff]  ;;  %v598_v16 = vpack.c.bf16 %v567_v10, %v566_v9  ;;  %v696_v17 = vld [vmem:[#allocation2 + $0xa] sm:$0xff]  ;;  %1691 = vmatpush1.bf16.msra.mxu0 %v2506_v21  ;;  %2480 = vmatpush1.bf16.msra.mxu1 %v2506_v21  ;;  %s3242_s8 = scalar_lea.vmem %s3407_s3, %s2356_s22 }
  0x10   : > { %435 = vst.msk [vmem:[#allocation2 + $0xa0] sm:$0x3] %vm416_vm1, %v2521_v0  ;;  %438 = vst.msk [vmem:[#allocation2 + $0xb8] sm:$0x3] %vm416_vm1, %v2521_v0  ;;  %v2391_v5 = vld [vmem:[%s2642_s27] sm:$0xff]   ;;  %v2454_v7 = vld [vmem:[%s2642_s27 + $0x8] sm:$0xff]   ;;  %v727_v22 = vpack.c.bf16 %v696_v17, %v695_v11  ;;  %1692 = vmatprep.subr.bf16.mxu0 %v2522_v1  ;;  %2472 = vmatprep.subr.bf16.mxu1 %v2522_v1  ;;  %s241_s13 = scalar_lea.vmem %s3409_s5, %s3411_s19 }
  0x11   : > { %436 = vst.msk [vmem:[#allocation2 + $0xa8] sm:$0xff] %vm413_vm0, %v2521_v0  ;;  %437 = vst.msk [vmem:[#allocation2 + $0xb0] sm:$0xff] %vm413_vm0, %v2521_v0  ;;  %v2455_v8 = vld [vmem:[%s2642_s27 + $0x10] sm:$0xff]   ;;  %v2392_v12 = vunpack.c.l.bf16 %v2391_v5  ;;  %v2393_v13 = vunpack.c.h.bf16 %v2391_v5  ;;  %v2396_v14 = vunpack.c.l.bf16 %v2454_v7  ;;  %v2397_v15 = vunpack.c.h.bf16 %v2454_v7  ;;  %v2456_v20 = vld [vmem:[%s2642_s27 + $0x18] sm:$0xff]   ;;  %630 = vrot.lane.b32.xlu0 %v598_v16, %s2523_s9 }
  0x12   : > { %439 = vst.msk [vmem:[#allocation2 + $0xc0] sm:$0xff] %vm413_vm0, %v2521_v0  ;;  %440 = vst.msk [vmem:[#allocation2 + $0xc8] sm:$0xff] %vm413_vm0, %v2521_v0  ;;  %v2400_v18 = vunpack.c.l.bf16 %v2455_v8  ;;  %v2401_v19 = vunpack.c.h.bf16 %v2455_v8  ;;  %v2404_v29 = vunpack.c.l.bf16 %v2456_v20  ;;  %v2405_v33 = vunpack.c.h.bf16 %v2456_v20  ;;  %v2457_v34 = vld [vmem:[%s2642_s27 + $0x20] sm:$0xff]   ;;  %v2460_v40 = vld [vmem:[%s2642_s27 + $0x38] sm:$0xff]  }
  0x13   : > { %441 = vst.msk [vmem:[#allocation2 + $0xd0] sm:$0x3] %vm416_vm1, %v2521_v0  ;;  %444 = vst.msk [vmem:[#allocation2 + $0xe8] sm:$0x3] %vm416_vm1, %v2521_v0  ;;  %v312_v23 = vmul.f32 %v2392_v12, %v2647_v4  ;;  %v313_v24 = vmul.f32 %v2393_v13, %v2647_v4  ;;  %v314_v25 = vmul.f32 %v2396_v14, %v2647_v4  ;;  %v2461_v45 = vld [vmem:[%s2642_s27 + $0x40] sm:$0xff]   ;;  %v2458_v50 = vld [vmem:[%s2642_s27 + $0x28] sm:$0xff]   ;;  %v2408_v52 = vunpack.c.l.bf16 %v2457_v34 }
  0x14   : > { %442 = vst.msk [vmem:[#allocation2 + $0xd8] sm:$0xff] %vm413_vm0, %v2521_v0  ;;  %443 = vst.msk [vmem:[#allocation2 + $0xe0] sm:$0xff] %vm413_vm0, %v2521_v0  ;;  %v315_v26 = vmul.f32 %v2397_v15, %v2647_v4  ;;  %v316_v27 = vmul.f32 %v2400_v18, %v2647_v4  ;;  %v317_v28 = vmul.f32 %v2401_v19, %v2647_v4  ;;  %v2409_v53 = vunpack.c.h.bf16 %v2457_v34  ;;  %v2462_v15 = vld [vmem:[%s2642_s27 + $0x48] sm:$0xff]   ;;  %v2724_v21 = vld [vmem:[%s2642_s27 + $0x30] sm:$0xff]  }
  0x15   : > { %445 = vst.msk [vmem:[#allocation2 + $0xf0] sm:$0xff] %vm413_vm0, %v2521_v0  ;;  %446 = vst.msk [vmem:[#allocation2 + $0xf8] sm:$0xff] %vm413_vm0, %v2521_v0  ;;  %v349_v30 = vadd.f32 %v2655_v6, %v312_v23  ;;  %v350_v31 = vadd.f32 %v2655_v6, %v313_v24  ;;  %v351_v32 = vadd.f32 %v2655_v6, %v314_v25  ;;  %759 = vrot.lane.b32.xlu0 %v727_v22, %s2524_s12  ;;  %v2509_v16 = vld [vmem:[%s3406_s2 + $0x28] sm:$0xff]  }
  0x16   : > { %447 = vst.msk [vmem:[#allocation2 + $0x100] sm:$0x3] %vm416_vm1, %v2521_v0  ;;  %450 = vst.msk [vmem:[#allocation2 + $0x118] sm:$0x3] %vm416_vm1, %v2521_v0  ;;  %v352_v36 = vadd.f32 %v2655_v6, %v315_v26  ;;  %v353_v37 = vadd.f32 %v2655_v6, %v316_v27  ;;  %v354_v38 = vadd.f32 %v2655_v6, %v317_v28  ;;  %v2420_v54 = vunpack.c.l.bf16 %v2460_v40 }
  0x17   : > { %448 = vst.msk [vmem:[#allocation2 + $0x108] sm:$0xff] %vm413_vm0, %v2521_v0  ;;  %449 = vst.msk [vmem:[#allocation2 + $0x110] sm:$0xff] %vm413_vm0, %v2521_v0  ;;  %v318_v39 = vmul.f32 %v2404_v29, %v2647_v4  ;;  %v381_v41 = vmax.f32 %v349_v30, 0.0  ;;  %v382_v42 = vmax.f32 %v350_v31, 0.0  ;;  %v383_v43 = vmax.f32 %v351_v32, 0.0  ;;  %1693 = vmatpush1.bf16.msra.mxu0 %v2507_v35  ;;  %2481 = vmatpush1.bf16.msra.mxu1 %v2507_v35  ;;  %v2729_v29 = vld [vmem:[%s2642_s27 + $0x50] sm:$0xff]  }
  0x18   : > { %451 = vst.msk [vmem:[#allocation2 + $0x120] sm:$0xff] %vm413_vm0, %v2521_v0  ;;  %452 = vst.msk [vmem:[#allocation2 + $0x128] sm:$0xff] %vm413_vm0, %v2521_v0  ;;  %v319_v44 = vmul.f32 %v2405_v33, %v2647_v4  ;;  %v384_v46 = vmax.f32 %v352_v36, 0.0  ;;  %v385_v47 = vmax.f32 %v353_v37, 0.0  ;;  %v386_v48 = vmax.f32 %v354_v38, 0.0  ;;  %1694 = vmatprep.subr.bf16.mxu0 %v2522_v1  ;;  %2473 = vmatprep.subr.bf16.mxu1 %v2522_v1  ;;  %v2734_v30 = vld [vmem:[%s3406_s2 + $0x30] sm:$0xff]  }
  0x19   : > { %453 = vst.msk [vmem:[#allocation2 + $0x130] sm:$0x3] %vm416_vm1, %v2521_v0  ;;  %456 = vst.msk [vmem:[#allocation2 + $0x148] sm:$0x3] %vm416_vm1, %v2521_v0  ;;  %v355_v49 = vadd.f32 %v2655_v6, %v318_v39  ;;  %v2421_v56 = vunpack.c.h.bf16 %v2460_v40  ;;  %v2424_v57 = vunpack.c.l.bf16 %v2461_v45  ;;  %v2425_v58 = vunpack.c.h.bf16 %v2461_v45 }
  0x1a   : > { %454 = vst.msk [vmem:[#allocation2 + $0x138] sm:$0xff] %vm413_vm0, %v2521_v0  ;;  %455 = vst.msk [vmem:[#allocation2 + $0x140] sm:$0xff] %vm413_vm0, %v2521_v0  ;;  %v356_v51 = vadd.f32 %v2655_v6, %v319_v44  ;;  %v320_v61 = vmul.f32 %v2408_v52, %v2647_v4  ;;  %v321_v62 = vmul.f32 %v2409_v53, %v2647_v4  ;;  %v2412_v5 = vunpack.c.l.bf16 %v2458_v50 }
  0x1b   : > { %457 = vst.msk [vmem:[#allocation2 + $0x150] sm:$0xff] %vm413_vm0, %v2521_v0  ;;  %458 = vst.msk [vmem:[#allocation2 + $0x158] sm:$0xff] %vm413_vm0, %v2521_v0  ;;  %v387_v55 = vmax.f32 %v355_v49, 0.0  ;;  %v326_v63 = vmul.f32 %v2420_v54, %v2647_v4  ;;  %v328_v2 = vmul.f32 %v2424_v57, %v2647_v4  ;;  %v329_v3 = vmul.f32 %v2425_v58, %v2647_v4 }
  0x1c   : > { %459 = vst.msk [vmem:[#allocation2 + $0x160] sm:$0x3] %vm416_vm1, %v2521_v0  ;;  %462 = vst.msk [vmem:[#allocation2 + $0x178] sm:$0x3] %vm416_vm1, %v2521_v0  ;;  %v388_v60 = vmax.f32 %v356_v51, 0.0  ;;  %v357_v7 = vadd.f32 %v2655_v6, %v320_v61  ;;  %v358_v8 = vadd.f32 %v2655_v6, %v321_v62  ;;  %v2413_v10 = vunpack.c.h.bf16 %v2458_v50  ;;  %1695 = vmatpush1.bf16.msra.mxu0 %v2508_v59 }
  0x1d   : > { %460 = vst.msk [vmem:[#allocation2 + $0x168] sm:$0xff] %vm413_vm0, %v2521_v0  ;;  %461 = vst.msk [vmem:[#allocation2 + $0x170] sm:$0xff] %vm413_vm0, %v2521_v0  ;;  %v363_v9 = vadd.f32 %v2655_v6, %v326_v63  ;;  %v365_v12 = vadd.f32 %v2655_v6, %v328_v2  ;;  %v366_v13 = vadd.f32 %v2655_v6, %v329_v3  ;;  %1696 = vmatprep.subr.bf16.mxu0 %v2522_v1 }
  0x1e   : > { %463 = vst.msk [vmem:[#allocation2 + $0x180] sm:$0xff] %vm413_vm0, %v2521_v0  ;;  %464 = vst.msk [vmem:[#allocation2 + $0x188] sm:$0xff] %vm413_vm0, %v2521_v0  ;;  %v322_v14 = vmul.f32 %v2412_v5, %v2647_v4  ;;  %v389_v17 = vmax.f32 %v357_v7, 0.0  ;;  %v390_v18 = vmax.f32 %v358_v8, 0.0  ;;  %v323_v20 = vmul.f32 %v2413_v10, %v2647_v4  ;;  %2482 = vmatpush1.bf16.msra.mxu1 %v2508_v59  ;;  %v502_v8 = vld [vmem:[#allocation2] sm:$0xff] }
  0x1f   : > { %465 = vst.msk [vmem:[#allocation2 + $0x190] sm:$0x3] %vm416_vm1, %v2521_v0  ;;  %468 = vst.msk [vmem:[#allocation2 + $0x1a8] sm:$0x3] %vm416_vm1, %v2521_v0  ;;  %v395_v19 = vmax.f32 %v363_v9, 0.0  ;;  %v397_v26 = vmax.f32 %v365_v12, 0.0  ;;  %2474 = vmatprep.subr.bf16.mxu1 %v2522_v1  ;;  %v2428_v36 = vunpack.c.l.bf16 %v2462_v15  ;;  %v2429_v37 = vunpack.c.h.bf16 %v2462_v15 }
  0x20   : > { %466 = vst.msk [vmem:[#allocation2 + $0x198] sm:$0xff] %vm413_vm0, %v2521_v0  ;;  %467 = vst.msk [vmem:[#allocation2 + $0x1a0] sm:$0xff] %vm413_vm0, %v2521_v0  ;;  %v327_v0 = vmul.f32 %v2421_v56, %v2647_v4  ;;  %v398_v27 = vmax.f32 %v366_v13, 0.0  ;;  %v359_v28 = vadd.f32 %v2655_v6, %v322_v14  ;;  %v360_v35 = vadd.f32 %v2655_v6, %v323_v20  ;;  %v2511_v9 = vld [vmem:[%s3406_s2 + $0x38] sm:$0xff]  }
  0x21   : > { %470 = vst.msk [vmem:[#allocation2 + $0x19] sm:$0xff] %vm413_vm0, %v381_v41  ;;  %471 = vst.msk [vmem:[#allocation2 + $0x21] sm:$0xff] %vm413_vm0, %v382_v42  ;;  %v2416_v44 = vunpack.c.l.bf16 %v2724_v21  ;;  %1697 = vmatpush1.bf16.msra.mxu0 %v2509_v16  ;;  %v330_v50 = vmul.f32 %v2428_v36, %v2647_v4  ;;  %v331_v51 = vmul.f32 %v2429_v37, %v2647_v4  ;;  %v2417_v56 = vunpack.c.h.bf16 %v2724_v21 }
  0x22   : > { %472 = vst.msk [vmem:[#allocation2 + $0x31] sm:$0xff] %vm413_vm0, %v383_v43  ;;  %473 = vst.msk [vmem:[#allocation2 + $0x39] sm:$0xff] %vm413_vm0, %v384_v46  ;;  %v364_v11 = vadd.f32 %v2655_v6, %v327_v0  ;;  %v391_v43 = vmax.f32 %v359_v28, 0.0  ;;  %v392_v49 = vmax.f32 %v360_v35, 0.0  ;;  %1698 = vmatprep.subr.bf16.mxu0 %v2522_v1  ;;  %2483 = vmatpush1.bf16.msra.mxu1 %v2509_v16  ;;  %v2432_v63 = vunpack.c.l.bf16 %v2729_v29  ;;  %v503_v0 = vld [vmem:[#allocation2 + $0x8] sm:$0xff]  ;;  %v2464_v28 = vld [vmem:[%s2642_s27 + $0x58] sm:$0xff]  }
  0x23   : > { %474 = vst.msk [vmem:[#allocation2 + $0x49] sm:$0xff] %vm413_vm0, %v385_v47  ;;  %475 = vst.msk [vmem:[#allocation2 + $0x51] sm:$0xff] %vm413_vm0, %v386_v48  ;;  %v324_v57 = vmul.f32 %v2416_v44, %v2647_v4  ;;  %v367_v61 = vadd.f32 %v2655_v6, %v330_v50  ;;  %v368_v62 = vadd.f32 %v2655_v6, %v331_v51  ;;  %2475 = vmatprep.subr.bf16.mxu1 %v2522_v1  ;;  %v2512_v44 = vld [vmem:[%s3406_s2 + $0x40] sm:$0xff]  }
  0x24   : > { %476 = vst.msk [vmem:[#allocation2 + $0x61] sm:$0xff] %vm413_vm0, %v387_v55  ;;  %477 = vst.msk [vmem:[#allocation2 + $0x69] sm:$0xff] %vm413_vm0, %v388_v60  ;;  %v396_v25 = vmax.f32 %v364_v11, 0.0  ;;  %v325_v5 = vmul.f32 %v2417_v56, %v2647_v4  ;;  %v2433_v15 = vunpack.c.h.bf16 %v2729_v29  ;;  %v332_v20 = vmul.f32 %v2432_v63, %v2647_v4 }
  0x25   : > { %478 = vst.msk [vmem:[#allocation2 + $0x79] sm:$0xff] %vm413_vm0, %v389_v17  ;;  %479 = vst.msk [vmem:[#allocation2 + $0x81] sm:$0xff] %vm413_vm0, %v390_v18  ;;  %v361_v7 = vadd.f32 %v2655_v6, %v324_v57  ;;  %1699 = vmatpush1.bf16.msra.mxu0 %v2734_v30  ;;  %v399_v13 = vmax.f32 %v367_v61, 0.0  ;;  %v400_v14 = vmax.f32 %v368_v62, 0.0 }
  0x26   : > { %484 = vst.msk [vmem:[#allocation2 + $0xc1] sm:$0xff] %vm413_vm0, %v395_v19  ;;  %485 = vst.msk [vmem:[#allocation2 + $0xc9] sm:$0xff] %vm413_vm0, %v396_v25  ;;  %1700 = vmatprep.subr.bf16.mxu0 %v2522_v1  ;;  %v362_v18 = vadd.f32 %v2655_v6, %v325_v5  ;;  %2484 = vmatpush1.bf16.msra.mxu1 %v2734_v30  ;;  %v333_v21 = vmul.f32 %v2433_v15, %v2647_v4 }
  0x27   : > { %486 = vst.msk [vmem:[#allocation2 + $0xd9] sm:$0xff] %vm413_vm0, %v397_v26  ;;  %487 = vst.msk [vmem:[#allocation2 + $0xe1] sm:$0xff] %vm413_vm0, %v398_v27  ;;  %v393_v19 = vmax.f32 %v361_v7, 0.0  ;;  %2476 = vmatprep.subr.bf16.mxu1 %v2522_v1  ;;  %v369_v26 = vadd.f32 %v2655_v6, %v332_v20  ;;  %v2466_v20 = vld [vmem:[%s2642_s27 + $0x68] sm:$0xff]  }
  0x28   : > { %v1082_v22 = vld [vmem:[#allocation2 + $0x1a] sm:$0xff]  ;;  %v1083_v23 = vld [vmem:[#allocation2 + $0x22] sm:$0xff]  ;;  %480 = vst.msk [vmem:[#allocation2 + $0x91] sm:$0xff] %vm413_vm0, %v391_v43  ;;  %481 = vst.msk [vmem:[#allocation2 + $0x99] sm:$0xff] %vm413_vm0, %v392_v49  ;;  %v370_v27 = vadd.f32 %v2655_v6, %v333_v21  ;;  %v2444_v21 = vunpack.c.l.bf16 %v2466_v20 }
  0x29   : > { %v824_v24 = vld [vmem:[#allocation2 + $0x18] sm:$0xff]  ;;  %v2737_v31 = vpack.c.bf16 %v1083_v23, %v1082_v22  ;;  %v825_v32 = vld [vmem:[#allocation2 + $0x20] sm:$0xff]  ;;  %v1212_v42 = vld [vmem:[#allocation2 + $0x30] sm:$0xff]  ;;  %488 = vst.msk [vmem:[#allocation2 + $0xf1] sm:$0xff] %vm413_vm0, %v399_v13  ;;  %v534_v22 = vpack.c.bf16 %v503_v0, %v502_v8  ;;  %1701 = vmatpush1.bf16.msra.mxu0 %v2511_v9  ;;  %v401_v30 = vmax.f32 %v369_v26, 0.0 }
  0x2a   : > { %v1341_v33 = vld [vmem:[#allocation2 + $0x31] sm:$0xff]  ;;  %v1342_v34 = vld [vmem:[#allocation2 + $0x39] sm:$0xff]  ;;  %v856_v38 = vpack.c.bf16 %v825_v32, %v824_v24  ;;  %v954_v41 = vld [vmem:[#allocation2 + $0x21] sm:$0xff]  ;;  %489 = vst.msk [vmem:[#allocation2 + $0xf9] sm:$0xff] %vm413_vm0, %v400_v14  ;;  %v394_v24 = vmax.f32 %v362_v18, 0.0  ;;  %1702 = vmatprep.subr.bf16.mxu0 %v2522_v1  ;;  %2485 = vmatpush1.bf16.msra.mxu1 %v2511_v9 }
  0x2b   : > { %v2743_v39 = vpack.c.bf16 %v1342_v34, %v1341_v33  ;;  %v953_v40 = vld [vmem:[#allocation2 + $0x19] sm:$0xff]  ;;  %1146 = vrot.lane.b32.xlu0 %v2737_v31, %s2525_s21  ;;  %v1214_v47 = vld [vmem:[#allocation2 + $0x48] sm:$0xff]  ;;  %v1215_v48 = vld [vmem:[#allocation2 + $0x50] sm:$0xff]  ;;  %482 = vst.msk [vmem:[#allocation2 + $0xa9] sm:$0xff] %vm413_vm0, %v393_v19  ;;  %2477 = vmatprep.subr.bf16.mxu1 %v2522_v1  ;;  %v2436_v33 = vunpack.c.l.bf16 %v2464_v28  ;;  %v2437_v34 = vunpack.c.h.bf16 %v2464_v28 }
  0x2c   : > { %v2751_v45 = vpack.c.bf16 %v954_v41, %v953_v40  ;;  %v1213_v46 = vld [vmem:[#allocation2 + $0x38] sm:$0xff]  ;;  %888 = vrot.lane.b32.xlu1 %v856_v38, %s2526_s23  ;;  %v2759_v53 = vpack.c.bf16 %v1215_v48, %v1214_v47  ;;  %551 = vst.msk [vmem:[#allocation3 + $0x10] sm:$0xff] %vm413_vm0, %v856_v38  ;;  %v1086_v59 = vld [vmem:[#allocation2 + $0x4a] sm:$0xff]  ;;  %v1216_v3 = vld [vmem:[#allocation2 + $0x60] sm:$0xff] }
  0x2d   : > { %v2757_v52 = vpack.c.bf16 %v1213_v46, %v1212_v42  ;;  %v1084_v54 = vld [vmem:[#allocation2 + $0x32] sm:$0xff]  ;;  %v1085_v55 = vld [vmem:[#allocation2 + $0x3a] sm:$0xff]  ;;  %v1217_v10 = vld [vmem:[#allocation2 + $0x68] sm:$0xff]  ;;  %550 = vst.msk [vmem:[#allocation3] sm:$0xff] %vm413_vm0, %v534_v22  ;;  %v334_v40 = vmul.f32 %v2436_v33, %v2647_v4  ;;  %v335_v41 = vmul.f32 %v2437_v34, %v2647_v4  ;;  %1703 = vmatpush1.bf16.msra.mxu0 %v2512_v44  ;;  %v2445_v22 = vunpack.c.h.bf16 %v2466_v20 }
  0x2e   : > { %v2765_v58 = vpack.c.bf16 %v1085_v55, %v1084_v54  ;;  %v1087_v60 = vld [vmem:[#allocation2 + $0x52] sm:$0xff]  ;;  %553 = vst.msk [vmem:[#allocation3 + $0x30] sm:$0xff] %vm413_vm0, %v2759_v53  ;;  %v1088_v11 = vld [vmem:[#allocation2 + $0x62] sm:$0xff]  ;;  %v1089_v12 = vld [vmem:[#allocation2 + $0x6a] sm:$0xff]  ;;  %v2792_v16 = vpack.c.bf16 %v1217_v10, %v1216_v3  ;;  %2486 = vmatpush1.bf16.msra.mxu1 %v2512_v44 }
  0x2f   : > { %v2772_v2 = vpack.c.bf16 %v1087_v60, %v1086_v59  ;;  %552 = vst.msk [vmem:[#allocation3 + $0x20] sm:$0xff] %vm413_vm0, %v2757_v52  ;;  %1405 = vrot.lane.b32.xlu0 %v2743_v39, %s2527_s26  ;;  %v2794_v17 = vpack.c.bf16 %v1089_v12, %v1088_v11  ;;  %v1090_v23 = vld [vmem:[#allocation2 + $0x7a] sm:$0xff]  ;;  %v1091_v25 = vld [vmem:[#allocation2 + $0x82] sm:$0xff]  ;;  %483 = vst.msk [vmem:[#allocation2 + $0xb1] sm:$0xff] %vm413_vm0, %v394_v24  ;;  %v371_v46 = vadd.f32 %v2655_v6, %v334_v40 }
  0x30   : > { %1518 = vst.msk [vmem:[#allocation3 + $0x8] sm:$0xff] %vm413_vm0, %v2765_v58  ;;  %1017 = vrot.lane.b32.xlu1 %v2751_v45, %s2528_s28  ;;  %554 = vst.msk [vmem:[#allocation3 + $0x40] sm:$0xff] %vm413_vm0, %v2792_v16  ;;  %v2819_v29 = vpack.c.bf16 %v1091_v25, %v1090_v23  ;;  %v1092_v32 = vld [vmem:[#allocation2 + $0x92] sm:$0xff]  ;;  %v1093_v35 = vld [vmem:[#allocation2 + $0x9a] sm:$0xff]  ;;  %v372_v47 = vadd.f32 %v2655_v6, %v335_v41  ;;  %v338_v23 = vmul.f32 %v2444_v21, %v2647_v4 }
  0x31   : > { %1519 = vst.msk [vmem:[#allocation3 + $0x18] sm:$0xff] %vm413_vm0, %v2772_v2  ;;  %1520 = vst.msk [vmem:[#allocation3 + $0x28] sm:$0xff] %vm413_vm0, %v2794_v17  ;;  %v1224_v36 = vld [vmem:[#allocation2 + $0xc0] sm:$0xff]  ;;  %v1225_v37 = vld [vmem:[#allocation2 + $0xc8] sm:$0xff]  ;;  %v2831_v1 = vpack.c.bf16 %v1093_v35, %v1092_v32  ;;  %v403_v51 = vmax.f32 %v371_v46, 0.0  ;;  %v339_v24 = vmul.f32 %v2445_v22, %v2647_v4 }
  0x32   : > { %1521 = vst.msk [vmem:[#allocation3 + $0x38] sm:$0xff] %vm413_vm0, %v2819_v29  ;;  %490 = vst.msk [vmem:[#allocation2 + $0x109] sm:$0xff] %vm413_vm0, %v401_v30  ;;  %v2833_v38 = vpack.c.bf16 %v1225_v37, %v1224_v36  ;;  %v1100_v42 = vld [vmem:[#allocation2 + $0xf2] sm:$0xff]  ;;  %v1101_v43 = vld [vmem:[#allocation2 + $0xfa] sm:$0xff]  ;;  %v404_v54 = vmax.f32 %v372_v47, 0.0 }
  0x33   : > { %761 = vrot.lane.b32.xlu0 %v2737_v31, %s2524_s12  ;;  %v402_v31 = vmax.f32 %v370_v27, 0.0  ;;  %1522 = vst.msk [vmem:[#allocation3 + $0x48] sm:$0xff] %vm413_vm0, %v2831_v1  ;;  %v1343_v55 = vld [vmem:[#allocation2 + $0x49] sm:$0xff]  ;;  %v1344_v56 = vld [vmem:[#allocation2 + $0x51] sm:$0xff]  ;;  %v2465_v59 = vld [vmem:[%s2642_s27 + $0x60] sm:$0xff]   ;;  %v375_v27 = vadd.f32 %v2655_v6, %v338_v23  ;;  %v376_v28 = vadd.f32 %v2655_v6, %v339_v24 }
  0x34   : > { %1276 = vrot.lane.b32.xlu1 %v2757_v52, %s2529_s29  ;;  %558 = vst.msk [vmem:[#allocation3 + $0x80] sm:$0xff] %vm413_vm0, %v2833_v38  ;;  %492 = vst.msk [vmem:[#allocation2 + $0x121] sm:$0xff] %vm413_vm0, %v403_v51  ;;  %v2441_v60 = vunpack.c.h.bf16 %v2465_v59  ;;  %v1374_v63 = vpack.c.bf16 %v1344_v56, %v1343_v55  ;;  %v1346_v9 = vld [vmem:[#allocation2 + $0x69] sm:$0xff]  ;;  %v1218_v30 = vld [vmem:[#allocation2 + $0x78] sm:$0xff] }
  0x35   : > { %491 = vst.msk [vmem:[#allocation2 + $0x111] sm:$0xff] %vm413_vm0, %v402_v31  ;;  %493 = vst.msk [vmem:[#allocation2 + $0x129] sm:$0xff] %vm413_vm0, %v404_v54  ;;  %v1219_v31 = vld [vmem:[#allocation2 + $0x80] sm:$0xff]  ;;  %v407_v32 = vmax.f32 %v375_v27, 0.0  ;;  %v408_v33 = vmax.f32 %v376_v28, 0.0  ;;  %v2467_v36 = vld [vmem:[%s2642_s27 + $0x70] sm:$0xff]  }
  0x36   : > { %v1094_v48 = vld [vmem:[#allocation2 + $0xaa] sm:$0xff]  ;;  %v1095_v49 = vld [vmem:[#allocation2 + $0xb2] sm:$0xff]  ;;  %v337_v5 = vmul.f32 %v2441_v60, %v2647_v4  ;;  %v1247_v34 = vpack.c.bf16 %v1219_v31, %v1218_v30  ;;  %v2448_v40 = vunpack.c.l.bf16 %v2467_v36  ;;  %v2449_v41 = vunpack.c.h.bf16 %v2467_v36  ;;  %v582_v54 = vld [vmem:[#allocation2 + $0xc1] sm:$0xff] }
  0x37   : > { %1019 = vrot.lane.b32.xlu0 %v2743_v39, %s2528_s28  ;;  %v1535_v50 = vld [vmem:[#allocation3 + $0x8] sm:$0xff]  ;;  %v2852_v57 = vpack.c.bf16 %v1095_v49, %v1094_v48  ;;  %496 = vst.msk [vmem:[#allocation2 + $0x151] sm:$0xff] %vm413_vm0, %v407_v32  ;;  %497 = vst.msk [vmem:[#allocation2 + $0x159] sm:$0xff] %vm413_vm0, %v408_v33  ;;  %v583_v55 = vld [vmem:[#allocation2 + $0xc9] sm:$0xff] }
  0x38   : > { %632 = vrot.lane.b32.xlu1 %v2751_v45, %s2523_s9  ;;  %v2848_v45 = vpack.c.bf16 %v1101_v43, %v1100_v42  ;;  %2306 = vmatprep.mubr.msk.bf16.mxu0 %vm413_vm0, %v1535_v50  ;;  %v374_v8 = vadd.f32 %v2655_v6, %v337_v5  ;;  %v1347_v42 = vld [vmem:[#allocation2 + $0x79] sm:$0xff]  ;;  %v1348_v43 = vld [vmem:[#allocation2 + $0x81] sm:$0xff]  ;;  %v340_v47 = vmul.f32 %v2448_v40, %v2647_v4  ;;  %v1349_v30 = vld [vmem:[#allocation2 + $0x91] sm:$0xff] }
  0x39   : > { %1523 = vst.msk [vmem:[#allocation3 + $0x58] sm:$0xff] %vm413_vm0, %v2852_v57  ;;  %v341_v48 = vmul.f32 %v2449_v41, %v2647_v4  ;;  %v711_v60 = vld [vmem:[#allocation2 + $0xc2] sm:$0xff]  ;;  %v969_v23 = vld [vmem:[#allocation2 + $0xd9] sm:$0xff] }
  0x3a   : > { %1526 = vst.msk [vmem:[#allocation3 + $0x88] sm:$0xff] %vm413_vm0, %v2848_v45  ;;  %v406_v11 = vmax.f32 %v374_v8, 0.0  ;;  %v377_v50 = vadd.f32 %v2655_v6, %v340_v47  ;;  %v513_v20 = vld [vmem:[#allocation2 + $0x80] sm:$0xff] }
  0x3b   : > { %1278 = vrot.lane.b32.xlu0 %v2759_v53, %s2529_s29  ;;  %v1232_v12 = vld [vmem:[#allocation2 + $0x120] sm:$0xff]  ;;  %v378_v51 = vadd.f32 %v2655_v6, %v341_v48 }
  0x3c   : > { %890 = vrot.lane.b32.xlu1 %v2757_v52, %s2526_s23  ;;  %v2440_v52 = vunpack.c.l.bf16 %v2465_v59  ;;  %v1102_v61 = vld [vmem:[#allocation2 + $0x10a] sm:$0xff]  ;;  %v1103_v62 = vld [vmem:[#allocation2 + $0x112] sm:$0xff]  ;;  %v1104_v15 = vld [vmem:[#allocation2 + $0x122] sm:$0xff]  ;;  %495 = vst.msk [vmem:[#allocation2 + $0x141] sm:$0xff] %vm413_vm0, %v406_v11  ;;  %v409_v56 = vmax.f32 %v377_v50, 0.0 }
  0x3d   : > { %v2866_v0 = vpack.c.bf16 %v1103_v62, %v1102_v61  ;;  %v1233_v13 = vld [vmem:[#allocation2 + $0x128] sm:$0xff]  ;;  %v410_v59 = vmax.f32 %v378_v51, 0.0  ;;  %v1350_v31 = vld [vmem:[#allocation2 + $0x99] sm:$0xff]  ;;  %v1357_v51 = vld [vmem:[#allocation2 + $0xf1] sm:$0xff] }
  0x3e   : > { %v336_v3 = vmul.f32 %v2440_v52, %v2647_v4  ;;  %v2877_v14 = vpack.c.bf16 %v1233_v13, %v1232_v12  ;;  %v1105_v18 = vld [vmem:[#allocation2 + $0x12a] sm:$0xff]  ;;  %v1237_v46 = vld [vmem:[#allocation2 + $0x158] sm:$0xff]  ;;  %498 = vst.msk [vmem:[#allocation2 + $0x169] sm:$0xff] %vm413_vm0, %v409_v56  ;;  %v2937_v52 = vpack.c.bf16 %v583_v55, %v582_v54  ;;  %v970_v24 = vld [vmem:[#allocation2 + $0xe1] sm:$0xff] }
  0x3f   : > { %634 = vrot.lane.b32.xlu0 %v2743_v39, %s2523_s9  ;;  %1527 = vst.msk [vmem:[#allocation3 + $0x98] sm:$0xff] %vm413_vm0, %v2866_v0  ;;  %v1345_v39 = vld [vmem:[#allocation2 + $0x61] sm:$0xff]  ;;  %v2883_v19 = vpack.c.bf16 %v1105_v18, %v1104_v15  ;;  %v1236_v44 = vld [vmem:[#allocation2 + $0x150] sm:$0xff]  ;;  %499 = vst.msk [vmem:[#allocation2 + $0x171] sm:$0xff] %vm413_vm0, %v410_v59 }
  0x40   : > { %1148 = vrot.lane.b32.xlu1 %v2765_v58, %s2525_s21  ;;  %v373_v7 = vadd.f32 %v2655_v6, %v336_v3  ;;  %562 = vst.msk [vmem:[#allocation3 + $0xc0] sm:$0xff] %vm413_vm0, %v2877_v14  ;;  %v2920_v49 = vpack.c.bf16 %v1237_v46, %v1236_v44  ;;  %v712_v61 = vld [vmem:[#allocation2 + $0xca] sm:$0xff]  ;;  %v1108_v3 = vld [vmem:[#allocation2 + $0x152] sm:$0xff]  ;;  %v1109_v5 = vld [vmem:[#allocation2 + $0x15a] sm:$0xff] }
  0x41   : > { %1528 = vst.msk [vmem:[#allocation3 + $0xa8] sm:$0xff] %vm413_vm0, %v2883_v19  ;;  %v2942_v62 = vpack.c.bf16 %v712_v61, %v711_v60  ;;  %v2945_v8 = vpack.c.bf16 %v1109_v5, %v1108_v3  ;;  %v1220_v12 = vld [vmem:[#allocation2 + $0x90] sm:$0xff]  ;;  %v1221_v18 = vld [vmem:[#allocation2 + $0x98] sm:$0xff]  ;;  %v521_v36 = vld [vmem:[#allocation2 + $0xe0] sm:$0xff] }
  0x42   : > { %v405_v10 = vmax.f32 %v373_v7, 0.0  ;;  %564 = vst.msk [vmem:[#allocation3 + $0xe0] sm:$0xff] %vm413_vm0, %v2920_v49  ;;  %v2468_v7 = vld [vmem:[%s2642_s27 + $0x78] sm:$0xff]   ;;  %v1248_v28 = vpack.c.bf16 %v1221_v18, %v1220_v12  ;;  %v1223_v61 = vld [vmem:[#allocation2 + $0xb0] sm:$0xff]  ;;  %v1230_v12 = vld [vmem:[#allocation2 + $0x108] sm:$0xff] }
  0x43   : > { %892 = vrot.lane.b32.xlu0 %v2759_v53, %s2526_s23  ;;  %v1375_v53 = vpack.c.bf16 %v1346_v9, %v1345_v39  ;;  %v1107_v35 = vld [vmem:[#allocation2 + $0x142] sm:$0xff]  ;;  %v2453_v11 = vunpack.c.h.bf16 %v2468_v7  ;;  %1530 = vst.msk [vmem:[#allocation3 + $0xc8] sm:$0xff] %vm413_vm0, %v2945_v8  ;;  %v1551_v50 = vld [vmem:[#allocation3 + $0x88] sm:$0xff]  ;;  %v1231_v18 = vld [vmem:[#allocation2 + $0x110] sm:$0xff] }
  0x44   : > { %1407 = vrot.lane.b32.xlu1 %v1374_v63, %s2527_s26  ;;  %494 = vst.msk [vmem:[#allocation2 + $0x139] sm:$0xff] %vm413_vm0, %v405_v10  ;;  %v2452_v10 = vunpack.c.l.bf16 %v2468_v7  ;;  %v1358_v54 = vld [vmem:[#allocation2 + $0xf9] sm:$0xff]  ;;  %2314 = vmatprep.mubr.msk.bf16.mxu1 %vm413_vm0, %v1551_v50  ;;  %v1351_v5 = vld [vmem:[#allocation2 + $0xa9] sm:$0xff]  ;;  %v1352_v7 = vld [vmem:[#allocation2 + $0xb1] sm:$0xff] }
  0x45   : > { %v1238_v39 = vld [vmem:[#allocation2 + $0x168] sm:$0xff]  ;;  %v343_v22 = vmul.f32 %v2453_v11, %v2647_v4  ;;  %v1381_v55 = vpack.c.bf16 %v1358_v54, %v1357_v51 }
  0x46   : > { %v1239_v9 = vld [vmem:[#allocation2 + $0x170] sm:$0xff]  ;;  %v342_v21 = vmul.f32 %v2452_v10, %v2647_v4  ;;  %v2968_v4 = vpack.c.bf16 %v970_v24, %v969_v23  ;;  %v523_v10 = vld [vmem:[#allocation2 + $0xf8] sm:$0xff] }
  0x47   : > { %1150 = vrot.lane.b32.xlu0 %v2772_v2, %s2525_s21  ;;  %v2949_v13 = vpack.c.bf16 %v1239_v9, %v1238_v39  ;;  %v380_v27 = vadd.f32 %v2655_v6, %v343_v22  ;;  %v1110_v44 = vld [vmem:[#allocation2 + $0x16a] sm:$0xff]  ;;  %v1111_v46 = vld [vmem:[#allocation2 + $0x172] sm:$0xff]  ;;  %v3003_v39 = vpack.c.bf16 %v1352_v7, %v1351_v5 }
  0x48   : > { %763 = vrot.lane.b32.xlu1 %v2765_v58, %s2524_s12  ;;  %v2977_v47 = vpack.c.bf16 %v1111_v46, %v1110_v44  ;;  %v522_v9 = vld [vmem:[#allocation2 + $0xf0] sm:$0xff] }
  0x49   : > { %565 = vst.msk [vmem:[#allocation3 + $0xf0] sm:$0xff] %vm413_vm0, %v2949_v13  ;;  %v412_v33 = vmax.f32 %v380_v27, 0.0  ;;  %v544_v11 = vpack.c.bf16 %v523_v10, %v522_v9  ;;  %v1360_v22 = vld [vmem:[#allocation2 + $0x111] sm:$0xff]  ;;  %v1362_v44 = vld [vmem:[#allocation2 + $0x129] sm:$0xff]  ;;  %v1364_v9 = vld [vmem:[#allocation2 + $0x141] sm:$0xff] }
  0x4a   : > { %1531 = vst.msk [vmem:[#allocation3 + $0xd8] sm:$0xff] %vm413_vm0, %v2977_v47  ;;  %v1541_v10 = vld [vmem:[#allocation3 + $0x38] sm:$0xff] }
  0x4b   : > { %1409 = vrot.lane.b32.xlu0 %v1375_v53, %s2527_s26  ;;  %v1234_v25 = vld [vmem:[#allocation2 + $0x138] sm:$0xff]  ;;  %v1235_v26 = vld [vmem:[#allocation2 + $0x140] sm:$0xff]  ;;  %501 = vst.msk [vmem:[#allocation2 + $0x189] sm:$0xff] %vm413_vm0, %v412_v33  ;;  %560 = vst.msk [vmem:[#allocation3 + $0xa0] sm:$0xff] %vm413_vm0, %v544_v11 }
  0x4c   : > { %1021 = vrot.lane.b32.xlu1 %v1374_v63, %s2528_s28  ;;  %v2896_v58 = vpack.c.bf16 %v1235_v26, %v1234_v25  ;;  %v379_v26 = vadd.f32 %v2655_v6, %v342_v21  ;;  %v1377_v6 = vpack.c.bf16 %v1350_v31, %v1349_v30  ;;  %v1359_v21 = vld [vmem:[#allocation2 + $0x109] sm:$0xff] }
  0x4d   : > { %v3015_v24 = vpack.c.bf16 %v1360_v22, %v1359_v21  ;;  %v517_v31 = vld [vmem:[#allocation2 + $0xb0] sm:$0xff] }
  0x4e   : > { %563 = vst.msk [vmem:[#allocation3 + $0xd0] sm:$0xff] %vm413_vm0, %v2896_v58  ;;  %v411_v32 = vmax.f32 %v379_v26, 0.0  ;;  %v1483_v26 = vld [vmem:[#allocation2 + $0xca] sm:$0xff] }
  0x4f   : > { %765 = vrot.lane.b32.xlu0 %v2772_v2, %s2524_s12  ;;  %v1106_v2 = vld [vmem:[#allocation2 + $0x13a] sm:$0xff] }
  0x50   : > { %1280 = vrot.lane.b32.xlu1 %v2792_v16, %s2529_s29  ;;  %v2912_v37 = vpack.c.bf16 %v1107_v35, %v1106_v2  ;;  %v1099_v2 = vld [vmem:[#allocation2 + $0xe2] sm:$0xff]  ;;  %500 = vst.msk [vmem:[#allocation2 + $0x181] sm:$0xff] %vm413_vm0, %v411_v32  ;;  %v520_v35 = vld [vmem:[#allocation2 + $0xd8] sm:$0xff] }
  0x51   : > { %v543_v41 = vpack.c.bf16 %v521_v36, %v520_v35  ;;  %v525_v35 = vld [vmem:[#allocation2 + $0x110] sm:$0xff] }
  0x52   : > { %1529 = vst.msk [vmem:[#allocation3 + $0xb8] sm:$0xff] %vm413_vm0, %v2912_v37  ;;  %v1113_v59 = vld [vmem:[#allocation2 + $0x18a] sm:$0xff] }
  0x53   : > { %1023 = vrot.lane.b32.xlu0 %v1375_v53, %s2528_s28  ;;  %559 = vst.msk [vmem:[#allocation3 + $0x90] sm:$0xff] %vm413_vm0, %v543_v41 }
  0x54   : > { %636 = vrot.lane.b32.xlu1 %v1374_v63, %s2523_s9  ;;  %v840_v63 = vld [vmem:[#allocation2 + $0xd8] sm:$0xff] }
  0x57   : > { %1282 = vrot.lane.b32.xlu0 %v1247_v34, %s2529_s29  ;;  %v1112_v56 = vld [vmem:[#allocation2 + $0x182] sm:$0xff] }
  0x58   : > { %894 = vrot.lane.b32.xlu1 %v2792_v16, %s2526_s23  ;;  %v2927_v16 = vpack.c.bf16 %v1348_v43, %v1347_v42  ;;  %v1228_v42 = vld [vmem:[#allocation2 + $0xf0] sm:$0xff]  ;;  %v1229_v43 = vld [vmem:[#allocation2 + $0xf8] sm:$0xff]  ;;  %v2992_v60 = vpack.c.bf16 %v1113_v59, %v1112_v56 }
  0x59   : > { %v1252_v48 = vpack.c.bf16 %v1229_v43, %v1228_v42  ;;  %v1361_v43 = vld [vmem:[#allocation2 + $0x121] sm:$0xff] }
  0x5a   : > { %1532 = vst.msk [vmem:[#allocation3 + $0xe8] sm:$0xff] %vm413_vm0, %v2992_v60  ;;  %v1383_v51 = vpack.c.bf16 %v1362_v44, %v1361_v43  ;;  %v1240_v44 = vld [vmem:[#allocation2 + $0x180] sm:$0xff] }
  0x5b   : > { %638 = vrot.lane.b32.xlu0 %v1375_v53, %s2523_s9  ;;  %v512_v53 = vld [vmem:[#allocation2 + $0x78] sm:$0xff] }
  0x5c   : > { %1152 = vrot.lane.b32.xlu1 %v2794_v17, %s2525_s21  ;;  %v539_v25 = vpack.c.bf16 %v513_v20, %v512_v53  ;;  %v1253_v20 = vpack.c.bf16 %v1231_v18, %v1230_v12 }
  0x5e   : > { %555 = vst.msk [vmem:[#allocation3 + $0x50] sm:$0xff] %vm413_vm0, %v539_v25  ;;  %v1482_v25 = vld [vmem:[#allocation2 + $0xc2] sm:$0xff] }
  0x5f   : > { %767 = vrot.lane.b32.xlu0 %v2794_v17, %s2524_s12  ;;  %v841_v17 = vld [vmem:[#allocation2 + $0xe0] sm:$0xff]  ;;  %v1508_v27 = vpack.c.bf16 %v1483_v26, %v1482_v25  ;;  %v1543_v26 = vld [vmem:[#allocation3 + $0x48] sm:$0xff] }
  0x60   : > { %1411 = vrot.lane.b32.xlu1 %v2927_v16, %s2527_s26  ;;  %v2953_v15 = vpack.c.bf16 %v841_v17, %v840_v63  ;;  %v514_v63 = vld [vmem:[#allocation2 + $0x90] sm:$0xff]  ;;  %v515_v17 = vld [vmem:[#allocation2 + $0x98] sm:$0xff] }
  0x61   : > { %1524 = vst.msk [vmem:[#allocation3 + $0x68] sm:$0xff] %vm413_vm0, %v1508_v27 }
  0x63   : > { %896 = vrot.lane.b32.xlu0 %v1247_v34, %s2526_s23  ;;  %v1098_v34 = vld [vmem:[#allocation2 + $0xda] sm:$0xff] }
  0x64   : > { %646 = vrot.lane.b32.xlu1 %v2937_v52, %s2523_s9  ;;  %v1122_v40 = vpack.c.bf16 %v1099_v2, %v1098_v34 }
  0x67   : > { %1025 = vrot.lane.b32.xlu0 %v2927_v16, %s2528_s28 }
  0x68   : > { %775 = vrot.lane.b32.xlu1 %v2942_v62, %s2524_s12 }
  0x6b   : > { %1154 = vrot.lane.b32.xlu0 %v2819_v29, %s2525_s21 }
  0x6c   : > { %904 = vrot.lane.b32.xlu1 %v2953_v15, %s2526_s23 }
  0x6f   : > { %1284 = vrot.lane.b32.xlu0 %v1248_v28, %s2529_s29 }
  0x70   : > { %1033 = vrot.lane.b32.xlu1 %v2968_v4, %s2528_s28 }
  0x73   : > { %1413 = vrot.lane.b32.xlu0 %v1377_v6, %s2527_s26 }
  0x74   : > { %1162 = vrot.lane.b32.xlu1 %v1122_v40, %s2525_s21 }
  0x77   : > { %640 = vrot.lane.b32.xlu0 %v2927_v16, %s2523_s9  ;;  %v1222_v16 = vld [vmem:[#allocation2 + $0xa8] sm:$0xff] }
  0x78   : > { %1292 = vrot.lane.b32.xlu1 %v1252_v48, %s2529_s29  ;;  %v1249_v3 = vpack.c.bf16 %v1223_v61, %v1222_v16  ;;  %v1484_v16 = vld [vmem:[#allocation2 + $0xda] sm:$0xff]  ;;  %v1485_v61 = vld [vmem:[#allocation2 + $0xe2] sm:$0xff] }
  0x7b   : > { %769 = vrot.lane.b32.xlu0 %v2819_v29, %s2524_s12  ;;  %v540_v29 = vpack.c.bf16 %v515_v17, %v514_v63  ;;  %v1509_v63 = vpack.c.bf16 %v1485_v61, %v1484_v16  ;;  %v1242_v16 = vld [vmem:[#allocation2 + $0x198] sm:$0xff]  ;;  %v1243_v61 = vld [vmem:[#allocation2 + $0x1a0] sm:$0xff] }
  0x7c   : > { %1421 = vrot.lane.b32.xlu1 %v1381_v55, %s2527_s26 }
  0x7d   : > { %556 = vst.msk [vmem:[#allocation3 + $0x60] sm:$0xff] %vm413_vm0, %v540_v29  ;;  %1525 = vst.msk [vmem:[#allocation3 + $0x78] sm:$0xff] %vm413_vm0, %v1509_v63 }
  0x7f   : > { %898 = vrot.lane.b32.xlu0 %v1248_v28, %s2526_s23 }
  0x80   : > { %648 = vrot.lane.b32.xlu1 %v2968_v4, %s2523_s9 }
  0x83   : > { %1027 = vrot.lane.b32.xlu0 %v1377_v6, %s2528_s28  ;;  %v631_v53 = vpop.permute.xlu0 %630 }
  0x84   : > { %777 = vrot.lane.b32.xlu1 %v1122_v40, %s2524_s12  ;;  %679 = vst.msk [vmem:[#allocation3] sm:$0xff] %vm678_vm2, %v631_v53  ;;  %v1365_v53 = vld [vmem:[#allocation2 + $0x151] sm:$0xff] }
  0x87   : > { %1156 = vrot.lane.b32.xlu0 %v2831_v1, %s2525_s21  ;;  %v760_v23 = vpop.permute.xlu0 %759 }
  0x88   : > { %906 = vrot.lane.b32.xlu1 %v1252_v48, %s2526_s23  ;;  %808 = vst.msk [vmem:[#allocation3] sm:$0xff] %vm807_vm3, %v760_v23  ;;  %v1537_v48 = vld [vmem:[#allocation3 + $0x18] sm:$0xff] }
  0x8b   : > { %1286 = vrot.lane.b32.xlu0 %v1249_v3, %s2529_s29 }
  0x8c   : > { %1035 = vrot.lane.b32.xlu1 %v1381_v55, %s2528_s28 }
  0x8f   : > { %1415 = vrot.lane.b32.xlu0 %v3003_v39, %s2527_s26 }
  0x90   : > { %1164 = vrot.lane.b32.xlu1 %v2848_v45, %s2525_s21 }
  0x93   : > { %642 = vrot.lane.b32.xlu0 %v1377_v6, %s2523_s9  ;;  %v524_v6 = vld [vmem:[#allocation2 + $0x108] sm:$0xff] }
  0x94   : > { %1294 = vrot.lane.b32.xlu1 %v1253_v20, %s2529_s29  ;;  %v545_v36 = vpack.c.bf16 %v525_v35, %v524_v6  ;;  %v1370_v35 = vld [vmem:[#allocation2 + $0x189] sm:$0xff] }
  0x96   : > { %561 = vst.msk [vmem:[#allocation3 + $0xb0] sm:$0xff] %vm413_vm0, %v545_v36  ;;  %v1545_v36 = vld [vmem:[#allocation3 + $0x58] sm:$0xff] }
  0x97   : > { %771 = vrot.lane.b32.xlu0 %v2831_v1, %s2524_s12  ;;  %v516_v1 = vld [vmem:[#allocation2 + $0xa8] sm:$0xff] }
  0x98   : > { %1423 = vrot.lane.b32.xlu1 %v3015_v24, %s2527_s26  ;;  %v541_v32 = vpack.c.bf16 %v517_v31, %v516_v1 }
  0x9a   : > { %557 = vst.msk [vmem:[#allocation3 + $0x70] sm:$0xff] %vm413_vm0, %v541_v32  ;;  %v1367_v32 = vld [vmem:[#allocation2 + $0x169] sm:$0xff] }
  0x9b   : > { %900 = vrot.lane.b32.xlu0 %v1249_v3, %s2526_s23 }
  0x9c   : > { %650 = vrot.lane.b32.xlu1 %v1381_v55, %s2523_s9 }
  0x9d   : > { %v1147_v28 = vpop.permute.xlu0 %1146 }
  0x9e   : > { %v889_v30 = vpop.permute.xlu1 %888 }
  0x9f   : > { %937 = vst.msk [vmem:[#allocation3] sm:$0xff] %vm936_vm4, %v889_v30  ;;  %1029 = vrot.lane.b32.xlu0 %v3003_v39, %s2528_s28 }
  0xa0   : > { %779 = vrot.lane.b32.xlu1 %v2848_v45, %s2524_s12 }
  0xa1   : > { %v1406_v33 = vpop.permute.xlu0 %1405 }
  0xa2   : > { %v1018_v34 = vpop.permute.xlu1 %1017 }
  0xa3   : > { %1066 = vst.msk [vmem:[#allocation3] sm:$0xff] %vm1065_vm5, %v1018_v34  ;;  %1158 = vrot.lane.b32.xlu0 %v2852_v57, %s2525_s21 }
  0xa4   : > { %908 = vrot.lane.b32.xlu1 %v1253_v20, %s2526_s23  ;;  %1195 = vst.msk [vmem:[#allocation3] sm:$0xff] %vm1194_vm6, %v1147_v28  ;;  %v1366_v20 = vld [vmem:[#allocation2 + $0x159] sm:$0xff] }
  0xa5   : > { %v762_v2 = vpop.permute.xlu0 %761  ;;  %v1385_v23 = vpack.c.bf16 %v1366_v20, %v1365_v53 }
  0xa6   : > { %v1277_v45 = vpop.permute.xlu1 %1276 }
  0xa7   : > { %1325 = vst.msk [vmem:[#allocation3] sm:$0xff] %vm1324_vm7, %v1277_v45  ;;  %1288 = vrot.lane.b32.xlu0 %v2833_v38, %s2529_s29 }
  0xa8   : > { %1454 = vst.msk [vmem:[#allocation3] sm:$0xff] %vm1453_vm8, %v1406_v33  ;;  %1037 = vrot.lane.b32.xlu1 %v3015_v24, %s2528_s28  ;;  %v1368_v33 = vld [vmem:[#allocation2 + $0x171] sm:$0xff] }
  0xa9   : > { %v1020_v40 = vpop.permute.xlu0 %1019 }
  0xaa   : > { %v633_v41 = vpop.permute.xlu1 %632 }
  0xab   : > { %680 = vst.msk [vmem:[#allocation3 + $0x10] sm:$0xff] %vm678_vm2, %v633_v41  ;;  %1417 = vrot.lane.b32.xlu0 %v2937_v52, %s2527_s26 }
  0xac   : > { %809 = vst.msk [vmem:[#allocation3 + $0x10] sm:$0xff] %vm807_vm3, %v762_v2  ;;  %1166 = vrot.lane.b32.xlu1 %v2866_v0, %s2525_s21  ;;  %v1386_v2 = vpack.c.bf16 %v1368_v33, %v1367_v32  ;;  %v1557_v32 = vld [vmem:[#allocation3 + $0xb8] sm:$0xff] }
  0xad   : > { %v1279_v42 = vpop.permute.xlu0 %1278 }
  0xae   : > { %v891_v46 = vpop.permute.xlu1 %890 }
  0xaf   : > { %938 = vst.msk [vmem:[#allocation3 + $0x10] sm:$0xff] %vm936_vm4, %v891_v46  ;;  %v1534_v50 = vld [vmem:[#allocation3] sm:$0xff]  ;;  %644 = vrot.lane.b32.xlu0 %v3003_v39, %s2523_s9  ;;  %v1363_v39 = vld [vmem:[#allocation2 + $0x139] sm:$0xff]  ;;  %v1241_v46 = vld [vmem:[#allocation2 + $0x188] sm:$0xff] }
  0xb0   : > { %1067 = vst.msk [vmem:[#allocation3 + $0x10] sm:$0xff] %vm1065_vm5, %v1020_v40  ;;  %1719 = vmatmul.mubr.bf16.vlgmr.msra.gmra.mrb[0].mxu0 %v1534_v50  ;;  %1296 = vrot.lane.b32.xlu1 %v2877_v14, %s2529_s29  ;;  %v1258_v50 = vpack.c.bf16 %v1241_v46, %v1240_v44 }
  0xb1   : > { %v635_v54 = vpop.permute.xlu0 %634  ;;  %2307 = vmatprep.mubr.msk.bf16.mxu0 %vm413_vm0, %v1537_v48 }
  0xb2   : > { %681 = vst.msk [vmem:[#allocation3 + $0x20] sm:$0xff] %vm678_vm2, %v635_v54  ;;  %v1149_v55 = vpop.permute.xlu1 %1148  ;;  %v1553_v54 = vld [vmem:[#allocation3 + $0x98] sm:$0xff] }
  0xb3   : > { %1196 = vst.msk [vmem:[#allocation3 + $0x10] sm:$0xff] %vm1194_vm6, %v1149_v55  ;;  %773 = vrot.lane.b32.xlu0 %v2852_v57, %s2524_s12  ;;  %v1539_v57 = vld [vmem:[#allocation3 + $0x28] sm:$0xff] }
  0xb4   : > { %1326 = vst.msk [vmem:[#allocation3 + $0x10] sm:$0xff] %vm1324_vm7, %v1279_v42  ;;  %1425 = vrot.lane.b32.xlu1 %v1383_v51, %s2527_s26 }
  0xb5   : > { %v893_v56 = vpop.permute.xlu0 %892 }
  0xb6   : > { %v1408_v59 = vpop.permute.xlu1 %1407 }
  0xb7   : > { %1455 = vst.msk [vmem:[#allocation3 + $0x10] sm:$0xff] %vm1453_vm8, %v1408_v59  ;;  %902 = vrot.lane.b32.xlu0 %v2833_v38, %s2526_s23  ;;  %v1501_v59 = vld [vmem:[#allocation2 + $0x1a2] sm:$0xff] }
  0xb8   : > { %652 = vrot.lane.b32.xlu1 %v3015_v24, %s2523_s9 }
  0xb9   : > { %v1151_v17 = vpop.permute.xlu0 %1150 }
  0xba   : > { %v764_v29 = vpop.permute.xlu1 %763 }
  0xbb   : > { %810 = vst.msk [vmem:[#allocation3 + $0x20] sm:$0xff] %vm807_vm3, %v764_v29  ;;  %1031 = vrot.lane.b32.xlu0 %v2937_v52, %s2528_s28 }
  0xbc   : > { %939 = vst.msk [vmem:[#allocation3 + $0x20] sm:$0xff] %vm936_vm4, %v893_v56  ;;  %781 = vrot.lane.b32.xlu1 %v2866_v0, %s2524_s12 }
  0xbd   : > { %v1410_v38 = vpop.permute.xlu0 %1409 }
  0xbe   : > { %v1022_v3 = vpop.permute.xlu1 %1021  ;;  %v1536_v5 = vld [vmem:[#allocation3 + $0x10] sm:$0xff] }
  0xbf   : > { %1068 = vst.msk [vmem:[#allocation3 + $0x20] sm:$0xff] %vm1065_vm5, %v1022_v3  ;;  %1727 = vmatmul.mubr.bf16.gmra.mrb[4].mxu0 %v1536_v5  ;;  %1160 = vrot.lane.b32.xlu0 %v2942_v62, %s2525_s21  ;;  %v1371_v5 = vld [vmem:[#allocation2 + $0x199] sm:$0xff] }
  0xc0   : > { %1197 = vst.msk [vmem:[#allocation3 + $0x20] sm:$0xff] %vm1194_vm6, %v1151_v17  ;;  %910 = vrot.lane.b32.xlu1 %v2877_v14, %s2526_s23  ;;  %2308 = vmatprep.mubr.msk.bf16.mxu0 %vm413_vm0, %v1539_v57 }
  0xc1   : > { %v766_v52 = vpop.permute.xlu0 %765 }
  0xc2   : > { %v1281_v7 = vpop.permute.xlu1 %1280 }
  0xc3   : > { %1327 = vst.msk [vmem:[#allocation3 + $0x20] sm:$0xff] %vm1324_vm7, %v1281_v7  ;;  %1290 = vrot.lane.b32.xlu0 %v2953_v15, %s2529_s29 }
  0xc4   : > { %1456 = vst.msk [vmem:[#allocation3 + $0x20] sm:$0xff] %vm1453_vm8, %v1410_v38  ;;  %1039 = vrot.lane.b32.xlu1 %v1383_v51, %s2528_s28 }
  0xc5   : > { %v1024_v0 = vpop.permute.xlu0 %1023 }
  0xc6   : > { %v637_v62 = vpop.permute.xlu1 %636 }
  0xc7   : > { %682 = vst.msk [vmem:[#allocation3 + $0x30] sm:$0xff] %vm678_vm2, %v637_v62  ;;  %1419 = vrot.lane.b32.xlu0 %v2968_v4, %s2527_s26  ;;  %v1384_v4 = vpack.c.bf16 %v1364_v9, %v1363_v39  ;;  %v1547_v39 = vld [vmem:[#allocation3 + $0x68] sm:$0xff] }
  0xc8   : > { %811 = vst.msk [vmem:[#allocation3 + $0x30] sm:$0xff] %vm807_vm3, %v766_v52  ;;  %1168 = vrot.lane.b32.xlu1 %v2883_v19, %s2525_s21  ;;  %v1372_v52 = vld [vmem:[#allocation2 + $0x1a1] sm:$0xff] }
  0xc9   : > { %v1283_v14 = vpop.permute.xlu0 %1282 }
  0xca   : > { %v895_v15 = vpop.permute.xlu1 %894 }
  0xcb   : > { %940 = vst.msk [vmem:[#allocation3 + $0x30] sm:$0xff] %vm936_vm4, %v895_v15  ;;  %v1538_v11 = vld [vmem:[#allocation3 + $0x20] sm:$0xff]  ;;  %654 = vrot.lane.b32.xlu0 %v1383_v51, %s2523_s9 }
  0xcc   : > { %1069 = vst.msk [vmem:[#allocation3 + $0x30] sm:$0xff] %vm1065_vm5, %v1024_v0  ;;  %1298 = vrot.lane.b32.xlu1 %v2896_v58, %s2529_s29  ;;  %1735 = vmatmul.mubr.bf16.gmra.mrb[8].mxu0 %v1538_v11  ;;  %v1388_v0 = vpack.c.bf16 %v1372_v52, %v1371_v5 }
  0xcd   : > { %v639_v12 = vpop.permute.xlu0 %638  ;;  %2309 = vmatprep.mubr.msk.bf16.mxu0 %vm413_vm0, %v1541_v10 }
  0xce   : > { %683 = vst.msk [vmem:[#allocation3 + $0x40] sm:$0xff] %vm678_vm2, %v639_v12  ;;  %v1153_v18 = vpop.permute.xlu1 %1152  ;;  %v1555_v12 = vld [vmem:[#allocation3 + $0xa8] sm:$0xff] }
  0xcf   : > { %1198 = vst.msk [vmem:[#allocation3 + $0x30] sm:$0xff] %vm1194_vm6, %v1153_v18  ;;  %912 = vrot.lane.b32.xlu0 %v2896_v58, %s2526_s23 }
  0xd0   : > { %1328 = vst.msk [vmem:[#allocation3 + $0x30] sm:$0xff] %vm1324_vm7, %v1283_v14  ;;  %1427 = vrot.lane.b32.xlu1 %v1384_v4, %s2527_s26 }
  0xd1   : > { %v768_v21 = vpop.permute.xlu0 %767 }
  0xd2   : > { %812 = vst.msk [vmem:[#allocation3 + $0x40] sm:$0xff] %vm807_vm3, %v768_v21  ;;  %v1412_v22 = vpop.permute.xlu1 %1411 }
  0xd3   : > { %1457 = vst.msk [vmem:[#allocation3 + $0x30] sm:$0xff] %vm1453_vm8, %v1412_v22  ;;  %1170 = vrot.lane.b32.xlu0 %v2912_v37, %s2525_s21 }
  0xd4   : > { %783 = vrot.lane.b32.xlu1 %v2883_v19, %s2524_s12 }
  0xd5   : > { %v897_v58 = vpop.permute.xlu0 %896 }
  0xd6   : > { %941 = vst.msk [vmem:[#allocation3 + $0x40] sm:$0xff] %vm936_vm4, %v897_v58  ;;  %v647_v24 = vpop.permute.xlu1 %646 }
  0xd7   : > { %687 = vst.msk [vmem:[#allocation3 + $0x80] sm:$0xff] %vm678_vm2, %v647_v24  ;;  %1429 = vrot.lane.b32.xlu0 %v1385_v23, %s2527_s26 }
  0xd8   : > { %1041 = vrot.lane.b32.xlu1 %v1384_v4, %s2528_s28 }
  0xd9   : > { %v1026_v25 = vpop.permute.xlu0 %1025 }
  0xda   : > { %1070 = vst.msk [vmem:[#allocation3 + $0x40] sm:$0xff] %vm1065_vm5, %v1026_v25  ;;  %v776_v27 = vpop.permute.xlu1 %775  ;;  %v1540_v28 = vld [vmem:[#allocation3 + $0x30] sm:$0xff] }
  0xdb   : > { %816 = vst.msk [vmem:[#allocation3 + $0x80] sm:$0xff] %vm807_vm3, %v776_v27  ;;  %1743 = vmatmul.mubr.bf16.gmra.mrb[12].mxu0 %v1540_v28  ;;  %785 = vrot.lane.b32.xlu0 %v2912_v37, %s2524_s12  ;;  %v1549_v27 = vld [vmem:[#allocation3 + $0x78] sm:$0xff] }
  0xdc   : > { %1300 = vrot.lane.b32.xlu1 %v2920_v49, %s2529_s29  ;;  %2310 = vmatprep.mubr.msk.bf16.mxu0 %vm413_vm0, %v1543_v26 }
  0xdd   : > { %v1155_v19 = vpop.permute.xlu0 %1154 }
  0xde   : > { %1199 = vst.msk [vmem:[#allocation3 + $0x40] sm:$0xff] %vm1194_vm6, %v1155_v19  ;;  %v905_v30 = vpop.permute.xlu1 %904 }
  0xdf   : > { %945 = vst.msk [vmem:[#allocation3 + $0x80] sm:$0xff] %vm936_vm4, %v905_v30  ;;  %1043 = vrot.lane.b32.xlu0 %v1385_v23, %s2528_s28 }
  0xe0   : > { %656 = vrot.lane.b32.xlu1 %v1384_v4, %s2523_s9 }
  0xe1   : > { %v1285_v1 = vpop.permute.xlu0 %1284 }
  0xe2   : > { %1329 = vst.msk [vmem:[#allocation3 + $0x40] sm:$0xff] %vm1324_vm7, %v1285_v1  ;;  %v1034_v31 = vpop.permute.xlu1 %1033 }
  0xe3   : > { %1074 = vst.msk [vmem:[#allocation3 + $0x80] sm:$0xff] %vm1065_vm5, %v1034_v31  ;;  %1302 = vrot.lane.b32.xlu0 %v2949_v13, %s2529_s29 }
  0xe4   : > { %914 = vrot.lane.b32.xlu1 %v2920_v49, %s2526_s23  ;;  %v1369_v49 = vld [vmem:[#allocation2 + $0x181] sm:$0xff] }
  0xe5   : > { %v1414_v37 = vpop.permute.xlu0 %1413  ;;  %v1387_v43 = vpack.c.bf16 %v1370_v35, %v1369_v49 }
  0xe6   : > { %1458 = vst.msk [vmem:[#allocation3 + $0x40] sm:$0xff] %vm1453_vm8, %v1414_v37  ;;  %v1163_v34 = vpop.permute.xlu1 %1162 }
  0xe7   : > { %1203 = vst.msk [vmem:[#allocation3 + $0x80] sm:$0xff] %vm1194_vm6, %v1163_v34  ;;  %658 = vrot.lane.b32.xlu0 %v1385_v23, %s2523_s9 }
  0xe8   : > { %1172 = vrot.lane.b32.xlu1 %v2945_v8, %s2525_s21 }
  0xe9   : > { %v641_v45 = vpop.permute.xlu0 %640 }
  0xea   : > { %684 = vst.msk [vmem:[#allocation3 + $0x50] sm:$0xff] %vm678_vm2, %v641_v45  ;;  %v1293_v6 = vpop.permute.xlu1 %1292 }
  0xeb   : > { %1333 = vst.msk [vmem:[#allocation3 + $0x80] sm:$0xff] %vm1324_vm7, %v1293_v6  ;;  %916 = vrot.lane.b32.xlu0 %v2949_v13, %s2526_s23 }
  0xec   : > { %1431 = vrot.lane.b32.xlu1 %v1386_v2, %s2527_s26 }
  0xed   : > { %v770_v40 = vpop.permute.xlu0 %769  ;;  %v1542_v41 = vld [vmem:[#allocation3 + $0x40] sm:$0xff] }
  0xee   : > { %813 = vst.msk [vmem:[#allocation3 + $0x50] sm:$0xff] %vm807_vm3, %v770_v40  ;;  %v1422_v42 = vpop.permute.xlu1 %1421  ;;  %1751 = vmatmul.mubr.bf16.gmra.mrb[16].mxu0 %v1542_v41 }
  0xef   : > { %1462 = vst.msk [vmem:[#allocation3 + $0x80] sm:$0xff] %vm1453_vm8, %v1422_v42  ;;  %1174 = vrot.lane.b32.xlu0 %v2977_v47, %s2525_s21  ;;  %2311 = vmatprep.mubr.msk.bf16.mxu0 %vm413_vm0, %v1545_v36 }
  0xf0   : > { %787 = vrot.lane.b32.xlu1 %v2945_v8, %s2524_s12  ;;  %v1500_v8 = vld [vmem:[#allocation2 + $0x19a] sm:$0xff] }
  0xf1   : > { %v899_v13 = vpop.permute.xlu0 %898  ;;  %v1517_v63 = vpack.c.bf16 %v1501_v59, %v1500_v8 }
  0xf2   : > { %942 = vst.msk [vmem:[#allocation3 + $0x50] sm:$0xff] %vm936_vm4, %v899_v13  ;;  %v649_v48 = vpop.permute.xlu1 %648 }
  0xf3   : > { %688 = vst.msk [vmem:[#allocation3 + $0x90] sm:$0xff] %vm678_vm2, %v649_v48  ;;  %1433 = vrot.lane.b32.xlu0 %v1387_v43, %s2527_s26 }
  0xf4   : > { %1045 = vrot.lane.b32.xlu1 %v1386_v2, %s2528_s28  ;;  %1533 = vst.msk [vmem:[#allocation3 + $0xf8] sm:$0xff] %vm413_vm0, %v1517_v63  ;;  %v1561_v63 = vld [vmem:[#allocation3 + $0xd8] sm:$0xff] }
  0xf5   : > { %v1028_v51 = vpop.permute.xlu0 %1027 }
  0xf6   : > { %1071 = vst.msk [vmem:[#allocation3 + $0x50] sm:$0xff] %vm1065_vm5, %v1028_v51  ;;  %v778_v55 = vpop.permute.xlu1 %777  ;;  %v1550_v56 = vld [vmem:[#allocation3 + $0x80] sm:$0xff] }
  0xf7   : > { %817 = vst.msk [vmem:[#allocation3 + $0x90] sm:$0xff] %vm807_vm3, %v778_v55  ;;  %1783 = vmatmul.mubr.bf16.vlgmr.msra.gmra.mrb[0].mxu1 %v1550_v56  ;;  %789 = vrot.lane.b32.xlu0 %v2977_v47, %s2524_s12  ;;  %v1259_v47 = vpack.c.bf16 %v1243_v61, %v1242_v16 }
  0xf8   : > { %1304 = vrot.lane.b32.xlu1 %v1258_v50, %s2529_s29  ;;  %2315 = vmatprep.mubr.msk.bf16.mxu1 %vm413_vm0, %v1553_v54 }
  0xf9   : > { %v1157_v17 = vpop.permute.xlu0 %1156 }
  0xfa   : > { %1200 = vst.msk [vmem:[#allocation3 + $0x50] sm:$0xff] %vm1194_vm6, %v1157_v17  ;;  %v907_v29 = vpop.permute.xlu1 %906 }
  0xfb   : > { %946 = vst.msk [vmem:[#allocation3 + $0x90] sm:$0xff] %vm936_vm4, %v907_v29  ;;  %1047 = vrot.lane.b32.xlu0 %v1387_v43, %s2528_s28 }
  0xfc   : > { %660 = vrot.lane.b32.xlu1 %v1386_v2, %s2523_s9 }
  0xfd   : > { %v1287_v38 = vpop.permute.xlu0 %1286 }
  0xfe   : > { %1330 = vst.msk [vmem:[#allocation3 + $0x50] sm:$0xff] %vm1324_vm7, %v1287_v38  ;;  %v1036_v57 = vpop.permute.xlu1 %1035 }
  0xff   : > { %1075 = vst.msk [vmem:[#allocation3 + $0x90] sm:$0xff] %vm1065_vm5, %v1036_v57  ;;  %1306 = vrot.lane.b32.xlu0 %v1259_v47, %s2529_s29 }
 0x100   : > { %918 = vrot.lane.b32.xlu1 %v1258_v50, %s2526_s23  ;;  %v1559_v50 = vld [vmem:[#allocation3 + $0xc8] sm:$0xff] }
 0x101   : > { %v1416_v3 = vpop.permute.xlu0 %1415 }
 0x102   : > { %1459 = vst.msk [vmem:[#allocation3 + $0x50] sm:$0xff] %vm1453_vm8, %v1416_v3  ;;  %v1165_v7 = vpop.permute.xlu1 %1164 }
 0x103   : > { %1204 = vst.msk [vmem:[#allocation3 + $0x90] sm:$0xff] %vm1194_vm6, %v1165_v7  ;;  %v1563_v7 = vld [vmem:[#allocation3 + $0xe8] sm:$0xff] }
 0x104   : > { %1176 = vrot.lane.b32.xlu1 %v2992_v60, %s2525_s21 }
 0x105   : > { %v643_v62 = vpop.permute.xlu0 %642 }
 0x106   : > { %685 = vst.msk [vmem:[#allocation3 + $0x60] sm:$0xff] %vm678_vm2, %v643_v62  ;;  %v1295_v14 = vpop.permute.xlu1 %1294 }
 0x107   : > { %1334 = vst.msk [vmem:[#allocation3 + $0x90] sm:$0xff] %vm1324_vm7, %v1295_v14 }
 0x108   : > { %1435 = vrot.lane.b32.xlu1 %v1388_v0, %s2527_s26 }
 0x109   : > { %v772_v9 = vpop.permute.xlu0 %771  ;;  %v1544_v15 = vld [vmem:[#allocation3 + $0x50] sm:$0xff] }
 0x10a   : > { %814 = vst.msk [vmem:[#allocation3 + $0x60] sm:$0xff] %vm807_vm3, %v772_v9  ;;  %v1424_v10 = vpop.permute.xlu1 %1423  ;;  %1759 = vmatmul.mubr.bf16.gmra.mrb[20].mxu0 %v1544_v15 }
 0x10b   : > { %1463 = vst.msk [vmem:[#allocation3 + $0x90] sm:$0xff] %vm1453_vm8, %v1424_v10  ;;  %2312 = vmatprep.mubr.msk.bf16.mxu0 %vm413_vm0, %v1547_v39 }
 0x10d   : > { %v901_v60 = vpop.permute.xlu0 %900 }
 0x10e   : > { %943 = vst.msk [vmem:[#allocation3 + $0x60] sm:$0xff] %vm936_vm4, %v901_v60  ;;  %v651_v11 = vpop.permute.xlu1 %650  ;;  %v1565_v60 = vld [vmem:[#allocation3 + $0xf8] sm:$0xff] }
 0x10f   : > { %689 = vst.msk [vmem:[#allocation3 + $0xa0] sm:$0xff] %vm678_vm2, %v651_v11 }
 0x111   : > { %v1030_v4 = vpop.permute.xlu0 %1029 }
 0x112   : > { %1072 = vst.msk [vmem:[#allocation3 + $0x60] sm:$0xff] %vm1065_vm5, %v1030_v4  ;;  %v780_v18 = vpop.permute.xlu1 %779  ;;  %v1552_v53 = vld [vmem:[#allocation3 + $0x90] sm:$0xff] }
 0x113   : > { %818 = vst.msk [vmem:[#allocation3 + $0xa0] sm:$0xff] %vm807_vm3, %v780_v18  ;;  %1791 = vmatmul.mubr.bf16.gmra.mrb[4].mxu1 %v1552_v53 }
 0x114   : > { %2316 = vmatprep.mubr.msk.bf16.mxu1 %vm413_vm0, %v1555_v12 }
 0x115   : > { %v1159_v20 = vpop.permute.xlu0 %1158 }
 0x116   : > { %1201 = vst.msk [vmem:[#allocation3 + $0x60] sm:$0xff] %vm1194_vm6, %v1159_v20  ;;  %v909_v21 = vpop.permute.xlu1 %908 }
 0x117   : > { %947 = vst.msk [vmem:[#allocation3 + $0xa0] sm:$0xff] %vm936_vm4, %v909_v21 }
 0x119   : > { %v1289_v22 = vpop.permute.xlu0 %1288 }
 0x11a   : > { %1331 = vst.msk [vmem:[#allocation3 + $0x60] sm:$0xff] %vm1324_vm7, %v1289_v22  ;;  %v1038_v23 = vpop.permute.xlu1 %1037 }
 0x11b   : > { %1076 = vst.msk [vmem:[#allocation3 + $0xa0] sm:$0xff] %vm1065_vm5, %v1038_v23 }
 0x11d   : > { %v1418_v58 = vpop.permute.xlu0 %1417 }
 0x11e   : > { %1460 = vst.msk [vmem:[#allocation3 + $0x60] sm:$0xff] %vm1453_vm8, %v1418_v58  ;;  %v1167_v24 = vpop.permute.xlu1 %1166 }
 0x11f   : > { %1205 = vst.msk [vmem:[#allocation3 + $0xa0] sm:$0xff] %vm1194_vm6, %v1167_v24 }
 0x121   : > { %v645_v25 = vpop.permute.xlu0 %644 }
 0x122   : > { %686 = vst.msk [vmem:[#allocation3 + $0x70] sm:$0xff] %vm678_vm2, %v645_v25  ;;  %v1297_v26 = vpop.permute.xlu1 %1296 }
 0x123   : > { %1335 = vst.msk [vmem:[#allocation3 + $0xa0] sm:$0xff] %vm1324_vm7, %v1297_v26 }
 0x125   : > { %v774_v28 = vpop.permute.xlu0 %773  ;;  %v1546_v19 = vld [vmem:[#allocation3 + $0x60] sm:$0xff] }
 0x126   : > { %815 = vst.msk [vmem:[#allocation3 + $0x70] sm:$0xff] %vm807_vm3, %v774_v28  ;;  %v1426_v30 = vpop.permute.xlu1 %1425  ;;  %1767 = vmatmul.mubr.bf16.gmra.mrb[24].mxu0 %v1546_v19 }
 0x127   : > { %1464 = vst.msk [vmem:[#allocation3 + $0xa0] sm:$0xff] %vm1453_vm8, %v1426_v30  ;;  %2313 = vmatprep.mubr.msk.bf16.mxu0 %vm413_vm0, %v1549_v27 }
 0x129   : > { %v903_v1 = vpop.permute.xlu0 %902 }
 0x12a   : > { %944 = vst.msk [vmem:[#allocation3 + $0x70] sm:$0xff] %vm936_vm4, %v903_v1  ;;  %v653_v31 = vpop.permute.xlu1 %652 }
 0x12b   : > { %690 = vst.msk [vmem:[#allocation3 + $0xb0] sm:$0xff] %vm678_vm2, %v653_v31 }
 0x12d   : > { %v1032_v37 = vpop.permute.xlu0 %1031 }
 0x12e   : > { %1073 = vst.msk [vmem:[#allocation3 + $0x70] sm:$0xff] %vm1065_vm5, %v1032_v37  ;;  %v782_v33 = vpop.permute.xlu1 %781  ;;  %v1554_v34 = vld [vmem:[#allocation3 + $0xa0] sm:$0xff] }
 0x12f   : > { %819 = vst.msk [vmem:[#allocation3 + $0xb0] sm:$0xff] %vm807_vm3, %v782_v33  ;;  %1799 = vmatmul.mubr.bf16.gmra.mrb[8].mxu1 %v1554_v34 }
 0x130   : > { %2317 = vmatprep.mubr.msk.bf16.mxu1 %vm413_vm0, %v1557_v32 }
 0x131   : > { %v1161_v2 = vpop.permute.xlu0 %1160 }
 0x132   : > { %1202 = vst.msk [vmem:[#allocation3 + $0x70] sm:$0xff] %vm1194_vm6, %v1161_v2  ;;  %v911_v45 = vpop.permute.xlu1 %910 }
 0x133   : > { %948 = vst.msk [vmem:[#allocation3 + $0xb0] sm:$0xff] %vm936_vm4, %v911_v45 }
 0x135   : > { %v1291_v6 = vpop.permute.xlu0 %1290 }
 0x136   : > { %1332 = vst.msk [vmem:[#allocation3 + $0x70] sm:$0xff] %vm1324_vm7, %v1291_v6  ;;  %v1040_v49 = vpop.permute.xlu1 %1039 }
 0x137   : > { %1077 = vst.msk [vmem:[#allocation3 + $0xb0] sm:$0xff] %vm1065_vm5, %v1040_v49 }
 0x139   : > { %v1420_v35 = vpop.permute.xlu0 %1419 }
 0x13a   : > { %1461 = vst.msk [vmem:[#allocation3 + $0x70] sm:$0xff] %vm1453_vm8, %v1420_v35  ;;  %v1169_v36 = vpop.permute.xlu1 %1168 }
 0x13b   : > { %1206 = vst.msk [vmem:[#allocation3 + $0xb0] sm:$0xff] %vm1194_vm6, %v1169_v36 }
 0x13d   : > { %v655_v40 = vpop.permute.xlu0 %654 }
 0x13e   : > { %v1299_v41 = vpop.permute.xlu1 %1298  ;;  %691 = vst.msk [vmem:[#allocation3 + $0xc0] sm:$0xff] %vm678_vm2, %v655_v40 }
 0x13f   : > { %1336 = vst.msk [vmem:[#allocation3 + $0xb0] sm:$0xff] %vm1324_vm7, %v1299_v41 }
 0x141   : > { %v1548_v42 = vld [vmem:[#allocation3 + $0x70] sm:$0xff]  ;;  %v913_v43 = vpop.permute.xlu0 %912 }
 0x142   : > { %v1428_v13 = vpop.permute.xlu1 %1427  ;;  %1775 = vmatmul.mubr.bf16.gmra.mrb[28].mxu0 %v1548_v42 }
 0x143   : > { %1465 = vst.msk [vmem:[#allocation3 + $0xb0] sm:$0xff] %vm1453_vm8, %v1428_v13 }
 0x145   : > { %v1171_v44 = vpop.permute.xlu0 %1170 }
 0x146   : > { %v784_v46 = vpop.permute.xlu1 %783 }
 0x147   : > { %820 = vst.msk [vmem:[#allocation3 + $0xc0] sm:$0xff] %vm807_vm3, %v784_v46 }
 0x148   : > { %949 = vst.msk [vmem:[#allocation3 + $0xc0] sm:$0xff] %vm936_vm4, %v913_v43 }
 0x149   : > { %v1430_v48 = vpop.permute.xlu0 %1429 }
 0x14a   : > { %v1042_v51 = vpop.permute.xlu1 %1041  ;;  %v1556_v54 = vld [vmem:[#allocation3 + $0xb0] sm:$0xff] }
 0x14b   : > { %1078 = vst.msk [vmem:[#allocation3 + $0xc0] sm:$0xff] %vm1065_vm5, %v1042_v51  ;;  %1807 = vmatmul.mubr.bf16.gmra.mrb[12].mxu1 %v1556_v54 }
 0x14c   : > { %1207 = vst.msk [vmem:[#allocation3 + $0xc0] sm:$0xff] %vm1194_vm6, %v1171_v44  ;;  %2318 = vmatprep.mubr.msk.bf16.mxu1 %vm413_vm0, %v1559_v50 }
 0x14d   : > { %v786_v55 = vpop.permute.xlu0 %785 }
 0x14e   : > { %v1301_v56 = vpop.permute.xlu1 %1300 }
 0x14f   : > { %1337 = vst.msk [vmem:[#allocation3 + $0xc0] sm:$0xff] %vm1324_vm7, %v1301_v56 }
 0x150   : > { %1466 = vst.msk [vmem:[#allocation3 + $0xc0] sm:$0xff] %vm1453_vm8, %v1430_v48 }
 0x151   : > { %v1044_v8 = vpop.permute.xlu0 %1043 }
 0x152   : > { %v657_v59 = vpop.permute.xlu1 %656 }
 0x153   : > { %692 = vst.msk [vmem:[#allocation3 + $0xd0] sm:$0xff] %vm678_vm2, %v657_v59 }
 0x154   : > { %821 = vst.msk [vmem:[#allocation3 + $0xd0] sm:$0xff] %vm807_vm3, %v786_v55 }
 0x155   : > { %v1303_v16 = vpop.permute.xlu0 %1302 }
 0x156   : > { %v915_v61 = vpop.permute.xlu1 %914 }
 0x157   : > { %950 = vst.msk [vmem:[#allocation3 + $0xd0] sm:$0xff] %vm936_vm4, %v915_v61  ;;  %v1558_v17 = vld [vmem:[#allocation3 + $0xc0] sm:$0xff] }
 0x158   : > { %1079 = vst.msk [vmem:[#allocation3 + $0xd0] sm:$0xff] %vm1065_vm5, %v1044_v8  ;;  %1815 = vmatmul.mubr.bf16.gmra.mrb[16].mxu1 %v1558_v17 }
 0x159   : > { %v659_v29 = vpop.permute.xlu0 %658  ;;  %2319 = vmatprep.mubr.msk.bf16.mxu1 %vm413_vm0, %v1561_v63 }
 0x15a   : > { %v1173_v47 = vpop.permute.xlu1 %1172  ;;  %693 = vst.msk [vmem:[#allocation3 + $0xe0] sm:$0xff] %vm678_vm2, %v659_v29 }
 0x15b   : > { %1208 = vst.msk [vmem:[#allocation3 + $0xd0] sm:$0xff] %vm1194_vm6, %v1173_v47 }
 0x15c   : > { %1338 = vst.msk [vmem:[#allocation3 + $0xd0] sm:$0xff] %vm1324_vm7, %v1303_v16 }
 0x15d   : > { %v917_v38 = vpop.permute.xlu0 %916 }
 0x15e   : > { %v1432_v57 = vpop.permute.xlu1 %1431 }
 0x15f   : > { %1467 = vst.msk [vmem:[#allocation3 + $0xd0] sm:$0xff] %vm1453_vm8, %v1432_v57 }
 0x161   : > { %v1175_v3 = vpop.permute.xlu0 %1174 }
 0x162   : > { %v788_v5 = vpop.permute.xlu1 %787 }
 0x163   : > { %822 = vst.msk [vmem:[#allocation3 + $0xe0] sm:$0xff] %vm807_vm3, %v788_v5 }
 0x164   : > { %951 = vst.msk [vmem:[#allocation3 + $0xe0] sm:$0xff] %vm936_vm4, %v917_v38 }
 0x165   : > { %v1434_v52 = vpop.permute.xlu0 %1433 }
 0x166   : > { %v1046_v0 = vpop.permute.xlu1 %1045  ;;  %v1560_v62 = vld [vmem:[#allocation3 + $0xd0] sm:$0xff] }
 0x167   : > { %1080 = vst.msk [vmem:[#allocation3 + $0xe0] sm:$0xff] %vm1065_vm5, %v1046_v0  ;;  %1823 = vmatmul.mubr.bf16.gmra.mrb[20].mxu1 %v1560_v62 }
 0x168   : > { %1209 = vst.msk [vmem:[#allocation3 + $0xe0] sm:$0xff] %vm1194_vm6, %v1175_v3  ;;  %2320 = vmatprep.mubr.msk.bf16.mxu1 %vm413_vm0, %v1563_v7 }
 0x169   : > { %v790_v14 = vpop.permute.xlu0 %789 }
 0x16a   : > { %v1305_v39 = vpop.permute.xlu1 %1304 }
 0x16b   : > { %1339 = vst.msk [vmem:[#allocation3 + $0xe0] sm:$0xff] %vm1324_vm7, %v1305_v39 }
 0x16c   : > { %1468 = vst.msk [vmem:[#allocation3 + $0xe0] sm:$0xff] %vm1453_vm8, %v1434_v52 }
 0x16d   : > { %v1048_v15 = vpop.permute.xlu0 %1047 }
 0x16e   : > { %v661_v9 = vpop.permute.xlu1 %660 }
 0x16f   : > { %694 = vst.msk [vmem:[#allocation3 + $0xf0] sm:$0xff] %vm678_vm2, %v661_v9 }
 0x170   : > { %823 = vst.msk [vmem:[#allocation3 + $0xf0] sm:$0xff] %vm807_vm3, %v790_v14 }
 0x171   : > { %v1307_v4 = vpop.permute.xlu0 %1306 }
 0x172   : > { %v919_v10 = vpop.permute.xlu1 %918 }
 0x173   : > { %952 = vst.msk [vmem:[#allocation3 + $0xf0] sm:$0xff] %vm936_vm4, %v919_v10  ;;  %v1562_v11 = vld [vmem:[#allocation3 + $0xe0] sm:$0xff] }
 0x174   : > { %1831 = vmatmul.mubr.bf16.gmra.mrb[24].mxu1 %v1562_v11  ;;  %1081 = vst.msk [vmem:[#allocation3 + $0xf0] sm:$0xff] %vm1065_vm5, %v1048_v15 }
 0x175   : > { %2321 = vmatprep.mubr.msk.bf16.mxu1 %vm413_vm0, %v1565_v60 }
 0x176   : > { %v1177_v12 = vpop.permute.xlu1 %1176 }
 0x177   : > { %1210 = vst.msk [vmem:[#allocation3 + $0xf0] sm:$0xff] %vm1194_vm6, %v1177_v12 }
 0x178   : > { %1340 = vst.msk [vmem:[#allocation3 + $0xf0] sm:$0xff] %vm1324_vm7, %v1307_v4 }
 0x17a   : > { %v1436_v18 = vpop.permute.xlu1 %1435 }
 0x17b   : > { %1469 = vst.msk [vmem:[#allocation3 + $0xf0] sm:$0xff] %vm1453_vm8, %v1436_v18 }
 0x182   : > { %v1564_v53 = vld [vmem:[#allocation3 + $0xf0] sm:$0xff] }
 0x183   : > { %v1720_v20 = vpop.f32.mrb[0].mxu0  ;;  %1839 = vmatmul.mubr.bf16.gmra.mrb[28].mxu1 %v1564_v53 }
 0x184   : > { %v1847_v21 = vsel %vm413_vm0, %v1720_v20, 0.0  ;;  %v1918_v22 = vmul.f32 %v1720_v20, %v1720_v20  ;;  %v2358_v23 = vpack.c.bf16 %v1720_v20, %v1720_v20  ;;  %v1722_v58 = vpop.f32.mrb[1].mxu0 }
 0x185   : > { %v1723_v24 = vpop.f32.mrb[2].mxu0 }
 0x186   : > { %v1950_v25 = vsel %vm413_vm0, %v1918_v22, 0.0  ;;  %2149 = vst.msk [vmem:[%s3242_s8] sm:$0xf] %vm2148_vm9, %v2358_v23  ;;  %v1848_v26 = vsel %vm413_vm0, %v1723_v24, 0.0  ;;  %v1919_v27 = vmul.f32 %v1723_v24, %v1723_v24  ;;  %v2359_v28 = vpack.c.bf16 %v1723_v24, %v1723_v24  ;;  %v1725_v19 = vpop.f32.mrb[3].mxu0 }
 0x187   : > { %v1849_v30 = vadd.f32 %v1848_v26, %v1847_v21 }
 0x188   : > { %v1951_v1 = vsel %vm413_vm0, %v1919_v27, 0.0  ;;  %2150 = vst.msk [vmem:[%s3242_s8 + $0x4] sm:$0xf] %vm2148_vm9, %v2359_v28 }
 0x189   : > { %v1952_v31 = vadd.f32 %v1951_v1, %v1950_v25 }
 0x192   : > { %v1728_v37 = vpop.f32.mrb[4].mxu0 }
 0x193   : > { %v1850_v32 = vsel %vm413_vm0, %v1728_v37, 0.0  ;;  %v1920_v33 = vmul.f32 %v1728_v37, %v1728_v37  ;;  %v2360_v34 = vpack.c.bf16 %v1728_v37, %v1728_v37  ;;  %v1730_v2 = vpop.f32.mrb[5].mxu0 }
 0x194   : > { %v1851_v45 = vadd.f32 %v1850_v32, %v1849_v30  ;;  %v1731_v6 = vpop.f32.mrb[6].mxu0 }
 0x195   : > { %v1953_v49 = vsel %vm413_vm0, %v1920_v33, 0.0  ;;  %2151 = vst.msk [vmem:[%s3242_s8 + $0x8] sm:$0xf] %vm2148_vm9, %v2360_v34  ;;  %v1852_v35 = vsel %vm413_vm0, %v1731_v6, 0.0  ;;  %v1921_v36 = vmul.f32 %v1731_v6, %v1731_v6  ;;  %v2361_v40 = vpack.c.bf16 %v1731_v6, %v1731_v6  ;;  %v1733_v41 = vpop.f32.mrb[7].mxu0 }
 0x196   : > { %v1954_v42 = vadd.f32 %v1953_v49, %v1952_v31  ;;  %v1853_v43 = vadd.f32 %v1852_v35, %v1851_v45 }
 0x197   : > { %v1955_v13 = vsel %vm413_vm0, %v1921_v36, 0.0  ;;  %2152 = vst.msk [vmem:[%s3242_s8 + $0xc] sm:$0xf] %vm2148_vm9, %v2361_v40 }
 0x198   : > { %v1956_v44 = vadd.f32 %v1955_v13, %v1954_v42 }
 0x19f   : > { %v1736_v46 = vpop.f32.mrb[8].mxu0 }
 0x1a0   : > { %v1854_v48 = vsel %vm413_vm0, %v1736_v46, 0.0  ;;  %v1922_v50 = vmul.f32 %v1736_v46, %v1736_v46  ;;  %v2362_v51 = vpack.c.bf16 %v1736_v46, %v1736_v46  ;;  %v1738_v54 = vpop.f32.mrb[9].mxu0 }
 0x1a1   : > { %v1855_v55 = vadd.f32 %v1854_v48, %v1853_v43  ;;  %v1739_v56 = vpop.f32.mrb[10].mxu0 }
 0x1a2   : > { %v1957_v8 = vsel %vm413_vm0, %v1922_v50, 0.0  ;;  %2153 = vst.msk [vmem:[%s3242_s8 + $0x10] sm:$0xf] %vm2148_vm9, %v2362_v51  ;;  %v1856_v59 = vsel %vm413_vm0, %v1739_v56, 0.0  ;;  %v1923_v16 = vmul.f32 %v1739_v56, %v1739_v56  ;;  %v2363_v61 = vpack.c.bf16 %v1739_v56, %v1739_v56  ;;  %v1741_v63 = vpop.f32.mrb[11].mxu0 }
 0x1a3   : > { %v1958_v17 = vadd.f32 %v1957_v8, %v1956_v44  ;;  %v1857_v29 = vadd.f32 %v1856_v59, %v1855_v55 }
 0x1a4   : > { %v1959_v47 = vsel %vm413_vm0, %v1923_v16, 0.0  ;;  %2154 = vst.msk [vmem:[%s3242_s8 + $0x14] sm:$0xf] %vm2148_vm9, %v2363_v61 }
 0x1a5   : > { %v1960_v38 = vadd.f32 %v1959_v47, %v1958_v17 }
 0x1ae   : > { %v1744_v57 = vpop.f32.mrb[12].mxu0 }
 0x1af   : > { %v1858_v3 = vsel %vm413_vm0, %v1744_v57, 0.0  ;;  %v1924_v5 = vmul.f32 %v1744_v57, %v1744_v57  ;;  %v2364_v52 = vpack.c.bf16 %v1744_v57, %v1744_v57  ;;  %v1746_v7 = vpop.f32.mrb[13].mxu0 }
 0x1b0   : > { %v1859_v0 = vadd.f32 %v1858_v3, %v1857_v29  ;;  %v1747_v62 = vpop.f32.mrb[14].mxu0 }
 0x1b1   : > { %v1961_v14 = vsel %vm413_vm0, %v1924_v5, 0.0  ;;  %2155 = vst.msk [vmem:[%s3242_s8 + $0x18] sm:$0xf] %vm2148_vm9, %v2364_v52  ;;  %v1860_v39 = vsel %vm413_vm0, %v1747_v62, 0.0  ;;  %v1925_v9 = vmul.f32 %v1747_v62, %v1747_v62  ;;  %v2365_v15 = vpack.c.bf16 %v1747_v62, %v1747_v62  ;;  %v1749_v10 = vpop.f32.mrb[15].mxu0 }
 0x1b2   : > { %v1962_v60 = vadd.f32 %v1961_v14, %v1960_v38  ;;  %v1861_v11 = vadd.f32 %v1860_v39, %v1859_v0 }
 0x1b3   : > { %v1963_v4 = vsel %vm413_vm0, %v1925_v9, 0.0  ;;  %2156 = vst.msk [vmem:[%s3242_s8 + $0x1c] sm:$0xf] %vm2148_vm9, %v2365_v15 }
 0x1b4   : > { %v1964_v12 = vadd.f32 %v1963_v4, %v1962_v60 }
 0x1c1   : > { %v1752_v18 = vpop.f32.mrb[16].mxu0 }
 0x1c2   : > { %v1862_v53 = vsel %vm413_vm0, %v1752_v18, 0.0  ;;  %v1926_v20 = vmul.f32 %v1752_v18, %v1752_v18  ;;  %v2366_v21 = vpack.c.bf16 %v1752_v18, %v1752_v18  ;;  %v1754_v22 = vpop.f32.mrb[17].mxu0 }
 0x1c3   : > { %v1863_v23 = vadd.f32 %v1862_v53, %v1861_v11  ;;  %v1755_v58 = vpop.f32.mrb[18].mxu0 }
 0x1c4   : > { %v1965_v24 = vsel %vm413_vm0, %v1926_v20, 0.0  ;;  %2157 = vst.msk [vmem:[%s3242_s8 + $0x20] sm:$0xf] %vm2148_vm9, %v2366_v21  ;;  %v1864_v25 = vsel %vm413_vm0, %v1755_v58, 0.0  ;;  %v1927_v26 = vmul.f32 %v1755_v58, %v1755_v58  ;;  %v2367_v27 = vpack.c.bf16 %v1755_v58, %v1755_v58  ;;  %v1757_v28 = vpop.f32.mrb[19].mxu0 }
 0x1c5   : > { %v1966_v19 = vadd.f32 %v1965_v24, %v1964_v12  ;;  %v1865_v30 = vadd.f32 %v1864_v25, %v1863_v23 }
 0x1c6   : > { %v1967_v1 = vsel %vm413_vm0, %v1927_v26, 0.0  ;;  %2158 = vst.msk [vmem:[%s3242_s8 + $0x24] sm:$0xf] %vm2148_vm9, %v2367_v27 }
 0x1c7   : > { %v1968_v31 = vadd.f32 %v1967_v1, %v1966_v19 }
 0x1ca   : > { %v3284_v37 = vpop.f32.mrb[0].mxu1 }
 0x1cb   : > { %v2374_v32 = vpack.c.bf16 %v3284_v37, %v3284_v37  ;;  %v1786_v33 = vpop.f32.mrb[1].mxu1  ;;  %v1934_v24 = vmul.f32 %v3284_v37, %v3284_v37 }
 0x1cc   : > { %v3288_v34 = vpop.f32.mrb[2].mxu1  ;;  %v1878_v33 = vsel %vm413_vm0, %v3284_v37, 0.0 }
 0x1cd   : > { %2165 = vst.msk [vmem:[%s3242_s8 + $0x40] sm:$0xf] %vm2148_vm9, %v2374_v32  ;;  %v2375_v2 = vpack.c.bf16 %v3288_v34, %v3288_v34  ;;  %v1789_v45 = vpop.f32.mrb[3].mxu1 }
 0x1cf   : > { %2166 = vst.msk [vmem:[%s3242_s8 + $0x44] sm:$0xf] %vm2148_vm9, %v2375_v2  ;;  %v1935_v2 = vmul.f32 %v3288_v34, %v3288_v34 }
 0x1dd   : > { %v1760_v6 = vpop.f32.mrb[20].mxu0 }
 0x1de   : > { %v1866_v49 = vsel %vm413_vm0, %v1760_v6, 0.0  ;;  %v1928_v35 = vmul.f32 %v1760_v6, %v1760_v6  ;;  %v2368_v36 = vpack.c.bf16 %v1760_v6, %v1760_v6  ;;  %v1762_v40 = vpop.f32.mrb[21].mxu0 }
 0x1df   : > { %v1867_v41 = vadd.f32 %v1866_v49, %v1865_v30  ;;  %v1763_v42 = vpop.f32.mrb[22].mxu0 }
 0x1e0   : > { %v1969_v43 = vsel %vm413_vm0, %v1928_v35, 0.0  ;;  %2159 = vst.msk [vmem:[%s3242_s8 + $0x28] sm:$0xf] %vm2148_vm9, %v2368_v36  ;;  %v1868_v13 = vsel %vm413_vm0, %v1763_v42, 0.0  ;;  %v1929_v44 = vmul.f32 %v1763_v42, %v1763_v42  ;;  %v2369_v46 = vpack.c.bf16 %v1763_v42, %v1763_v42  ;;  %v1765_v48 = vpop.f32.mrb[23].mxu0 }
 0x1e1   : > { %v1970_v50 = vadd.f32 %v1969_v43, %v1968_v31  ;;  %v1869_v51 = vadd.f32 %v1868_v13, %v1867_v41  ;;  %v1981_v35 = vsel %vm413_vm0, %v1934_v24, 0.0  ;;  %v1880_v36 = vsel %vm413_vm0, %v3288_v34, 0.0 }
 0x1e2   : > { %v1971_v54 = vsel %vm413_vm0, %v1929_v44, 0.0  ;;  %2160 = vst.msk [vmem:[%s3242_s8 + $0x2c] sm:$0xf] %vm2148_vm9, %v2369_v46  ;;  %v1983_v43 = vsel %vm413_vm0, %v1935_v2, 0.0 }
 0x1e3   : > { %v1972_v55 = vadd.f32 %v1971_v54, %v1970_v50 }
 0x1e6   : > { %v1792_v56 = vpop.f32.mrb[4].mxu1 }
 0x1e7   : > { %v2376_v8 = vpack.c.bf16 %v1792_v56, %v1792_v56  ;;  %v1794_v59 = vpop.f32.mrb[5].mxu1  ;;  %v1936_v40 = vmul.f32 %v1792_v56, %v1792_v56  ;;  %v1882_v37 = vsel %vm413_vm0, %v1792_v56, 0.0 }
 0x1e8   : > { %v3304_v16 = vpop.f32.mrb[6].mxu1 }
 0x1e9   : > { %2167 = vst.msk [vmem:[%s3242_s8 + $0x48] sm:$0xf] %vm2148_vm9, %v2376_v8  ;;  %v2377_v61 = vpack.c.bf16 %v3304_v16, %v3304_v16  ;;  %v1797_v63 = vpop.f32.mrb[7].mxu1  ;;  %v1937_v13 = vmul.f32 %v3304_v16, %v3304_v16  ;;  %v1884_v34 = vsel %vm413_vm0, %v3304_v16, 0.0 }
 0x1eb   : > { %2168 = vst.msk [vmem:[%s3242_s8 + $0x4c] sm:$0xf] %vm2148_vm9, %v2377_v61  ;;  %v1987_v63 = vsel %vm413_vm0, %v1937_v13, 0.0 }
 0x1f9   : > { %v1768_v17 = vpop.f32.mrb[24].mxu0 }
 0x1fa   : > { %v1870_v29 = vsel %vm413_vm0, %v1768_v17, 0.0  ;;  %v1930_v47 = vmul.f32 %v1768_v17, %v1768_v17  ;;  %v2370_v38 = vpack.c.bf16 %v1768_v17, %v1768_v17  ;;  %v1770_v57 = vpop.f32.mrb[25].mxu0 }
 0x1fb   : > { %v1871_v3 = vadd.f32 %v1870_v29, %v1869_v51  ;;  %v1771_v5 = vpop.f32.mrb[26].mxu0  ;;  %v1985_v51 = vsel %vm413_vm0, %v1936_v40, 0.0 }
 0x1fc   : > { %v1973_v52 = vsel %vm413_vm0, %v1930_v47, 0.0  ;;  %2161 = vst.msk [vmem:[%s3242_s8 + $0x30] sm:$0xf] %vm2148_vm9, %v2370_v38  ;;  %v1872_v7 = vsel %vm413_vm0, %v1771_v5, 0.0  ;;  %v1931_v0 = vmul.f32 %v1771_v5, %v1771_v5  ;;  %v2371_v62 = vpack.c.bf16 %v1771_v5, %v1771_v5  ;;  %v1773_v14 = vpop.f32.mrb[27].mxu0 }
 0x1fd   : > { %v1974_v39 = vadd.f32 %v1973_v52, %v1972_v55  ;;  %v1873_v9 = vadd.f32 %v1872_v7, %v1871_v3 }
 0x1fe   : > { %v1975_v15 = vsel %vm413_vm0, %v1931_v0, 0.0  ;;  %2162 = vst.msk [vmem:[%s3242_s8 + $0x34] sm:$0xf] %vm2148_vm9, %v2371_v62 }
 0x1ff   : > { %v1976_v10 = vadd.f32 %v1975_v15, %v1974_v39 }
 0x202   : > { %v1800_v60 = vpop.f32.mrb[8].mxu1 }
 0x203   : > { %v2378_v11 = vpack.c.bf16 %v1800_v60, %v1800_v60  ;;  %v1802_v4 = vpop.f32.mrb[9].mxu1  ;;  %v1938_v54 = vmul.f32 %v1800_v60, %v1800_v60  ;;  %v1886_v17 = vsel %vm413_vm0, %v1800_v60, 0.0 }
 0x204   : > { %v1803_v12 = vpop.f32.mrb[10].mxu1 }
 0x205   : > { %2169 = vst.msk [vmem:[%s3242_s8 + $0x50] sm:$0xf] %vm2148_vm9, %v2378_v11  ;;  %v2379_v18 = vpack.c.bf16 %v1803_v12, %v1803_v12  ;;  %v1805_v53 = vpop.f32.mrb[11].mxu1  ;;  %v1939_v29 = vmul.f32 %v1803_v12, %v1803_v12  ;;  %v1989_v3 = vsel %vm413_vm0, %v1938_v54, 0.0  ;;  %v1888_v16 = vsel %vm413_vm0, %v1803_v12, 0.0 }
 0x207   : > { %2170 = vst.msk [vmem:[%s3242_s8 + $0x54] sm:$0xf] %vm2148_vm9, %v2379_v18  ;;  %v1991_v0 = vsel %vm413_vm0, %v1939_v29, 0.0 }
 0x215   : > { %v1776_v20 = vpop.f32.mrb[28].mxu0 }
 0x216   : > { %v1874_v21 = vsel %vm413_vm0, %v1776_v20, 0.0  ;;  %v1932_v22 = vmul.f32 %v1776_v20, %v1776_v20  ;;  %v2372_v23 = vpack.c.bf16 %v1776_v20, %v1776_v20  ;;  %v1778_v58 = vpop.f32.mrb[29].mxu0 }
 0x217   : > { %v1875_v25 = vadd.f32 %v1874_v21, %v1873_v9  ;;  %v1779_v26 = vpop.f32.mrb[30].mxu0 }
 0x218   : > { %v1977_v27 = vsel %vm413_vm0, %v1932_v22, 0.0  ;;  %2163 = vst.msk [vmem:[%s3242_s8 + $0x38] sm:$0xf] %vm2148_vm9, %v2372_v23  ;;  %v1876_v28 = vsel %vm413_vm0, %v1779_v26, 0.0  ;;  %v1933_v19 = vmul.f32 %v1779_v26, %v1779_v26  ;;  %v2373_v30 = vpack.c.bf16 %v1779_v26, %v1779_v26  ;;  %v1781_v1 = vpop.f32.mrb[31].mxu0 }
 0x219   : > { %v1978_v31 = vadd.f32 %v1977_v27, %v1976_v10  ;;  %v1877_v32 = vadd.f32 %v1876_v28, %v1875_v25 }
 0x21a   : > { %v1979_v45 = vsel %vm413_vm0, %v1933_v19, 0.0  ;;  %2164 = vst.msk [vmem:[%s3242_s8 + $0x3c] sm:$0xf] %vm2148_vm9, %v2373_v30 }
 0x21b   : > { %v1879_v6 = vadd.f32 %v1878_v33, %v1877_v32  ;;  %v1980_v49 = vadd.f32 %v1979_v45, %v1978_v31 }
 0x21d   : > { %v1881_v41 = vadd.f32 %v1880_v36, %v1879_v6  ;;  %v1982_v42 = vadd.f32 %v1981_v35, %v1980_v49 }
 0x21e   : > { %v1808_v44 = vpop.f32.mrb[12].mxu1 }
 0x21f   : > { %v1883_v46 = vadd.f32 %v1882_v37, %v1881_v41  ;;  %v1984_v48 = vadd.f32 %v1983_v43, %v1982_v42  ;;  %v1810_v50 = vpop.f32.mrb[13].mxu1  ;;  %v2380_v55 = vpack.c.bf16 %v1808_v44, %v1808_v44  ;;  %v1940_v5 = vmul.f32 %v1808_v44, %v1808_v44 }
 0x220   : > { %v1811_v8 = vpop.f32.mrb[14].mxu1  ;;  %v1890_v62 = vsel %vm413_vm0, %v1808_v44, 0.0 }
 0x221   : > { %v1986_v59 = vadd.f32 %v1985_v51, %v1984_v48  ;;  %v1885_v61 = vadd.f32 %v1884_v34, %v1883_v46  ;;  %v1813_v56 = vpop.f32.mrb[15].mxu1  ;;  %2171 = vst.msk [vmem:[%s3242_s8 + $0x58] sm:$0xf] %vm2148_vm9, %v2380_v55  ;;  %v2381_v47 = vpack.c.bf16 %v1811_v8, %v1811_v8  ;;  %v1941_v14 = vmul.f32 %v1811_v8, %v1811_v8 }
 0x222   : > { %v1993_v15 = vsel %vm413_vm0, %v1940_v5, 0.0  ;;  %v1892_v10 = vsel %vm413_vm0, %v1811_v8, 0.0 }
 0x223   : > { %v1887_v38 = vadd.f32 %v1886_v17, %v1885_v61  ;;  %v1988_v57 = vadd.f32 %v1987_v63, %v1986_v59  ;;  %2172 = vst.msk [vmem:[%s3242_s8 + $0x5c] sm:$0xf] %vm2148_vm9, %v2381_v47  ;;  %v1995_v4 = vsel %vm413_vm0, %v1941_v14, 0.0 }
 0x225   : > { %v1889_v52 = vadd.f32 %v1888_v16, %v1887_v38  ;;  %v1990_v7 = vadd.f32 %v1989_v3, %v1988_v57 }
 0x227   : > { %v1891_v39 = vadd.f32 %v1890_v62, %v1889_v52  ;;  %v1992_v9 = vadd.f32 %v1991_v0, %v1990_v7 }
 0x229   : > { %v1994_v60 = vadd.f32 %v1993_v15, %v1992_v9  ;;  %v1893_v11 = vadd.f32 %v1892_v10, %v1891_v39 }
 0x22b   : > { %v1996_v12 = vadd.f32 %v1995_v4, %v1994_v60  ;;  %v1816_v18 = vpop.f32.mrb[16].mxu1 }
 0x22c   : > { %v1894_v53 = vsel %vm413_vm0, %v1816_v18, 0.0  ;;  %v1942_v20 = vmul.f32 %v1816_v18, %v1816_v18  ;;  %v2382_v21 = vpack.c.bf16 %v1816_v18, %v1816_v18  ;;  %v1818_v22 = vpop.f32.mrb[17].mxu1 }
 0x22d   : > { %v1895_v23 = vadd.f32 %v1894_v53, %v1893_v11  ;;  %v1819_v58 = vpop.f32.mrb[18].mxu1 }
 0x22e   : > { %v1997_v24 = vsel %vm413_vm0, %v1942_v20, 0.0  ;;  %2173 = vst.msk [vmem:[%s3242_s8 + $0x60] sm:$0xf] %vm2148_vm9, %v2382_v21  ;;  %v1896_v25 = vsel %vm413_vm0, %v1819_v58, 0.0  ;;  %v1943_v26 = vmul.f32 %v1819_v58, %v1819_v58  ;;  %v2383_v27 = vpack.c.bf16 %v1819_v58, %v1819_v58  ;;  %v1821_v28 = vpop.f32.mrb[19].mxu1 }
 0x22f   : > { %v1998_v19 = vadd.f32 %v1997_v24, %v1996_v12  ;;  %v1897_v30 = vadd.f32 %v1896_v25, %v1895_v23 }
 0x230   : > { %v1999_v1 = vsel %vm413_vm0, %v1943_v26, 0.0  ;;  %2174 = vst.msk [vmem:[%s3242_s8 + $0x64] sm:$0xf] %vm2148_vm9, %v2383_v27 }
 0x231   : > { %v2000_v31 = vadd.f32 %v1999_v1, %v1998_v19 }
 0x23a   : > { %v1824_v32 = vpop.f32.mrb[20].mxu1 }
 0x23b   : > { %v1898_v33 = vsel %vm413_vm0, %v1824_v32, 0.0  ;;  %v1944_v2 = vmul.f32 %v1824_v32, %v1824_v32  ;;  %v2384_v45 = vpack.c.bf16 %v1824_v32, %v1824_v32  ;;  %v1826_v6 = vpop.f32.mrb[21].mxu1 }
 0x23c   : > { %v1899_v49 = vadd.f32 %v1898_v33, %v1897_v30  ;;  %v1827_v35 = vpop.f32.mrb[22].mxu1 }
 0x23d   : > { %v2001_v36 = vsel %vm413_vm0, %v1944_v2, 0.0  ;;  %2175 = vst.msk [vmem:[%s3242_s8 + $0x68] sm:$0xf] %vm2148_vm9, %v2384_v45  ;;  %v1900_v40 = vsel %vm413_vm0, %v1827_v35, 0.0  ;;  %v1945_v41 = vmul.f32 %v1827_v35, %v1827_v35  ;;  %v2385_v42 = vpack.c.bf16 %v1827_v35, %v1827_v35  ;;  %v1829_v43 = vpop.f32.mrb[23].mxu1 }
 0x23e   : > { %v2002_v37 = vadd.f32 %v2001_v36, %v2000_v31  ;;  %v1901_v13 = vadd.f32 %v1900_v40, %v1899_v49 }
 0x23f   : > { %v2003_v44 = vsel %vm413_vm0, %v1945_v41, 0.0  ;;  %2176 = vst.msk [vmem:[%s3242_s8 + $0x6c] sm:$0xf] %vm2148_vm9, %v2385_v42 }
 0x240   : > { %v2004_v46 = vadd.f32 %v2003_v44, %v2002_v37 }
 0x247   : > { %v1832_v48 = vpop.f32.mrb[24].mxu1 }
 0x248   : > { %v1902_v50 = vsel %vm413_vm0, %v1832_v48, 0.0  ;;  %v1946_v51 = vmul.f32 %v1832_v48, %v1832_v48  ;;  %v2386_v34 = vpack.c.bf16 %v1832_v48, %v1832_v48  ;;  %v1834_v54 = vpop.f32.mrb[25].mxu1 }
 0x249   : > { %v1903_v55 = vadd.f32 %v1902_v50, %v1901_v13  ;;  %v1835_v8 = vpop.f32.mrb[26].mxu1 }
 0x24a   : > { %v2005_v59 = vsel %vm413_vm0, %v1946_v51, 0.0  ;;  %2177 = vst.msk [vmem:[%s3242_s8 + $0x70] sm:$0xf] %vm2148_vm9, %v2386_v34  ;;  %v1904_v61 = vsel %vm413_vm0, %v1835_v8, 0.0  ;;  %v1947_v56 = vmul.f32 %v1835_v8, %v1835_v8  ;;  %v2387_v63 = vpack.c.bf16 %v1835_v8, %v1835_v8  ;;  %v1837_v17 = vpop.f32.mrb[27].mxu1 }
 0x24b   : > { %v2006_v29 = vadd.f32 %v2005_v59, %v2004_v46  ;;  %v1905_v47 = vadd.f32 %v1904_v61, %v1903_v55 }
 0x24c   : > { %v2007_v38 = vsel %vm413_vm0, %v1947_v56, 0.0  ;;  %2178 = vst.msk [vmem:[%s3242_s8 + $0x74] sm:$0xf] %vm2148_vm9, %v2387_v63 }
 0x24d   : > { %v2008_v57 = vadd.f32 %v2007_v38, %v2006_v29 }
 0x256   : > { %v1840_v3 = vpop.f32.mrb[28].mxu1 }
 0x257   : > { %v1906_v16 = vsel %vm413_vm0, %v1840_v3, 0.0  ;;  %v1948_v5 = vmul.f32 %v1840_v3, %v1840_v3  ;;  %v2388_v52 = vpack.c.bf16 %v1840_v3, %v1840_v3  ;;  %v1842_v7 = vpop.f32.mrb[29].mxu1 }
 0x258   : > { %v1907_v0 = vadd.f32 %v1906_v16, %v1905_v47  ;;  %v1843_v62 = vpop.f32.mrb[30].mxu1 }
 0x259   : > { %v2009_v14 = vsel %vm413_vm0, %v1948_v5, 0.0  ;;  %2179 = vst.msk [vmem:[%s3242_s8 + $0x78] sm:$0xf] %vm2148_vm9, %v2388_v52  ;;  %v1908_v39 = vsel %vm413_vm0, %v1843_v62, 0.0  ;;  %v1949_v9 = vmul.f32 %v1843_v62, %v1843_v62  ;;  %v2389_v15 = vpack.c.bf16 %v1843_v62, %v1843_v62  ;;  %v1845_v10 = vpop.f32.mrb[31].mxu1 }
 0x25a   : > { %v2010_v60 = vadd.f32 %v2009_v14, %v2008_v57  ;;  %v1909_v11 = vadd.f32 %v1908_v39, %v1907_v0 }
 0x25b   : > { %v2011_v4 = vsel %vm413_vm0, %v1949_v9, 0.0  ;;  %2180 = vst.msk [vmem:[%s3242_s8 + $0x7c] sm:$0xf] %vm2148_vm9, %v2389_v15 }
 0x25c   : > { %v1910_v12 = vrot.slane %v1909_v11, 4  ;;  %v2012_v18 = vadd.f32 %v2011_v4, %v2010_v60 }
 0x25e   : > { %v1911_v53 = vadd.f32 %v1910_v12, %v1909_v11  ;;  %v2013_v20 = vrot.slane %v2012_v18, 4 }
 0x260   : > { %v1912_v21 = vrot.slane %v1911_v53, 2  ;;  %v2014_v22 = vadd.f32 %v2013_v20, %v2012_v18 }
 0x262   : > { %v1913_v23 = vadd.f32 %v1912_v21, %v1911_v53  ;;  %v2015_v58 = vrot.slane %v2014_v22, 2 }
 0x264   : > { %v1914_v24 = vrot.slane %v1913_v23, 1  ;;  %v2016_v25 = vadd.f32 %v2015_v58, %v2014_v22 }
 0x266   : > { %v1915_v26 = vadd.f32 %v1914_v24, %v1913_v23  ;;  %v2017_v27 = vrot.slane %v2016_v25, 1 }
 0x268   : > { %1917 = vst.msk [vmem:[%s238_s10] sm:$0x1] %vm1916_vm10, %v1915_v26  ;;  %v2018_v28 = vadd.f32 %v2017_v27, %v2016_v25 }
 0x26a   : > { %2019 = vst.msk [vmem:[%s241_s13] sm:$0x1] %vm1916_vm10, %v2018_v28 }
 0x26b PF: > { %s16_s18 = sadd.s32 1, %s2519_s18  }
 0x26c   : > { %p13_p4 = scmp.ge.s32.totalorder %s16_s18, 4  }
 0x26e   :  { %15 = sbr.rel (!%p13_p4) target bundleno = 1 (0x1), region = 88 }

</bundles_post_ra>
